<compile_context>
chip_gen: v7x
topology: tpu7x:2x2x1
jax: 0.10.0
libtpu: 0.0.40
codegen_flags: <defaults>
</compile_context>

<pallas_src>
import jax
import jax.numpy as jnp
import numpy as np
from jax import lax
from jax.experimental import pallas as pl
from jax.experimental.pallas import tpu as pltpu

EMBED = 32
HEADS = 4
HEAD_DIM = EMBED // HEADS
FWD_EXP = 4
HIDDEN = FWD_EXP * EMBED
EPS = 1e-5
NEG = -1e20


# ---------------------------------------------------------------- kernel math
def _layernorm(h, g, b):
    mu = jnp.mean(h, axis=-1, keepdims=True)
    var = jnp.mean((h - mu) ** 2, axis=-1, keepdims=True)
    return (h - mu) * lax.rsqrt(var + EPS) * g + b


def _attend(Q2, K2, V2, bias, B, Lq, Lk):
    """Masked softmax attention, batched over the B_TILE batch dim.

    Q2/K2/V2: (B*Lq, E)/(B*Lk, E) f32 (softmax scale already folded into Wq).
    bias:     additive mask bias, (B, Lq, Lk) or (B, 1, Lk); 0 = keep, -1e20 = mask.
    Returns the head-concatenated context, (B*Lq, E) f32.
    """
    Q3 = Q2.reshape(B, Lq, EMBED)
    K3 = K2.reshape(B, Lk, EMBED)
    V3 = V2.reshape(B, Lk, EMBED)
    outs = []
    for h in range(HEADS):                       # static unroll, HEADS = 4
        lo = h * HEAD_DIM
        qh = Q3[:, :, lo:lo + HEAD_DIM]          # (B, Lq, D)
        kh = K3[:, :, lo:lo + HEAD_DIM]          # (B, Lk, D)
        vh = V3[:, :, lo:lo + HEAD_DIM]          # (B, Lk, D)
        e = jnp.einsum("bqd,bkd->bqk", qh, kh,
                       preferred_element_type=jnp.float32) + bias     # (B,Lq,Lk)
        m = jnp.max(e, axis=-1, keepdims=True)
        p = jnp.exp(e - m)
        a = p * pl.reciprocal(jnp.sum(p, axis=-1, keepdims=True), approx=True)
        outs.append(jnp.einsum("bqk,bkd->bqd", a, vh,
                               preferred_element_type=jnp.float32))    # (B,Lq,D)
    return jnp.concatenate(outs, axis=-1).reshape(B * Lq, EMBED)


def decoder_block_kernel(x_ref, val_ref, key_ref, trg_ref, src_ref,
                         w_att1_ref, w_att2_ref, w_ff1_ref, w_ff2_ref,
                         vec_ref, bf1_ref, out_ref):
    B, Lq, E = x_ref.shape
    Lk = val_ref.shape[1]
    M = B * Lq
    Mk = B * Lk
    f32 = jnp.float32
    bf16 = jnp.bfloat16

    # bias / LayerNorm parameter rows, (1, E) f32 each
    bo1 = vec_ref[0:1, :]
    g0 = vec_ref[1:2, :]
    b0 = vec_ref[2:3, :]
    bo2 = vec_ref[3:4, :]
    g1 = vec_ref[4:5, :]
    b1 = vec_ref[5:6, :]
    bf2 = vec_ref[6:7, :]
    g2 = vec_ref[7:8, :]
    b2 = vec_ref[8:9, :]

    x2 = x_ref[...].reshape(M, E)                 # bf16 (M, E)
    trg_bias = trg_ref[...]                       # (B, Lq, Lq) f32 additive bias
    src_bias = src_ref[...]                       # (B, 1, Lk)  f32 additive bias

    # ---- stage 1: masked self-attention (q = k = v = x) --------------------
    # one lane-dense (M, 4E) matmul: [Q | K | V | (x@Wo, unused)]
    qkv1 = jnp.dot(x2, w_att1_ref[...], preferred_element_type=f32)
    cat1 = _attend(qkv1[:, 0:E], qkv1[:, E:2 * E], qkv1[:, 2 * E:3 * E],
                   trg_bias, B, Lq, Lq)
    att1 = jnp.dot(cat1.astype(bf16), w_att1_ref[:, 3 * E:4 * E],
                   preferred_element_type=f32) + bo1
    # TODO(synk): nn.Dropout is treated as identity (eval / inference mode).
    query = _layernorm(att1 + x2.astype(f32), g0, b0)          # (M, E) f32

    # ---- stage 2: cross attention (q = query, k = enc key, v = enc value) --
    k2 = key_ref[...].reshape(Mk, E)                            # bf16
    v2 = val_ref[...].reshape(Mk, E)                            # bf16
    Q2 = jnp.dot(query.astype(bf16), w_att2_ref[:, 0:E], preferred_element_type=f32)
    if Mk % 8 == 0:
        # fuse K and V projections into one MXU issue on stacked rows
        kv_rows = jnp.concatenate([k2, v2], axis=0)             # (2*Mk, E) bf16
        kv_proj = jnp.dot(kv_rows, w_att2_ref[:, E:3 * E],
                          preferred_element_type=f32)           # (2*Mk, 2E) f32
        K2 = kv_proj[0:Mk, 0:E]
        V2 = kv_proj[Mk:2 * Mk, E:2 * E]
    else:
        K2 = jnp.dot(k2, w_att2_ref[:, E:2 * E], preferred_element_type=f32)
        V2 = jnp.dot(v2, w_att2_ref[:, 2 * E:3 * E], preferred_element_type=f32)
    cat2 = _attend(Q2, K2, V2, src_bias, B, Lq, Lk)
    att2 = jnp.dot(cat2.astype(bf16), w_att2_ref[:, 3 * E:4 * E],
                   preferred_element_type=f32) + bo2
    xc = _layernorm(att2 + query, g1, b1)                       # (M, E) f32

    # ---- stage 3: position-wise feed-forward --------------------------------
    h = jnp.dot(xc.astype(bf16), w_ff1_ref[...], preferred_element_type=f32) + bf1_ref[...]
    h = jnp.maximum(h, 0.0)
    ff = jnp.dot(h.astype(bf16), w_ff2_ref[...], preferred_element_type=f32) + bf2
    out = _layernorm(ff + xc, g2, b2)
    out_ref[...] = out.reshape(B, Lq, E).astype(out_ref.dtype)


# -------------------------------------------------------------------- wrapper
def _pick_b_tile(n, seq_len, target_rows=2048):
    """Largest divisor of n with b_tile*seq_len <= ~2048 MXU rows, preferring a
    grid (n // b_tile) that is >= 2 and even so v7x can use both TensorCores."""
    divs = [d for d in range(1, n + 1) if n % d == 0]
    fits = [d for d in divs if d * seq_len <= max(target_rows, seq_len)]
    preds = (lambda d: (n // d) >= 2 and (n // d) % 2 == 0,   # even grid >= 2
             lambda d: (n // d) >= 2,                          # grid >= 2
             lambda d: True)                                   # fallback (n == 1, ...)
    for pred in preds:
        cands = [d for d in fits if pred(d)]
        if cands:
            return max(cands)
    return 1


def _vmem_estimate(b_tile, Lq, Lk):
    """Rough per-step VMEM footprint (bytes): double-buffered streams + weights
    + live f32 intermediates. Used only to derive vmem_limit_bytes."""
    M, Mk = b_tile * Lq, b_tile * Lk
    streams = 2 * (M * EMBED * 2            # x tile (bf16)
                   + 2 * Mk * EMBED * 2     # value / key tiles (bf16)
                   + b_tile * Lq * Lq * 4   # trg bias (f32)
                   + b_tile * Lk * 4        # src bias (f32)
                   + M * EMBED * 4)         # output tile (f32)
    weights = 2 * (2 * EMBED * 4 * EMBED * 2   # w_att1, w_att2 (bf16)
                   + 2 * EMBED * HIDDEN * 2    # w_ff1, w_ff2 (bf16)
                   + 9 * EMBED * 4 + HIDDEN * 4)
    live = (M * 4 * EMBED * 4                  # qkv1
            + M * HIDDEN * 4                   # FFN hidden
            + 8 * M * EMBED * 4                # residual / LN temporaries
            + 2 * HEADS * b_tile * Lq * max(Lq, Lk) * 4  # attention scores
            + 2 * Mk * 2 * EMBED * 4)          # fused K/V projection
    return streams + weights + live


def decoder_block(x, value, key, src_mask, trg_mask, packed, b_tile=None):
    N, Lq, E = x.shape
    Lk = value.shape[1]
    out_dtype = x.dtype
    if b_tile is None:
        b_tile = _pick_b_tile(N, Lq)
    assert N % b_tile == 0

    # bf16 operands for the MXU; masks become f32 additive biases
    # (0 = keep, -1e20 = masked), so the kernel just adds them to the scores.
    xb = x.astype(jnp.bfloat16)
    vb = value.astype(jnp.bfloat16)
    kb = key.astype(jnp.bfloat16)
    trg = ((trg_mask.reshape(N, Lq, Lq) != 0).astype(jnp.float32) - 1.0) * 1e20
    src = ((src_mask.reshape(N, 1, Lk) != 0).astype(jnp.float32) - 1.0) * 1e20

    weights = [packed["w_att1"], packed["w_att2"], packed["w_ff1"],
               packed["w_ff2"], packed["vecs"], packed["bias_ff1"]]

    def bspec(shape):
        blk = (b_tile,) + tuple(shape[1:])
        nd = len(shape)
        return pl.BlockSpec(blk, lambda n, _nd=nd: (n,) + (0,) * (_nd - 1))

    def wspec(arr):
        nd = arr.ndim
        return pl.BlockSpec(arr.shape, lambda n, _nd=nd: (0,) * _nd)

    in_specs = ([bspec(xb.shape), bspec(vb.shape), bspec(kb.shape),
                 bspec(trg.shape), bspec(src.shape)]
                + [wspec(w) for w in weights])
    out_spec = pl.BlockSpec((b_tile, Lq, E), lambda n: (n, 0, 0))

    # vmem limit derived from real footprint with headroom; clamped so it never
    # caps the pipeline nor exceeds v7x physical VMEM.
    est = _vmem_estimate(b_tile, Lq, Lk)
    vmem_limit = int(min(64 << 20, max(32 << 20, 2 * est)))

    return pl.pallas_call(
        decoder_block_kernel,
        out_shape=jax.ShapeDtypeStruct((N, Lq, E), out_dtype),
        grid_spec=pltpu.PrefetchScalarGridSpec(
            num_scalar_prefetch=0, grid=(N // b_tile,),
            in_specs=in_specs, out_specs=out_spec),
        compiler_params=pltpu.CompilerParams(
            dimension_semantics=("parallel",),          # v7x: shard over 2 TCs
            vmem_limit_bytes=vmem_limit),
    )(xb, vb, kb, trg, src, *weights)


# ---------------------------------------------------------------- param setup
def init_raw_weights(rng):
    """Raw f32 weights in x@W convention (per-head proj folded to block-diag)."""
    ks = jax.random.split(rng, 12)
    lin = lambda k, s, sc=0.1: sc * jax.random.normal(k, s, jnp.float32)
    hd = HEAD_DIM
    blkdiag_T = lambda w: jnp.kron(jnp.eye(HEADS, dtype=jnp.float32), w.T)
    wq1, wk1, wv1 = lin(ks[0], (hd, hd)), lin(ks[1], (hd, hd)), lin(ks[2], (hd, hd))
    wo1, bo1 = lin(ks[3], (EMBED, EMBED)), lin(ks[4], (EMBED,))
    wq2, wk2, wv2 = lin(ks[5], (hd, hd)), lin(ks[6], (hd, hd)), lin(ks[7], (hd, hd))
    wo2, bo2 = lin(ks[8], (EMBED, EMBED)), lin(ks[9], (EMBED,))
    w1, b1 = lin(ks[10], (HIDDEN, EMBED)), jnp.zeros((HIDDEN,), jnp.float32)
    w2, b2 = lin(ks[11], (EMBED, HIDDEN)), jnp.zeros((EMBED,), jnp.float32)
    ones = jnp.ones((EMBED,), jnp.float32)
    zeros = jnp.zeros((EMBED,), jnp.float32)
    return (blkdiag_T(wq1), blkdiag_T(wk1), blkdiag_T(wv1), wo1.T, bo1, ones, zeros,
            blkdiag_T(wq2), blkdiag_T(wk2), blkdiag_T(wv2), wo2.T, bo2, ones, zeros,
            w1.T, b1, w2.T, b2, ones, zeros)


def pack_weights(raw):
    """Pack raw weights into the kernel's 6 slabs (bf16 matmul weights,
    f32 bias/LN slab); softmax 1/sqrt(E) is folded into Wq here (one-time)."""
    (wq1, wk1, wv1, wo1, bo1, g0, b0,
     wq2, wk2, wv2, wo2, bo2, g1, b1,
     w1, bf1, w2, bf2, g2, b2) = raw
    scale = 1.0 / np.sqrt(np.float32(EMBED))
    w_att1 = jnp.concatenate([wq1 * scale, wk1, wv1, wo1], axis=1).astype(jnp.bfloat16)
    w_att2 = jnp.concatenate([wq2 * scale, wk2, wv2, wo2], axis=1).astype(jnp.bfloat16)
    w_ff1 = w1.astype(jnp.bfloat16)
    w_ff2 = w2.astype(jnp.bfloat16)
    vecs = jnp.stack([bo1, g0, b0, bo2, g1, b1, bf2, g2, b2], axis=0).astype(jnp.float32)
    bias_ff1 = bf1.reshape(1, HIDDEN).astype(jnp.float32)
    return dict(w_att1=w_att1, w_att2=w_att2, w_ff1=w_ff1, w_ff2=w_ff2,
                vecs=vecs, bias_ff1=bias_ff1)


# ------------------------------------------------------------- pure-JAX check
def reference(x, value, key, src_mask, trg_mask, raw):
    (wq1, wk1, wv1, wo1, bo1, g0, b0,
     wq2, wk2, wv2, wo2, bo2, g1, b1,
     w1, bf1, w2, bf2, g2, b2) = raw

    def ln(h, g, b):
        mu = h.mean(-1, keepdims=True)
        var = ((h - mu) ** 2).mean(-1, keepdims=True)
        return (h - mu) / jnp.sqrt(var + EPS) * g + b

    def mha(q_in, k_in, v_in, mask, wq, wk, wv, wo, bo):
        Q, K, V = q_in @ wq, k_in @ wk, v_in @ wv
        N, Lq, _ = Q.shape
        Lk = K.shape[1]
        Qh = Q.reshape(N, Lq, HEADS, HEAD_DIM)
        Kh = K.reshape(N, Lk, HEADS, HEAD_DIM)
        Vh = V.reshape(N, Lk, HEADS, HEAD_DIM)
        e = jnp.einsum("nqhd,nkhd->nhqk", Qh, Kh)
        e = jnp.where(mask == 0, NEG, e)
        a = jax.nn.softmax(e / jnp.sqrt(jnp.float32(EMBED)), axis=-1)
        o = jnp.einsum("nhqk,nkhd->nqhd", a, Vh).reshape(N, Lq, EMBED)
        return o @ wo + bo

    attn1 = mha(x, x, x, trg_mask, wq1, wk1, wv1, wo1, bo1)
    query = ln(attn1 + x, g0, b0)
    attn2 = mha(query, key, value, src_mask, wq2, wk2, wv2, wo2, bo2)
    xc = ln(attn2 + query, g1, b1)
    ff = jnp.maximum(xc @ w1 + bf1, 0.0) @ w2 + bf2
    return ln(ff + xc, g2, b2)


if __name__ == "__main__":
    N, Lq, Lk = 8, 8, 8
    root = jax.random.PRNGKey(0)
    kx, kv, kk, kw = jax.random.split(root, 4)

    x = jax.random.normal(kx, (N, Lq, EMBED), jnp.float32)
    value = jax.random.normal(kv, (N, Lk, EMBED), jnp.float32)
    key = jax.random.normal(kk, (N, Lk, EMBED), jnp.float32)
    trg_mask = jnp.tril(jnp.ones((Lq, Lq), jnp.float32))[None, None].repeat(N, 0)
    lens = jnp.array([Lk, Lk - 2, Lk, Lk - 3, Lk, Lk - 1, Lk, Lk - 4])[:N]
    src_mask = (jnp.arange(Lk)[None, :] < lens[:, None]).astype(jnp.float32)
    src_mask = src_mask.reshape(N, 1, 1, Lk)

    raw = init_raw_weights(kw)
    packed = pack_weights(raw)

    out = decoder_block(x, value, key, src_mask, trg_mask, packed)
    out = jax.block_until_ready(out)

    ref = reference(x, value, key, src_mask, trg_mask, raw)
    # bf16 MXU operands in the kernel vs. full-f32 reference -> relaxed tolerance
    np.testing.assert_allclose(np.asarray(out), np.asarray(ref), rtol=5e-2, atol=5e-2)
    print("KERNEL_OK")
</pallas_src>

<mosaic_0001>
module attributes {stable_mosaic.version = 11 : i64} {
  func.func @decoder_block_kernel(%arg0: i32, %arg1: memref<4x8x32xbf16, #tpu.memory_space<vmem>>, %arg2: memref<4x8x32xbf16, #tpu.memory_space<vmem>>, %arg3: memref<4x8x32xbf16, #tpu.memory_space<vmem>>, %arg4: memref<4x8x8xf32, #tpu.memory_space<vmem>>, %arg5: memref<4x1x8xf32, #tpu.memory_space<vmem>>, %arg6: memref<32x128xbf16, #tpu.memory_space<vmem>>, %arg7: memref<32x128xbf16, #tpu.memory_space<vmem>>, %arg8: memref<32x128xbf16, #tpu.memory_space<vmem>>, %arg9: memref<128x32xbf16, #tpu.memory_space<vmem>>, %arg10: memref<9x32xf32, #tpu.memory_space<vmem>>, %arg11: memref<1x128xf32, #tpu.memory_space<vmem>>, %arg12: memref<4x8x32xf32, #tpu.memory_space<vmem>>) attributes {dimension_semantics = [#tpu.dimension_semantics<parallel>], iteration_bounds = array<i64: 2>, scalar_prefetch = 0 : i64, scratch_operands = 0 : i64, tpu.core_type = #tpu.core_type<tc>, window_params = [{transform_indices = @transform_0, window_bounds = array<i64: 4, 8, 32>}, {transform_indices = @transform_1, window_bounds = array<i64: 4, 8, 32>}, {transform_indices = @transform_2, window_bounds = array<i64: 4, 8, 32>}, {transform_indices = @transform_3, window_bounds = array<i64: 4, 8, 8>}, {transform_indices = @transform_4, window_bounds = array<i64: 4, 1, 8>}, {pipeline_mode = #tpu.pipeline_mode<synchronous>, transform_indices = @transform_5, window_bounds = array<i64: 32, 128>}, {pipeline_mode = #tpu.pipeline_mode<synchronous>, transform_indices = @transform_6, window_bounds = array<i64: 32, 128>}, {pipeline_mode = #tpu.pipeline_mode<synchronous>, transform_indices = @transform_7, window_bounds = array<i64: 32, 128>}, {pipeline_mode = #tpu.pipeline_mode<synchronous>, transform_indices = @transform_8, window_bounds = array<i64: 128, 32>}, {pipeline_mode = #tpu.pipeline_mode<synchronous>, transform_indices = @transform_9, window_bounds = array<i64: 9, 32>}, {pipeline_mode = #tpu.pipeline_mode<synchronous>, transform_indices = @transform_10, window_bounds = array<i64: 1, 128>}, {transform_indices = @transform_11, window_bounds = array<i64: 4, 8, 32>}]} {
    %c0 = arith.constant 0 : index
    %c0_0 = arith.constant 0 : index
    %0 = vector.load %arg10[%c0, %c0_0] : memref<9x32xf32, #tpu.memory_space<vmem>>, vector<1x32xf32>
    %c1 = arith.constant 1 : index
    %c0_1 = arith.constant 0 : index
    %1 = vector.load %arg10[%c1, %c0_1] : memref<9x32xf32, #tpu.memory_space<vmem>>, vector<1x32xf32>
    %c2 = arith.constant 2 : index
    %c0_2 = arith.constant 0 : index
    %2 = vector.load %arg10[%c2, %c0_2] : memref<9x32xf32, #tpu.memory_space<vmem>>, vector<1x32xf32>
    %c3 = arith.constant 3 : index
    %c0_3 = arith.constant 0 : index
    %3 = vector.load %arg10[%c3, %c0_3] : memref<9x32xf32, #tpu.memory_space<vmem>>, vector<1x32xf32>
    %c4 = arith.constant 4 : index
    %c0_4 = arith.constant 0 : index
    %4 = vector.load %arg10[%c4, %c0_4] : memref<9x32xf32, #tpu.memory_space<vmem>>, vector<1x32xf32>
    %c5 = arith.constant 5 : index
    %c0_5 = arith.constant 0 : index
    %5 = vector.load %arg10[%c5, %c0_5] : memref<9x32xf32, #tpu.memory_space<vmem>>, vector<1x32xf32>
    %c6 = arith.constant 6 : index
    %c0_6 = arith.constant 0 : index
    %6 = vector.load %arg10[%c6, %c0_6] : memref<9x32xf32, #tpu.memory_space<vmem>>, vector<1x32xf32>
    %c7 = arith.constant 7 : index
    %c0_7 = arith.constant 0 : index
    %7 = vector.load %arg10[%c7, %c0_7] : memref<9x32xf32, #tpu.memory_space<vmem>>, vector<1x32xf32>
    %c8 = arith.constant 8 : index
    %c0_8 = arith.constant 0 : index
    %8 = vector.load %arg10[%c8, %c0_8] : memref<9x32xf32, #tpu.memory_space<vmem>>, vector<1x32xf32>
    %c0_9 = arith.constant 0 : index
    %c0_10 = arith.constant 0 : index
    %c0_11 = arith.constant 0 : index
    %9 = vector.load %arg1[%c0_9, %c0_10, %c0_11] : memref<4x8x32xbf16, #tpu.memory_space<vmem>>, vector<4x8x32xbf16>
    %10 = vector.shape_cast %9 : vector<4x8x32xbf16> to vector<32x32xbf16>
    %c0_12 = arith.constant 0 : index
    %c0_13 = arith.constant 0 : index
    %c0_14 = arith.constant 0 : index
    %11 = vector.load %arg4[%c0_12, %c0_13, %c0_14] : memref<4x8x8xf32, #tpu.memory_space<vmem>>, vector<4x8x8xf32>
    %c0_15 = arith.constant 0 : index
    %c0_16 = arith.constant 0 : index
    %c0_17 = arith.constant 0 : index
    %12 = vector.load %arg5[%c0_15, %c0_16, %c0_17] : memref<4x1x8xf32, #tpu.memory_space<vmem>>, vector<4x1x8xf32>
    %c0_18 = arith.constant 0 : index
    %c0_19 = arith.constant 0 : index
    %13 = vector.load %arg6[%c0_18, %c0_19] : memref<32x128xbf16, #tpu.memory_space<vmem>>, vector<32x128xbf16>
    %cst = arith.constant dense<0.000000e+00> : vector<32x128xf32>
    %14 = tpu.matmul %10, %13, %cst {dimension_numbers = #tpu.dot_dimension_numbers<[1], [0], [0], [1], [0, 0, 1, 1], [], []>} : vector<32x32xbf16>, vector<32x128xbf16>, vector<32x128xf32> -> vector<32x128xf32>
    %15 = vector.extract_strided_slice %14 {offsets = [0, 0], sizes = [32, 32], strides = [1, 1]} : vector<32x128xf32> to vector<32x32xf32>
    %16 = vector.extract_strided_slice %14 {offsets = [0, 32], sizes = [32, 32], strides = [1, 1]} : vector<32x128xf32> to vector<32x32xf32>
    %17 = vector.extract_strided_slice %14 {offsets = [0, 64], sizes = [32, 32], strides = [1, 1]} : vector<32x128xf32> to vector<32x32xf32>
    %18 = vector.shape_cast %15 : vector<32x32xf32> to vector<4x8x32xf32>
    %19 = vector.shape_cast %16 : vector<32x32xf32> to vector<4x8x32xf32>
    %20 = vector.shape_cast %17 : vector<32x32xf32> to vector<4x8x32xf32>
    %21 = vector.extract_strided_slice %18 {offsets = [0, 0, 0], sizes = [4, 8, 8], strides = [1, 1, 1]} : vector<4x8x32xf32> to vector<4x8x8xf32>
    %22 = vector.extract_strided_slice %19 {offsets = [0, 0, 0], sizes = [4, 8, 8], strides = [1, 1, 1]} : vector<4x8x32xf32> to vector<4x8x8xf32>
    %23 = vector.extract_strided_slice %20 {offsets = [0, 0, 0], sizes = [4, 8, 8], strides = [1, 1, 1]} : vector<4x8x32xf32> to vector<4x8x8xf32>
    "tpu.trace_start"() <{level = 10 : i32, message = "bqd,bkd->bqk"}> : () -> ()
    %cst_20 = arith.constant dense<0.000000e+00> : vector<4x8x8xf32>
    %24 = tpu.matmul %21, %22, %cst_20 {dimension_numbers = #tpu.dot_dimension_numbers<[2], [2], [1], [1], [0, 0, 0, 1, 1, 1], [0], [0]>} : vector<4x8x8xf32>, vector<4x8x8xf32>, vector<4x8x8xf32> -> vector<4x8x8xf32>
    "tpu.trace_stop"() : () -> ()
    %25 = arith.addf %24, %11 : vector<4x8x8xf32>
    %cst_21 = arith.constant dense<0xFF800000> : vector<4x8xf32>
    %26 = vector.multi_reduction <maximumf>, %25, %cst_21 [2] : vector<4x8x8xf32> to vector<4x8xf32>
    %27 = vector.shape_cast %26 : vector<4x8xf32> to vector<4x8x1xf32>
    %28 = vector.broadcast %27 : vector<4x8x1xf32> to vector<4x8x8xf32>
    %29 = arith.subf %25, %28 : vector<4x8x8xf32>
    %30 = math.exp %29 : vector<4x8x8xf32>
    %cst_22 = arith.constant dense<0.000000e+00> : vector<4x8xf32>
    %31 = vector.multi_reduction <add>, %30, %cst_22 [2] : vector<4x8x8xf32> to vector<4x8xf32>
    %32 = vector.shape_cast %31 : vector<4x8xf32> to vector<4x8x1xf32>
    %33 = tpu.reciprocal %32 {approx = true} : vector<4x8x1xf32> -> vector<4x8x1xf32>
    %34 = vector.broadcast %33 : vector<4x8x1xf32> to vector<4x8x8xf32>
    %35 = arith.mulf %30, %34 : vector<4x8x8xf32>
    "tpu.trace_start"() <{level = 10 : i32, message = "bqk,bkd->bqd"}> : () -> ()
    %cst_23 = arith.constant dense<0.000000e+00> : vector<4x8x8xf32>
    %36 = tpu.matmul %35, %23, %cst_23 {dimension_numbers = #tpu.dot_dimension_numbers<[2], [1], [1], [2], [0, 0, 0, 1, 1, 2], [0], [0]>} : vector<4x8x8xf32>, vector<4x8x8xf32>, vector<4x8x8xf32> -> vector<4x8x8xf32>
    "tpu.trace_stop"() : () -> ()
    %37 = vector.extract_strided_slice %18 {offsets = [0, 0, 8], sizes = [4, 8, 8], strides = [1, 1, 1]} : vector<4x8x32xf32> to vector<4x8x8xf32>
    %38 = vector.extract_strided_slice %19 {offsets = [0, 0, 8], sizes = [4, 8, 8], strides = [1, 1, 1]} : vector<4x8x32xf32> to vector<4x8x8xf32>
    %39 = vector.extract_strided_slice %20 {offsets = [0, 0, 8], sizes = [4, 8, 8], strides = [1, 1, 1]} : vector<4x8x32xf32> to vector<4x8x8xf32>
    "tpu.trace_start"() <{level = 10 : i32, message = "bqd,bkd->bqk"}> : () -> ()
    %cst_24 = arith.constant dense<0.000000e+00> : vector<4x8x8xf32>
    %40 = tpu.matmul %37, %38, %cst_24 {dimension_numbers = #tpu.dot_dimension_numbers<[2], [2], [1], [1], [0, 0, 0, 1, 1, 1], [0], [0]>} : vector<4x8x8xf32>, vector<4x8x8xf32>, vector<4x8x8xf32> -> vector<4x8x8xf32>
    "tpu.trace_stop"() : () -> ()
    %41 = arith.addf %40, %11 : vector<4x8x8xf32>
    %cst_25 = arith.constant dense<0xFF800000> : vector<4x8xf32>
    %42 = vector.multi_reduction <maximumf>, %41, %cst_25 [2] : vector<4x8x8xf32> to vector<4x8xf32>
    %43 = vector.shape_cast %42 : vector<4x8xf32> to vector<4x8x1xf32>
    %44 = vector.broadcast %43 : vector<4x8x1xf32> to vector<4x8x8xf32>
    %45 = arith.subf %41, %44 : vector<4x8x8xf32>
    %46 = math.exp %45 : vector<4x8x8xf32>
    %cst_26 = arith.constant dense<0.000000e+00> : vector<4x8xf32>
    %47 = vector.multi_reduction <add>, %46, %cst_26 [2] : vector<4x8x8xf32> to vector<4x8xf32>
    %48 = vector.shape_cast %47 : vector<4x8xf32> to vector<4x8x1xf32>
    %49 = tpu.reciprocal %48 {approx = true} : vector<4x8x1xf32> -> vector<4x8x1xf32>
    %50 = vector.broadcast %49 : vector<4x8x1xf32> to vector<4x8x8xf32>
    %51 = arith.mulf %46, %50 : vector<4x8x8xf32>
    "tpu.trace_start"() <{level = 10 : i32, message = "bqk,bkd->bqd"}> : () -> ()
    %cst_27 = arith.constant dense<0.000000e+00> : vector<4x8x8xf32>
    %52 = tpu.matmul %51, %39, %cst_27 {dimension_numbers = #tpu.dot_dimension_numbers<[2], [1], [1], [2], [0, 0, 0, 1, 1, 2], [0], [0]>} : vector<4x8x8xf32>, vector<4x8x8xf32>, vector<4x8x8xf32> -> vector<4x8x8xf32>
    "tpu.trace_stop"() : () -> ()
    %53 = vector.extract_strided_slice %18 {offsets = [0, 0, 16], sizes = [4, 8, 8], strides = [1, 1, 1]} : vector<4x8x32xf32> to vector<4x8x8xf32>
    %54 = vector.extract_strided_slice %19 {offsets = [0, 0, 16], sizes = [4, 8, 8], strides = [1, 1, 1]} : vector<4x8x32xf32> to vector<4x8x8xf32>
    %55 = vector.extract_strided_slice %20 {offsets = [0, 0, 16], sizes = [4, 8, 8], strides = [1, 1, 1]} : vector<4x8x32xf32> to vector<4x8x8xf32>
    "tpu.trace_start"() <{level = 10 : i32, message = "bqd,bkd->bqk"}> : () -> ()
    %cst_28 = arith.constant dense<0.000000e+00> : vector<4x8x8xf32>
    %56 = tpu.matmul %53, %54, %cst_28 {dimension_numbers = #tpu.dot_dimension_numbers<[2], [2], [1], [1], [0, 0, 0, 1, 1, 1], [0], [0]>} : vector<4x8x8xf32>, vector<4x8x8xf32>, vector<4x8x8xf32> -> vector<4x8x8xf32>
    "tpu.trace_stop"() : () -> ()
    %57 = arith.addf %56, %11 : vector<4x8x8xf32>
    %cst_29 = arith.constant dense<0xFF800000> : vector<4x8xf32>
    %58 = vector.multi_reduction <maximumf>, %57, %cst_29 [2] : vector<4x8x8xf32> to vector<4x8xf32>
    %59 = vector.shape_cast %58 : vector<4x8xf32> to vector<4x8x1xf32>
    %60 = vector.broadcast %59 : vector<4x8x1xf32> to vector<4x8x8xf32>
    %61 = arith.subf %57, %60 : vector<4x8x8xf32>
    %62 = math.exp %61 : vector<4x8x8xf32>
    %cst_30 = arith.constant dense<0.000000e+00> : vector<4x8xf32>
    %63 = vector.multi_reduction <add>, %62, %cst_30 [2] : vector<4x8x8xf32> to vector<4x8xf32>
    %64 = vector.shape_cast %63 : vector<4x8xf32> to vector<4x8x1xf32>
    %65 = tpu.reciprocal %64 {approx = true} : vector<4x8x1xf32> -> vector<4x8x1xf32>
    %66 = vector.broadcast %65 : vector<4x8x1xf32> to vector<4x8x8xf32>
    %67 = arith.mulf %62, %66 : vector<4x8x8xf32>
    "tpu.trace_start"() <{level = 10 : i32, message = "bqk,bkd->bqd"}> : () -> ()
    %cst_31 = arith.constant dense<0.000000e+00> : vector<4x8x8xf32>
    %68 = tpu.matmul %67, %55, %cst_31 {dimension_numbers = #tpu.dot_dimension_numbers<[2], [1], [1], [2], [0, 0, 0, 1, 1, 2], [0], [0]>} : vector<4x8x8xf32>, vector<4x8x8xf32>, vector<4x8x8xf32> -> vector<4x8x8xf32>
    "tpu.trace_stop"() : () -> ()
    %69 = vector.extract_strided_slice %18 {offsets = [0, 0, 24], sizes = [4, 8, 8], strides = [1, 1, 1]} : vector<4x8x32xf32> to vector<4x8x8xf32>
    %70 = vector.extract_strided_slice %19 {offsets = [0, 0, 24], sizes = [4, 8, 8], strides = [1, 1, 1]} : vector<4x8x32xf32> to vector<4x8x8xf32>
    %71 = vector.extract_strided_slice %20 {offsets = [0, 0, 24], sizes = [4, 8, 8], strides = [1, 1, 1]} : vector<4x8x32xf32> to vector<4x8x8xf32>
    "tpu.trace_start"() <{level = 10 : i32, message = "bqd,bkd->bqk"}> : () -> ()
    %cst_32 = arith.constant dense<0.000000e+00> : vector<4x8x8xf32>
    %72 = tpu.matmul %69, %70, %cst_32 {dimension_numbers = #tpu.dot_dimension_numbers<[2], [2], [1], [1], [0, 0, 0, 1, 1, 1], [0], [0]>} : vector<4x8x8xf32>, vector<4x8x8xf32>, vector<4x8x8xf32> -> vector<4x8x8xf32>
    "tpu.trace_stop"() : () -> ()
    %73 = arith.addf %72, %11 : vector<4x8x8xf32>
    %cst_33 = arith.constant dense<0xFF800000> : vector<4x8xf32>
    %74 = vector.multi_reduction <maximumf>, %73, %cst_33 [2] : vector<4x8x8xf32> to vector<4x8xf32>
    %75 = vector.shape_cast %74 : vector<4x8xf32> to vector<4x8x1xf32>
    %76 = vector.broadcast %75 : vector<4x8x1xf32> to vector<4x8x8xf32>
    %77 = arith.subf %73, %76 : vector<4x8x8xf32>
    %78 = math.exp %77 : vector<4x8x8xf32>
    %cst_34 = arith.constant dense<0.000000e+00> : vector<4x8xf32>
    %79 = vector.multi_reduction <add>, %78, %cst_34 [2] : vector<4x8x8xf32> to vector<4x8xf32>
    %80 = vector.shape_cast %79 : vector<4x8xf32> to vector<4x8x1xf32>
    %81 = tpu.reciprocal %80 {approx = true} : vector<4x8x1xf32> -> vector<4x8x1xf32>
    %82 = vector.broadcast %81 : vector<4x8x1xf32> to vector<4x8x8xf32>
    %83 = arith.mulf %78, %82 : vector<4x8x8xf32>
    "tpu.trace_start"() <{level = 10 : i32, message = "bqk,bkd->bqd"}> : () -> ()
    %cst_35 = arith.constant dense<0.000000e+00> : vector<4x8x8xf32>
    %84 = tpu.matmul %83, %71, %cst_35 {dimension_numbers = #tpu.dot_dimension_numbers<[2], [1], [1], [2], [0, 0, 0, 1, 1, 2], [0], [0]>} : vector<4x8x8xf32>, vector<4x8x8xf32>, vector<4x8x8xf32> -> vector<4x8x8xf32>
    "tpu.trace_stop"() : () -> ()
    %85 = tpu.concatenate %36, %52, %68, %84 in 2 : vector<4x8x8xf32>, vector<4x8x8xf32>, vector<4x8x8xf32>, vector<4x8x8xf32> -> vector<4x8x32xf32>
    %86 = vector.shape_cast %85 : vector<4x8x32xf32> to vector<32x32xf32>
    %87 = arith.truncf %86 : vector<32x32xf32> to vector<32x32xbf16>
    %c0_36 = arith.constant 0 : index
    %c96 = arith.constant 96 : index
    %88 = vector.load %arg6[%c0_36, %c96] : memref<32x128xbf16, #tpu.memory_space<vmem>>, vector<32x32xbf16>
    %cst_37 = arith.constant dense<0.000000e+00> : vector<32x32xf32>
    %89 = tpu.matmul %87, %88, %cst_37 {dimension_numbers = #tpu.dot_dimension_numbers<[1], [0], [0], [1], [0, 0, 1, 1], [], []>} : vector<32x32xbf16>, vector<32x32xbf16>, vector<32x32xf32> -> vector<32x32xf32>
    %90 = vector.broadcast %0 : vector<1x32xf32> to vector<32x32xf32>
    %91 = arith.addf %89, %90 : vector<32x32xf32>
    %92 = arith.extf %10 : vector<32x32xbf16> to vector<32x32xf32>
    %93 = arith.addf %91, %92 : vector<32x32xf32>
    %cst_38 = arith.constant dense<0.000000e+00> : vector<32xf32>
    %94 = vector.multi_reduction <add>, %93, %cst_38 [1] : vector<32x32xf32> to vector<32xf32>
    %95 = vector.shape_cast %94 : vector<32xf32> to vector<32x1xf32>
    %cst_39 = arith.constant 3.200000e+01 : f32
    %96 = vector.broadcast %cst_39 : f32 to vector<32x1xf32>
    %97 = arith.divf %95, %96 : vector<32x1xf32>
    %98 = vector.broadcast %97 : vector<32x1xf32> to vector<32x32xf32>
    %99 = arith.subf %93, %98 : vector<32x32xf32>
    %100 = arith.mulf %99, %99 : vector<32x32xf32>
    %cst_40 = arith.constant dense<0.000000e+00> : vector<32xf32>
    %101 = vector.multi_reduction <add>, %100, %cst_40 [1] : vector<32x32xf32> to vector<32xf32>
    %102 = vector.shape_cast %101 : vector<32xf32> to vector<32x1xf32>
    %cst_41 = arith.constant 3.200000e+01 : f32
    %103 = vector.broadcast %cst_41 : f32 to vector<32x1xf32>
    %104 = arith.divf %102, %103 : vector<32x1xf32>
    %105 = vector.broadcast %97 : vector<32x1xf32> to vector<32x32xf32>
    %106 = arith.subf %93, %105 : vector<32x32xf32>
    %cst_42 = arith.constant 9.99999974E-6 : f32
    %107 = vector.broadcast %cst_42 : f32 to vector<32x1xf32>
    %108 = arith.addf %104, %107 : vector<32x1xf32>
    %109 = math.rsqrt %108 : vector<32x1xf32>
    %110 = vector.broadcast %109 : vector<32x1xf32> to vector<32x32xf32>
    %111 = arith.mulf %106, %110 : vector<32x32xf32>
    %112 = vector.broadcast %1 : vector<1x32xf32> to vector<32x32xf32>
    %113 = arith.mulf %111, %112 : vector<32x32xf32>
    %114 = vector.broadcast %2 : vector<1x32xf32> to vector<32x32xf32>
    %115 = arith.addf %113, %114 : vector<32x32xf32>
    %c0_43 = arith.constant 0 : index
    %c0_44 = arith.constant 0 : index
    %c0_45 = arith.constant 0 : index
    %116 = vector.load %arg3[%c0_43, %c0_44, %c0_45] : memref<4x8x32xbf16, #tpu.memory_space<vmem>>, vector<4x8x32xbf16>
    %117 = vector.shape_cast %116 : vector<4x8x32xbf16> to vector<32x32xbf16>
    %c0_46 = arith.constant 0 : index
    %c0_47 = arith.constant 0 : index
    %c0_48 = arith.constant 0 : index
    %118 = vector.load %arg2[%c0_46, %c0_47, %c0_48] : memref<4x8x32xbf16, #tpu.memory_space<vmem>>, vector<4x8x32xbf16>
    %119 = vector.shape_cast %118 : vector<4x8x32xbf16> to vector<32x32xbf16>
    %120 = arith.truncf %115 : vector<32x32xf32> to vector<32x32xbf16>
    %c0_49 = arith.constant 0 : index
    %c0_50 = arith.constant 0 : index
    %121 = vector.load %arg7[%c0_49, %c0_50] : memref<32x128xbf16, #tpu.memory_space<vmem>>, vector<32x32xbf16>
    %cst_51 = arith.constant dense<0.000000e+00> : vector<32x32xf32>
    %122 = tpu.matmul %120, %121, %cst_51 {dimension_numbers = #tpu.dot_dimension_numbers<[1], [0], [0], [1], [0, 0, 1, 1], [], []>} : vector<32x32xbf16>, vector<32x32xbf16>, vector<32x32xf32> -> vector<32x32xf32>
    %123 = tpu.concatenate %117, %119 in 0 : vector<32x32xbf16>, vector<32x32xbf16> -> vector<64x32xbf16>
    %c0_52 = arith.constant 0 : index
    %c32 = arith.constant 32 : index
    %124 = vector.load %arg7[%c0_52, %c32] : memref<32x128xbf16, #tpu.memory_space<vmem>>, vector<32x64xbf16>
    %cst_53 = arith.constant dense<0.000000e+00> : vector<64x64xf32>
    %125 = tpu.matmul %123, %124, %cst_53 {dimension_numbers = #tpu.dot_dimension_numbers<[1], [0], [0], [1], [0, 0, 1, 1], [], []>} : vector<64x32xbf16>, vector<32x64xbf16>, vector<64x64xf32> -> vector<64x64xf32>
    %126 = vector.extract_strided_slice %125 {offsets = [0, 0], sizes = [32, 32], strides = [1, 1]} : vector<64x64xf32> to vector<32x32xf32>
    %127 = vector.extract_strided_slice %125 {offsets = [32, 32], sizes = [32, 32], strides = [1, 1]} : vector<64x64xf32> to vector<32x32xf32>
    %128 = vector.shape_cast %122 : vector<32x32xf32> to vector<4x8x32xf32>
    %129 = vector.shape_cast %126 : vector<32x32xf32> to vector<4x8x32xf32>
    %130 = vector.shape_cast %127 : vector<32x32xf32> to vector<4x8x32xf32>
    %131 = vector.extract_strided_slice %128 {offsets = [0, 0, 0], sizes = [4, 8, 8], strides = [1, 1, 1]} : vector<4x8x32xf32> to vector<4x8x8xf32>
    %132 = vector.extract_strided_slice %129 {offsets = [0, 0, 0], sizes = [4, 8, 8], strides = [1, 1, 1]} : vector<4x8x32xf32> to vector<4x8x8xf32>
    %133 = vector.extract_strided_slice %130 {offsets = [0, 0, 0], sizes = [4, 8, 8], strides = [1, 1, 1]} : vector<4x8x32xf32> to vector<4x8x8xf32>
    "tpu.trace_start"() <{level = 10 : i32, message = "bqd,bkd->bqk"}> : () -> ()
    %cst_54 = arith.constant dense<0.000000e+00> : vector<4x8x8xf32>
    %134 = tpu.matmul %131, %132, %cst_54 {dimension_numbers = #tpu.dot_dimension_numbers<[2], [2], [1], [1], [0, 0, 0, 1, 1, 1], [0], [0]>} : vector<4x8x8xf32>, vector<4x8x8xf32>, vector<4x8x8xf32> -> vector<4x8x8xf32>
    "tpu.trace_stop"() : () -> ()
    %135 = vector.broadcast %12 : vector<4x1x8xf32> to vector<4x8x8xf32>
    %136 = arith.addf %134, %135 : vector<4x8x8xf32>
    %cst_55 = arith.constant dense<0xFF800000> : vector<4x8xf32>
    %137 = vector.multi_reduction <maximumf>, %136, %cst_55 [2] : vector<4x8x8xf32> to vector<4x8xf32>
    %138 = vector.shape_cast %137 : vector<4x8xf32> to vector<4x8x1xf32>
    %139 = vector.broadcast %138 : vector<4x8x1xf32> to vector<4x8x8xf32>
    %140 = arith.subf %136, %139 : vector<4x8x8xf32>
    %141 = math.exp %140 : vector<4x8x8xf32>
    %cst_56 = arith.constant dense<0.000000e+00> : vector<4x8xf32>
    %142 = vector.multi_reduction <add>, %141, %cst_56 [2] : vector<4x8x8xf32> to vector<4x8xf32>
    %143 = vector.shape_cast %142 : vector<4x8xf32> to vector<4x8x1xf32>
    %144 = tpu.reciprocal %143 {approx = true} : vector<4x8x1xf32> -> vector<4x8x1xf32>
    %145 = vector.broadcast %144 : vector<4x8x1xf32> to vector<4x8x8xf32>
    %146 = arith.mulf %141, %145 : vector<4x8x8xf32>
    "tpu.trace_start"() <{level = 10 : i32, message = "bqk,bkd->bqd"}> : () -> ()
    %cst_57 = arith.constant dense<0.000000e+00> : vector<4x8x8xf32>
    %147 = tpu.matmul %146, %133, %cst_57 {dimension_numbers = #tpu.dot_dimension_numbers<[2], [1], [1], [2], [0, 0, 0, 1, 1, 2], [0], [0]>} : vector<4x8x8xf32>, vector<4x8x8xf32>, vector<4x8x8xf32> -> vector<4x8x8xf32>
    "tpu.trace_stop"() : () -> ()
    %148 = vector.extract_strided_slice %128 {offsets = [0, 0, 8], sizes = [4, 8, 8], strides = [1, 1, 1]} : vector<4x8x32xf32> to vector<4x8x8xf32>
    %149 = vector.extract_strided_slice %129 {offsets = [0, 0, 8], sizes = [4, 8, 8], strides = [1, 1, 1]} : vector<4x8x32xf32> to vector<4x8x8xf32>
    %150 = vector.extract_strided_slice %130 {offsets = [0, 0, 8], sizes = [4, 8, 8], strides = [1, 1, 1]} : vector<4x8x32xf32> to vector<4x8x8xf32>
    "tpu.trace_start"() <{level = 10 : i32, message = "bqd,bkd->bqk"}> : () -> ()
    %cst_58 = arith.constant dense<0.000000e+00> : vector<4x8x8xf32>
    %151 = tpu.matmul %148, %149, %cst_58 {dimension_numbers = #tpu.dot_dimension_numbers<[2], [2], [1], [1], [0, 0, 0, 1, 1, 1], [0], [0]>} : vector<4x8x8xf32>, vector<4x8x8xf32>, vector<4x8x8xf32> -> vector<4x8x8xf32>
    "tpu.trace_stop"() : () -> ()
    %152 = vector.broadcast %12 : vector<4x1x8xf32> to vector<4x8x8xf32>
    %153 = arith.addf %151, %152 : vector<4x8x8xf32>
    %cst_59 = arith.constant dense<0xFF800000> : vector<4x8xf32>
    %154 = vector.multi_reduction <maximumf>, %153, %cst_59 [2] : vector<4x8x8xf32> to vector<4x8xf32>
    %155 = vector.shape_cast %154 : vector<4x8xf32> to vector<4x8x1xf32>
    %156 = vector.broadcast %155 : vector<4x8x1xf32> to vector<4x8x8xf32>
    %157 = arith.subf %153, %156 : vector<4x8x8xf32>
    %158 = math.exp %157 : vector<4x8x8xf32>
    %cst_60 = arith.constant dense<0.000000e+00> : vector<4x8xf32>
    %159 = vector.multi_reduction <add>, %158, %cst_60 [2] : vector<4x8x8xf32> to vector<4x8xf32>
    %160 = vector.shape_cast %159 : vector<4x8xf32> to vector<4x8x1xf32>
    %161 = tpu.reciprocal %160 {approx = true} : vector<4x8x1xf32> -> vector<4x8x1xf32>
    %162 = vector.broadcast %161 : vector<4x8x1xf32> to vector<4x8x8xf32>
    %163 = arith.mulf %158, %162 : vector<4x8x8xf32>
    "tpu.trace_start"() <{level = 10 : i32, message = "bqk,bkd->bqd"}> : () -> ()
    %cst_61 = arith.constant dense<0.000000e+00> : vector<4x8x8xf32>
    %164 = tpu.matmul %163, %150, %cst_61 {dimension_numbers = #tpu.dot_dimension_numbers<[2], [1], [1], [2], [0, 0, 0, 1, 1, 2], [0], [0]>} : vector<4x8x8xf32>, vector<4x8x8xf32>, vector<4x8x8xf32> -> vector<4x8x8xf32>
    "tpu.trace_stop"() : () -> ()
    %165 = vector.extract_strided_slice %128 {offsets = [0, 0, 16], sizes = [4, 8, 8], strides = [1, 1, 1]} : vector<4x8x32xf32> to vector<4x8x8xf32>
    %166 = vector.extract_strided_slice %129 {offsets = [0, 0, 16], sizes = [4, 8, 8], strides = [1, 1, 1]} : vector<4x8x32xf32> to vector<4x8x8xf32>
    %167 = vector.extract_strided_slice %130 {offsets = [0, 0, 16], sizes = [4, 8, 8], strides = [1, 1, 1]} : vector<4x8x32xf32> to vector<4x8x8xf32>
    "tpu.trace_start"() <{level = 10 : i32, message = "bqd,bkd->bqk"}> : () -> ()
    %cst_62 = arith.constant dense<0.000000e+00> : vector<4x8x8xf32>
    %168 = tpu.matmul %165, %166, %cst_62 {dimension_numbers = #tpu.dot_dimension_numbers<[2], [2], [1], [1], [0, 0, 0, 1, 1, 1], [0], [0]>} : vector<4x8x8xf32>, vector<4x8x8xf32>, vector<4x8x8xf32> -> vector<4x8x8xf32>
    "tpu.trace_stop"() : () -> ()
    %169 = vector.broadcast %12 : vector<4x1x8xf32> to vector<4x8x8xf32>
    %170 = arith.addf %168, %169 : vector<4x8x8xf32>
    %cst_63 = arith.constant dense<0xFF800000> : vector<4x8xf32>
    %171 = vector.multi_reduction <maximumf>, %170, %cst_63 [2] : vector<4x8x8xf32> to vector<4x8xf32>
    %172 = vector.shape_cast %171 : vector<4x8xf32> to vector<4x8x1xf32>
    %173 = vector.broadcast %172 : vector<4x8x1xf32> to vector<4x8x8xf32>
    %174 = arith.subf %170, %173 : vector<4x8x8xf32>
    %175 = math.exp %174 : vector<4x8x8xf32>
    %cst_64 = arith.constant dense<0.000000e+00> : vector<4x8xf32>
    %176 = vector.multi_reduction <add>, %175, %cst_64 [2] : vector<4x8x8xf32> to vector<4x8xf32>
    %177 = vector.shape_cast %176 : vector<4x8xf32> to vector<4x8x1xf32>
    %178 = tpu.reciprocal %177 {approx = true} : vector<4x8x1xf32> -> vector<4x8x1xf32>
    %179 = vector.broadcast %178 : vector<4x8x1xf32> to vector<4x8x8xf32>
    %180 = arith.mulf %175, %179 : vector<4x8x8xf32>
    "tpu.trace_start"() <{level = 10 : i32, message = "bqk,bkd->bqd"}> : () -> ()
    %cst_65 = arith.constant dense<0.000000e+00> : vector<4x8x8xf32>
    %181 = tpu.matmul %180, %167, %cst_65 {dimension_numbers = #tpu.dot_dimension_numbers<[2], [1], [1], [2], [0, 0, 0, 1, 1, 2], [0], [0]>} : vector<4x8x8xf32>, vector<4x8x8xf32>, vector<4x8x8xf32> -> vector<4x8x8xf32>
    "tpu.trace_stop"() : () -> ()
    %182 = vector.extract_strided_slice %128 {offsets = [0, 0, 24], sizes = [4, 8, 8], strides = [1, 1, 1]} : vector<4x8x32xf32> to vector<4x8x8xf32>
    %183 = vector.extract_strided_slice %129 {offsets = [0, 0, 24], sizes = [4, 8, 8], strides = [1, 1, 1]} : vector<4x8x32xf32> to vector<4x8x8xf32>
    %184 = vector.extract_strided_slice %130 {offsets = [0, 0, 24], sizes = [4, 8, 8], strides = [1, 1, 1]} : vector<4x8x32xf32> to vector<4x8x8xf32>
    "tpu.trace_start"() <{level = 10 : i32, message = "bqd,bkd->bqk"}> : () -> ()
    %cst_66 = arith.constant dense<0.000000e+00> : vector<4x8x8xf32>
    %185 = tpu.matmul %182, %183, %cst_66 {dimension_numbers = #tpu.dot_dimension_numbers<[2], [2], [1], [1], [0, 0, 0, 1, 1, 1], [0], [0]>} : vector<4x8x8xf32>, vector<4x8x8xf32>, vector<4x8x8xf32> -> vector<4x8x8xf32>
    "tpu.trace_stop"() : () -> ()
    %186 = vector.broadcast %12 : vector<4x1x8xf32> to vector<4x8x8xf32>
    %187 = arith.addf %185, %186 : vector<4x8x8xf32>
    %cst_67 = arith.constant dense<0xFF800000> : vector<4x8xf32>
    %188 = vector.multi_reduction <maximumf>, %187, %cst_67 [2] : vector<4x8x8xf32> to vector<4x8xf32>
    %189 = vector.shape_cast %188 : vector<4x8xf32> to vector<4x8x1xf32>
    %190 = vector.broadcast %189 : vector<4x8x1xf32> to vector<4x8x8xf32>
    %191 = arith.subf %187, %190 : vector<4x8x8xf32>
    %192 = math.exp %191 : vector<4x8x8xf32>
    %cst_68 = arith.constant dense<0.000000e+00> : vector<4x8xf32>
    %193 = vector.multi_reduction <add>, %192, %cst_68 [2] : vector<4x8x8xf32> to vector<4x8xf32>
    %194 = vector.shape_cast %193 : vector<4x8xf32> to vector<4x8x1xf32>
    %195 = tpu.reciprocal %194 {approx = true} : vector<4x8x1xf32> -> vector<4x8x1xf32>
    %196 = vector.broadcast %195 : vector<4x8x1xf32> to vector<4x8x8xf32>
    %197 = arith.mulf %192, %196 : vector<4x8x8xf32>
    "tpu.trace_start"() <{level = 10 : i32, message = "bqk,bkd->bqd"}> : () -> ()
    %cst_69 = arith.constant dense<0.000000e+00> : vector<4x8x8xf32>
    %198 = tpu.matmul %197, %184, %cst_69 {dimension_numbers = #tpu.dot_dimension_numbers<[2], [1], [1], [2], [0, 0, 0, 1, 1, 2], [0], [0]>} : vector<4x8x8xf32>, vector<4x8x8xf32>, vector<4x8x8xf32> -> vector<4x8x8xf32>
    "tpu.trace_stop"() : () -> ()
    %199 = tpu.concatenate %147, %164, %181, %198 in 2 : vector<4x8x8xf32>, vector<4x8x8xf32>, vector<4x8x8xf32>, vector<4x8x8xf32> -> vector<4x8x32xf32>
    %200 = vector.shape_cast %199 : vector<4x8x32xf32> to vector<32x32xf32>
    %201 = arith.truncf %200 : vector<32x32xf32> to vector<32x32xbf16>
    %c0_70 = arith.constant 0 : index
    %c96_71 = arith.constant 96 : index
    %202 = vector.load %arg7[%c0_70, %c96_71] : memref<32x128xbf16, #tpu.memory_space<vmem>>, vector<32x32xbf16>
    %cst_72 = arith.constant dense<0.000000e+00> : vector<32x32xf32>
    %203 = tpu.matmul %201, %202, %cst_72 {dimension_numbers = #tpu.dot_dimension_numbers<[1], [0], [0], [1], [0, 0, 1, 1], [], []>} : vector<32x32xbf16>, vector<32x32xbf16>, vector<32x32xf32> -> vector<32x32xf32>
    %204 = vector.broadcast %3 : vector<1x32xf32> to vector<32x32xf32>
    %205 = arith.addf %203, %204 : vector<32x32xf32>
    %206 = arith.addf %205, %115 : vector<32x32xf32>
    %cst_73 = arith.constant dense<0.000000e+00> : vector<32xf32>
    %207 = vector.multi_reduction <add>, %206, %cst_73 [1] : vector<32x32xf32> to vector<32xf32>
    %208 = vector.shape_cast %207 : vector<32xf32> to vector<32x1xf32>
    %cst_74 = arith.constant 3.200000e+01 : f32
    %209 = vector.broadcast %cst_74 : f32 to vector<32x1xf32>
    %210 = arith.divf %208, %209 : vector<32x1xf32>
    %211 = vector.broadcast %210 : vector<32x1xf32> to vector<32x32xf32>
    %212 = arith.subf %206, %211 : vector<32x32xf32>
    %213 = arith.mulf %212, %212 : vector<32x32xf32>
    %cst_75 = arith.constant dense<0.000000e+00> : vector<32xf32>
    %214 = vector.multi_reduction <add>, %213, %cst_75 [1] : vector<32x32xf32> to vector<32xf32>
    %215 = vector.shape_cast %214 : vector<32xf32> to vector<32x1xf32>
    %cst_76 = arith.constant 3.200000e+01 : f32
    %216 = vector.broadcast %cst_76 : f32 to vector<32x1xf32>
    %217 = arith.divf %215, %216 : vector<32x1xf32>
    %218 = vector.broadcast %210 : vector<32x1xf32> to vector<32x32xf32>
    %219 = arith.subf %206, %218 : vector<32x32xf32>
    %cst_77 = arith.constant 9.99999974E-6 : f32
    %220 = vector.broadcast %cst_77 : f32 to vector<32x1xf32>
    %221 = arith.addf %217, %220 : vector<32x1xf32>
    %222 = math.rsqrt %221 : vector<32x1xf32>
    %223 = vector.broadcast %222 : vector<32x1xf32> to vector<32x32xf32>
    %224 = arith.mulf %219, %223 : vector<32x32xf32>
    %225 = vector.broadcast %4 : vector<1x32xf32> to vector<32x32xf32>
    %226 = arith.mulf %224, %225 : vector<32x32xf32>
    %227 = vector.broadcast %5 : vector<1x32xf32> to vector<32x32xf32>
    %228 = arith.addf %226, %227 : vector<32x32xf32>
    %229 = arith.truncf %228 : vector<32x32xf32> to vector<32x32xbf16>
    %c0_78 = arith.constant 0 : index
    %c0_79 = arith.constant 0 : index
    %230 = vector.load %arg8[%c0_78, %c0_79] : memref<32x128xbf16, #tpu.memory_space<vmem>>, vector<32x128xbf16>
    %cst_80 = arith.constant dense<0.000000e+00> : vector<32x128xf32>
    %231 = tpu.matmul %229, %230, %cst_80 {dimension_numbers = #tpu.dot_dimension_numbers<[1], [0], [0], [1], [0, 0, 1, 1], [], []>} : vector<32x32xbf16>, vector<32x128xbf16>, vector<32x128xf32> -> vector<32x128xf32>
    %c0_81 = arith.constant 0 : index
    %c0_82 = arith.constant 0 : index
    %232 = vector.load %arg11[%c0_81, %c0_82] : memref<1x128xf32, #tpu.memory_space<vmem>>, vector<1x128xf32>
    %233 = vector.broadcast %232 : vector<1x128xf32> to vector<32x128xf32>
    %234 = arith.addf %231, %233 : vector<32x128xf32>
    %cst_83 = arith.constant 0.000000e+00 : f32
    %235 = vector.broadcast %cst_83 : f32 to vector<32x128xf32>
    %236 = arith.maximumf %234, %235 : vector<32x128xf32>
    %237 = arith.truncf %236 : vector<32x128xf32> to vector<32x128xbf16>
    %c0_84 = arith.constant 0 : index
    %c0_85 = arith.constant 0 : index
    %238 = vector.load %arg9[%c0_84, %c0_85] : memref<128x32xbf16, #tpu.memory_space<vmem>>, vector<128x32xbf16>
    %cst_86 = arith.constant dense<0.000000e+00> : vector<32x32xf32>
    %239 = tpu.matmul %237, %238, %cst_86 {dimension_numbers = #tpu.dot_dimension_numbers<[1], [0], [0], [1], [0, 0, 1, 1], [], []>} : vector<32x128xbf16>, vector<128x32xbf16>, vector<32x32xf32> -> vector<32x32xf32>
    %240 = vector.broadcast %6 : vector<1x32xf32> to vector<32x32xf32>
    %241 = arith.addf %239, %240 : vector<32x32xf32>
    %242 = arith.addf %241, %228 : vector<32x32xf32>
    %cst_87 = arith.constant dense<0.000000e+00> : vector<32xf32>
    %243 = vector.multi_reduction <add>, %242, %cst_87 [1] : vector<32x32xf32> to vector<32xf32>
    %244 = vector.shape_cast %243 : vector<32xf32> to vector<32x1xf32>
    %cst_88 = arith.constant 3.200000e+01 : f32
    %245 = vector.broadcast %cst_88 : f32 to vector<32x1xf32>
    %246 = arith.divf %244, %245 : vector<32x1xf32>
    %247 = vector.broadcast %246 : vector<32x1xf32> to vector<32x32xf32>
    %248 = arith.subf %242, %247 : vector<32x32xf32>
    %249 = arith.mulf %248, %248 : vector<32x32xf32>
    %cst_89 = arith.constant dense<0.000000e+00> : vector<32xf32>
    %250 = vector.multi_reduction <add>, %249, %cst_89 [1] : vector<32x32xf32> to vector<32xf32>
    %251 = vector.shape_cast %250 : vector<32xf32> to vector<32x1xf32>
    %cst_90 = arith.constant 3.200000e+01 : f32
    %252 = vector.broadcast %cst_90 : f32 to vector<32x1xf32>
    %253 = arith.divf %251, %252 : vector<32x1xf32>
    %254 = vector.broadcast %246 : vector<32x1xf32> to vector<32x32xf32>
    %255 = arith.subf %242, %254 : vector<32x32xf32>
    %cst_91 = arith.constant 9.99999974E-6 : f32
    %256 = vector.broadcast %cst_91 : f32 to vector<32x1xf32>
    %257 = arith.addf %253, %256 : vector<32x1xf32>
    %258 = math.rsqrt %257 : vector<32x1xf32>
    %259 = vector.broadcast %258 : vector<32x1xf32> to vector<32x32xf32>
    %260 = arith.mulf %255, %259 : vector<32x32xf32>
    %261 = vector.broadcast %7 : vector<1x32xf32> to vector<32x32xf32>
    %262 = arith.mulf %260, %261 : vector<32x32xf32>
    %263 = vector.broadcast %8 : vector<1x32xf32> to vector<32x32xf32>
    %264 = arith.addf %262, %263 : vector<32x32xf32>
    %265 = vector.shape_cast %264 : vector<32x32xf32> to vector<4x8x32xf32>
    %c0_92 = arith.constant 0 : index
    %c0_93 = arith.constant 0 : index
    %c0_94 = arith.constant 0 : index
    %266 = vector.load %arg12[%c0_92, %c0_93, %c0_94] : memref<4x8x32xf32, #tpu.memory_space<vmem>>, vector<4x8x32xf32>
    tpu.vector_store %arg12[%c0_92, %c0_93, %c0_94], %265 {strides = array<i32>} : memref<4x8x32xf32, #tpu.memory_space<vmem>>, vector<4x8x32xf32>,
    return
  }
  func.func @transform_0(%arg0: i32) -> (i32, i32, i32) {
    %c0_i32 = arith.constant 0 : i32
    %c0_i32_0 = arith.constant 0 : i32
    %c0_i32_1 = arith.constant 0 : i32
    return %arg0, %c0_i32, %c0_i32_0 : i32, i32, i32
  }
  func.func @transform_1(%arg0: i32) -> (i32, i32, i32) {
    %c0_i32 = arith.constant 0 : i32
    %c0_i32_0 = arith.constant 0 : i32
    %c0_i32_1 = arith.constant 0 : i32
    return %arg0, %c0_i32, %c0_i32_0 : i32, i32, i32
  }
  func.func @transform_2(%arg0: i32) -> (i32, i32, i32) {
    %c0_i32 = arith.constant 0 : i32
    %c0_i32_0 = arith.constant 0 : i32
    %c0_i32_1 = arith.constant 0 : i32
    return %arg0, %c0_i32, %c0_i32_0 : i32, i32, i32
  }
  func.func @transform_3(%arg0: i32) -> (i32, i32, i32) {
    %c0_i32 = arith.constant 0 : i32
    %c0_i32_0 = arith.constant 0 : i32
    %c0_i32_1 = arith.constant 0 : i32
    return %arg0, %c0_i32, %c0_i32_0 : i32, i32, i32
  }
  func.func @transform_4(%arg0: i32) -> (i32, i32, i32) {
    %c0_i32 = arith.constant 0 : i32
    %c0_i32_0 = arith.constant 0 : i32
    %c0_i32_1 = arith.constant 0 : i32
    return %arg0, %c0_i32, %c0_i32_0 : i32, i32, i32
  }
  func.func @transform_5(%arg0: i32) -> (i32, i32) {
    %c0_i32 = arith.constant 0 : i32
    %c0_i32_0 = arith.constant 0 : i32
    %c0_i32_1 = arith.constant 0 : i32
    return %c0_i32, %c0_i32_0 : i32, i32
  }
  func.func @transform_6(%arg0: i32) -> (i32, i32) {
    %c0_i32 = arith.constant 0 : i32
    %c0_i32_0 = arith.constant 0 : i32
    %c0_i32_1 = arith.constant 0 : i32
    return %c0_i32, %c0_i32_0 : i32, i32
  }
  func.func @transform_7(%arg0: i32) -> (i32, i32) {
    %c0_i32 = arith.constant 0 : i32
    %c0_i32_0 = arith.constant 0 : i32
    %c0_i32_1 = arith.constant 0 : i32
    return %c0_i32, %c0_i32_0 : i32, i32
  }
  func.func @transform_8(%arg0: i32) -> (i32, i32) {
    %c0_i32 = arith.constant 0 : i32
    %c0_i32_0 = arith.constant 0 : i32
    %c0_i32_1 = arith.constant 0 : i32
    return %c0_i32, %c0_i32_0 : i32, i32
  }
  func.func @transform_9(%arg0: i32) -> (i32, i32) {
    %c0_i32 = arith.constant 0 : i32
    %c0_i32_0 = arith.constant 0 : i32
    %c0_i32_1 = arith.constant 0 : i32
    return %c0_i32, %c0_i32_0 : i32, i32
  }
  func.func @transform_10(%arg0: i32) -> (i32, i32) {
    %c0_i32 = arith.constant 0 : i32
    %c0_i32_0 = arith.constant 0 : i32
    %c0_i32_1 = arith.constant 0 : i32
    return %c0_i32, %c0_i32_0 : i32, i32
  }
  func.func @transform_11(%arg0: i32) -> (i32, i32, i32) {
    %c0_i32 = arith.constant 0 : i32
    %c0_i32_0 = arith.constant 0 : i32
    %c0_i32_1 = arith.constant 0 : i32
    return %arg0, %c0_i32, %c0_i32_0 : i32, i32, i32
  }
}

</mosaic_0001>

<bundles_post_ra>
// kernel: tpu_custom_call.1
= control target key start
LH: loop header
LB: loop body
LE: loop exit
PB: predicated region body
PF: predicated region fallthrough
CT: control target
= control target key end

     0   :  { %s9760_s0 = inlined_call_operand.hbm [shape: bf16[8,8,32], index: 0, kind: input, shape index: {}]   ;;  %s9761_s1 = inlined_call_operand.hbm [shape: bf16[8,8,32], index: 1, kind: input, shape index: {}]   ;;  %s9762_s2 = inlined_call_operand.hbm [shape: bf16[8,8,32], index: 2, kind: input, shape index: {}]   ;;  %s9763_s3 = inlined_call_operand.vmem [shape: f32[8,8,8], index: 3, kind: input, shape index: {}]   ;;  %s9764_s4 = inlined_call_operand.hbm [shape: f32[8,1,8], index: 4, kind: input, shape index: {}]   ;;  %s9765_s5 = inlined_call_operand.vmem [shape: bf16[32,128], index: 5, kind: input, shape index: {}]   ;;  %s9766_s6 = inlined_call_operand.hbm [shape: bf16[32,128], index: 6, kind: input, shape index: {}]   ;;  %s9767_s7 = inlined_call_operand.hbm [shape: bf16[32,128], index: 7, kind: input, shape index: {}]   ;;  %s9768_s8 = inlined_call_operand.vmem [shape: bf16[128,32], index: 8, kind: input, shape index: {}]   ;;  %s9769_s9 = inlined_call_operand.vmem [shape: f32[9,32], index: 9, kind: input, shape index: {}]   ;;  %s9770_s10 = inlined_call_operand.vmem [shape: f32[1,128], index: 10, kind: input, shape index: {}]   ;;  %s9771_s11 = inlined_call_operand.hbm [shape: f32[8,8,32], index: 11, kind: output, shape index: {}]  }
   0x1   :  { %9798 = sst [smem:[#allocation26_spill]] %s9761_s1 }
   0x2   :  { %9799 = sst [smem:[#allocation27_spill]] %s9763_s3 }
   0x3   :  { %9800 = sst [smem:[#allocation28_spill]] %s9766_s6 }
   0x4   :  { %9801 = sst [smem:[#allocation29_spill]] %s9768_s8 }
   0x5   :  { %9802 = sst [smem:[#allocation30_spill]] %s9769_s9 }
   0x6   :  { %9803 = sst [smem:[#allocation31_spill]] %s9770_s10 }
   0x7   :  { %9804 = sst [smem:[#allocation32_spill]] %s9771_s11 }
   0x8   :  { %16 = vsyncpa [#allocation3], 0 }
   0x9   :  { %18 = vsyncpa [#allocation3 + $0x1], 0 }
   0xa   :  { %19 = vsyncpa [#allocation6], 0 }
   0xb   :  { %21 = vsyncpa [#allocation6 + $0x1], 0 }
   0xc   :  { %22 = vsyncpa [#allocation9], 0 }
   0xd   :  { %24 = vsyncpa [#allocation9 + $0x1], 0 }
   0xe   :  { %25 = vsyncpa [#allocation12], 0 }
   0xf   :  { %26 = vsyncpa [#allocation4], 0 }
  0x10   :  { %28 = vsyncpa [#allocation4 + $0x1], 0  ;;  %s8493_s17 = smov 0   ;;  %s8495_s18 = smov 0  }
  0x11   :  { %s8497_s19 = smov 0   ;;  %s8499_s20 = smov 0  }
  0x12 LB: > { %9805 = sst [smem:[#allocation20_spill]] %s8390_s17  ;;  %s8514_s21 = sadd.s32 4294967295, %s8402_s20   ;;  %s8402_s20 = sphi %s8499_s20, %s9848_s20   ;;  %s8398_s19 = sphi %s8497_s19, %s9853_s19   ;;  %s8394_s18 = sphi %s8495_s18, %s9852_s18   ;;  %s8390_s17 = sphi %s8493_s17, %s9851_s17  }
  0x13   : > { %9806 = sst [smem:[#allocation21_spill]] %s8398_s19  ;;  %s7059_s22 = sadd.s32 4294967294, %s8402_s20  }
  0x14   : > { %s8518_s23 = sadd.s32 1, %s8402_s20   ;;  %s41_s24 = sadd.s32 1, %s8398_s19 }
  0x15   : > { %9807 = sst [smem:[#allocation22_spill]] %s8518_s23  ;;  %s38_s25 = ssub.s32 %s8402_s20, %s8518_s23 }
  0x16   : > { %p48_p0 = scmp.ne.s32.totalorder %s8398_s19, %s8394_s18  ;;  %p39_p1 = scmp.eq.s32.totalorder %s38_s25, 0 }
  0x17   : > { %p49_p2 = scmp.eq.s32.totalorder %s8402_s20, 0  ;;  %p54_p3 = scmp.ne.s32.totalorder %s8394_s18, %s8390_s17 }
  0x18   : > { %p9777_p4 = scmp.eq.s32.totalorder %s8514_s21, 0  ;;  %p308_p7 = scmp.eq.s32.totalorder %s8514_s21, 1 }
  0x19   : > { %s8530_s26 = scalar_select %p39_p1, %s8398_s19, %s41_s24  }
  0x1a   : > { %p8532_p5 = por %p49_p2, %p48_p0  ;;  %p8538_p6 = por %p9777_p4, %p54_p3 }
  0x1b   : > { %9808 = sst [smem:[#allocation23_spill]] %s8530_s26  ;;  %p314_p8 = scmp.eq.s32.totalorder %s7059_s22, 1 }
  0x1c   : > { %s9809_s27 = scalar_select %p8532_p5, 1, 0 }
  0x1d   : > { %s9810_s28 = scalar_select %p8538_p6, 1, 0 }
  0x1e   : > { %p7060_p9 = scmp.ge.s32.totalorder %s8402_s20, 1  ;;  %p321_p10 = scmp.lt.s32.totalorder %s8402_s20, 3 }
  0x1f   : > { %p8545_p11 = por %p308_p7, %p48_p0  ;;  %p8549_p12 = por %p314_p8, %p54_p3 }
  0x20   : > { %p8553_p13 = pnand %p7060_p9, %p321_p10  ;;  %s8404_s13 = smov [#allocation10]  }
  0x21   : > { %s9811_s29 = scalar_select %p8545_p11, 1, 0 }
  0x22   : > { %s9813_s30 = scalar_select %p8549_p12, 1, 0 }
  0x23   : > { %9812 = sst [smem:[#allocation24_spill]] %s9811_s29  ;;  %p7818_p1 = pneg %p8553_p13 }
  0x24   : > { %9814 = sst [smem:[#allocation25_spill]] %s9813_s30  ;;  %s336_s14 = sshll.u32 %s8404_s13, 4  ;;  %s337_s14 = int_to_ptr.vmem [resolvable:$true] %s336_s14 }
  0x25   : > { %s9815_s12 = scalar_select %p8553_p13, 1, 0 }
  0x26   : > { %p8561_p2 = pnand %p7818_p1, %p9777_p4  ;;  %s8568_s16 = sand.u32 1, %s8398_s19  }
  0x27   : > { %s8571_s22 = sshll.u32 %s8568_s16, 4  ;;  %s9817_s6 = sld [smem:[#allocation28_spill]] }
  0x28   : > { %s9816_s15 = scalar_select %p8561_p2, 1, 0 }
  0x29   : > { %p9789_p8 = pneg %p8561_p2 }
  0x2d   : > { %s8144_s26 = scalar_lea.hbm %s9817_s6, 256 }
  0x2e   : > { %p8145_p7 = scmp.ne.s32.totalorder %s9817_s6, %s8144_s26  ;;  %p8151_p1 = scmp.lt.u32.totalorder %s8144_s26, %s9817_s6 }
  0x30   : > { %p8147_p9 = pnand %p9789_p8, %p8145_p7 }
  0x32   : > { %p8148_p10 = pneg %p8147_p9 }
  0x34   : > { %p8153_p0 = pnand %p8151_p1, %p8148_p10 }
  0x36   : > { %8156 = shalt.err (!%p8153_p0)
}
  0x37   : > { %s8157_s17 = scalar_lea.vmem %s337_s14, 256  ;;  %p8165_p11 = scmp.lt.s32.totalorder %s337_s14, %s337_s14 }
  0x38   : > { %p8158_p4 = scmp.ne.s32.totalorder %s337_s14, %s8157_s17  ;;  %p8166_p6 = scmp.lt.s32.totalorder %s8157_s17, %s8157_s17 }
  0x3a   : > { %p8160_p3 = pnand %p8158_p4, %p9789_p8  ;;  %p8167_p13 = por %p8166_p6, %p8165_p11 }
  0x3c   : > { %p8161_p12 = pneg %p8160_p3 }
  0x3e   : > { %p8168_p5 = pnand %p8167_p13, %p8161_p12 }
  0x40   : > { %8171 = shalt.err (!%p8168_p5)
}
  0x41   : > { %s9784_s23 = smov 64   ;;  %s9786_s19 = smov 4  }
  0x42   : > { %7821 = dma.hbm_to_vmem [thread:$0]  (!%p8561_p2), %s9817_s6, 256, %s337_s14, [#allocation9], %s9784_s23, %s9784_s23, %s9786_s19  }
  0x43   : > { %s8599_s17 = sshll.u32 %s8402_s20, 8  ;;  %p9818_p4 = scmp.ne.s32.totalorder %s9809_s27, 0 }
  0x44   : > { %p9819_p5 = scmp.lt.s32.totalorder %s8402_s20, 2  ;;  %s9788_s25 = sand.u32 1, %s8402_s20  }
  0x45   : > { %s9821_s1 = sld [smem:[#allocation26_spill]]  ;;  %s397_s14 = scalar_lea.vmem [#allocation5], %s8571_s22 }
  0x46   : > { %p8605_p6 = pnand %p9819_p5, %p9818_p4  ;;  %s404_s26 = sshll.u32 %s397_s14, 4  ;;  %s8617_s26 = int_to_ptr.vmem [resolvable:$true] %s404_s26 }
  0x47   : > { %s8621_s27 = scalar_lea.sflag [#allocation6], %s9788_s25 }
  0x48   : > { %s9820_s24 = scalar_select %p8605_p6, 1, 0 }
  0x49   : > { %p8627_p12 = pneg %p8605_p6 }
  0x4b   : > { %s8614_s29 = scalar_lea.hbm %s9821_s1, %s8599_s17  ;;  %s8177_s14 = scalar_lea.hbm %s9821_s1, 512 }
  0x4c   : > { %s8172_s30 = scalar_lea.hbm %s8614_s29, 256  ;;  %p8178_p3 = scmp.lt.u32.totalorder %s8614_s29, %s9821_s1 }
  0x4d   : > { %p8173_p11 = scmp.ne.s32.totalorder %s8614_s29, %s8172_s30  ;;  %p8179_p7 = scmp.lt.u32.totalorder %s8177_s14, %s8172_s30 }
  0x4e   : > { %s9822_s23 = scalar_select %p8627_p12, 1, 0 }
  0x4f   : > { %p8175_p13 = pnand %p8627_p12, %p8173_p11  ;;  %p8180_p9 = por %p8179_p7, %p8178_p3 }
  0x50   : > { %p8181_p10 = scmp.lt.u32.totalorder %s8172_s30, %s8614_s29 }
  0x51   : > { %p8176_p0 = pneg %p8175_p13 }
  0x52   : > { %p8182_p1 = por %p8181_p10, %p8180_p9 }
  0x54   : > { %p8183_p4 = pnand %p8182_p1, %p8176_p0 }
  0x56   : > { %8186 = shalt.err (!%p8183_p4)
}
  0x57   : > { %s8187_s25 = scalar_lea.vmem %s8617_s26, 256  ;;  %s8407_s11 = smov [#allocation5]  }
  0x58   : > { %p8188_p5 = scmp.ne.s32.totalorder %s8617_s26, %s8187_s25  ;;  %s8192_s13 = sshll.u32 %s8407_s11, 4  ;;  %s8193_s13 = int_to_ptr.vmem [resolvable:$false] %s8192_s13 }
  0x59   : > { %s8194_s6 = scalar_lea.vmem %s8193_s13, 512  ;;  %p8195_p8 = scmp.lt.s32.totalorder %s8617_s26, %s8193_s13 }
  0x5a   : > { %p8190_p11 = pnand %p8188_p5, %p8627_p12  ;;  %p8196_p2 = scmp.lt.s32.totalorder %s8194_s6, %s8187_s25 }
  0x5c   : > { %p8191_p13 = pneg %p8190_p11  ;;  %p8197_p3 = por %p8196_p2, %p8195_p8 }
  0x5e   : > { %p8198_p7 = pnand %p8197_p3, %p8191_p13 }
  0x60   : > { %8201 = shalt.err (!%p8198_p7)
}
  0x61   : > { %s9823_s19 = smov 4   ;;  %s9824_s30 = smov 64  }
  0x62   : > { %7831 = dma.hbm_to_vmem [thread:$0]  (!%p8605_p6), %s8614_s29, 256, %s8617_s26, %s8621_s27, %s9824_s30, %s9824_s30, %s9823_s19  }
  0x63   : > { %s8408_s14 = smov [#allocation11]   ;;  %s8658_s25 = scalar_lea.hbm %s9760_s0, %s8599_s17 }
  0x64   : > { %s349_s11 = sshll.u32 %s8408_s14, 4  ;;  %s8202_s8 = scalar_lea.hbm %s9767_s7, 256  ;;  %s350_s11 = int_to_ptr.vmem [resolvable:$true] %s349_s11 }
  0x65   : > { %p8203_p2 = scmp.ne.s32.totalorder %s9767_s7, %s8202_s8  ;;  %p9825_p8 = scmp.ne.s32.totalorder %s9816_s15, 0 }
  0x66   : > { %p8209_p1 = scmp.lt.u32.totalorder %s8202_s8, %s9767_s7 }
  0x67   : > { %p9826_p0 = pneg %p9825_p8 }
  0x69   : > { %p8205_p9 = pnand %p8203_p2, %p9826_p0 }
  0x6b   : > { %p8206_p10 = pneg %p8205_p9 }
  0x6d   : > { %p8211_p4 = pnand %p8209_p1, %p8206_p10 }
  0x6f   : > { %8214 = shalt.err (!%p8211_p4)
}
  0x70   : > { %s8215_s1 = scalar_lea.vmem %s350_s11, 256  ;;  %p9827_p11 = pmov %p9826_p0 }
  0x71   : > { %p8216_p5 = scmp.ne.s32.totalorder %s350_s11, %s8215_s1  ;;  %p8223_p7 = scmp.lt.s32.totalorder %s350_s11, %s350_s11 }
  0x72   : > { %p8224_p6 = scmp.lt.s32.totalorder %s8215_s1, %s8215_s1 }
  0x73   : > { %p8218_p13 = pnand %p8216_p5, %p9827_p11 }
  0x74   : > { %p8225_p12 = por %p8224_p6, %p8223_p7 }
  0x75   : > { %p8219_p3 = pneg %p8218_p13 }
  0x77   : > { %p8226_p0 = pnand %p8225_p12, %p8219_p3 }
  0x79   : > { %8229 = shalt.err (!%p8226_p0)
}
  0x7a   : > { %7824 = dma.hbm_to_vmem [thread:$0]  (!%p9825_p8), %s9767_s7, 256, %s350_s11, [#allocation12], %s9824_s30, %s9824_s30, %s9823_s19  }
  0x7b   : > { %s376_s9 = scalar_lea.vmem [#allocation2], %s8571_s22  ;;  %s8690_s13 = scalar_lea.hbm %s9762_s2, %s8599_s17 }
  0x7c   : > { %s383_s10 = sshll.u32 %s376_s9, 4  ;;  %s373_s6 = scalar_lea.sflag [#allocation3], %s8568_s16  ;;  %s8684_s10 = int_to_ptr.vmem [resolvable:$true] %s383_s10 }
  0x7d   : > { %s8230_s29 = scalar_lea.hbm %s8658_s25, 256  ;;  %p9828_p12 = scmp.ne.s32.totalorder %s9822_s23, 0 }
  0x7e   : > { %p8231_p6 = scmp.ne.s32.totalorder %s8658_s25, %s8230_s29  ;;  %s8235_s3 = scalar_lea.hbm %s9760_s0, 512 }
  0x7f   : > { %p8236_p8 = scmp.lt.u32.totalorder %s8658_s25, %s9760_s0  ;;  %p8237_p10 = scmp.lt.u32.totalorder %s8235_s3, %s8230_s29 }
  0x80   : > { %p8233_p2 = pnand %p8231_p6, %p9828_p12  ;;  %p8239_p4 = scmp.lt.u32.totalorder %s8230_s29, %s8658_s25 }
  0x81   : > { %p8238_p1 = por %p8237_p10, %p8236_p8 }
  0x82   : > { %p8234_p9 = pneg %p8233_p2 }
  0x83   : > { %p8240_p5 = por %p8239_p4, %p8238_p1 }
  0x85   : > { %p8241_p11 = pnand %p8240_p5, %p8234_p9 }
  0x87   : > { %8244 = shalt.err (!%p8241_p11)
}
  0x88   : > { %s8245_s17 = scalar_lea.vmem %s8684_s10, 256  ;;  %s8409_s9 = smov [#allocation2]  }
  0x89   : > { %p8246_p13 = scmp.ne.s32.totalorder %s8684_s10, %s8245_s17  ;;  %s8250_s15 = sshll.u32 %s8409_s9, 4  ;;  %s8251_s15 = int_to_ptr.vmem [resolvable:$false] %s8250_s15 }
  0x8a   : > { %s8252_s14 = scalar_lea.vmem %s8251_s15, 512  ;;  %p8253_p0 = scmp.lt.s32.totalorder %s8684_s10, %s8251_s15 }
  0x8b   : > { %p8248_p3 = pnand %p8246_p13, %p9828_p12  ;;  %p8254_p6 = scmp.lt.s32.totalorder %s8252_s14, %s8245_s17 }
  0x8d   : > { %p8249_p7 = pneg %p8248_p3  ;;  %p8255_p2 = por %p8254_p6, %p8253_p0 }
  0x8f   : > { %p8256_p8 = pnand %p8255_p2, %p8249_p7 }
  0x91   : > { %8259 = shalt.err (!%p8256_p8)
}
  0x92   : > { %p9829_p9 = scmp.ne.s32.totalorder %s9820_s24, 0  ;;  %s418_s29 = scalar_lea.vmem [#allocation7], %s8571_s22 }
  0x93   : > { %s425_s26 = sshll.u32 %s418_s29, 4  ;;  %s7073_s1 = sshll.u32 %s8568_s16, 2  ;;  %s8721_s26 = int_to_ptr.vmem [resolvable:$true] %s425_s26 }
  0x94   : > { %7828 = dma.hbm_to_vmem [thread:$0]  (!%p9829_p9), %s8658_s25, 256, %s8684_s10, %s373_s6, %s9824_s30, %s9824_s30, %s9823_s19  }
  0x95   : > { %s8260_s3 = scalar_lea.hbm %s8690_s13, 256  ;;  %s8265_s17 = scalar_lea.hbm %s9762_s2, 512 }
  0x96   : > { %p8261_p10 = scmp.ne.s32.totalorder %s8690_s13, %s8260_s3  ;;  %p8266_p5 = scmp.lt.u32.totalorder %s8690_s13, %s9762_s2 }
  0x97   : > { %p8267_p11 = scmp.lt.u32.totalorder %s8265_s17, %s8260_s3  ;;  %p8269_p3 = scmp.lt.u32.totalorder %s8260_s3, %s8690_s13 }
  0x98   : > { %p8263_p1 = pnand %p8261_p10, %p9828_p12 }
  0x99   : > { %p8268_p13 = por %p8267_p11, %p8266_p5 }
  0x9a   : > { %p8264_p4 = pneg %p8263_p1 }
  0x9b   : > { %p8270_p7 = por %p8269_p3, %p8268_p13 }
  0x9d   : > { %p8271_p0 = pnand %p8270_p7, %p8264_p4 }
  0x9f   : > { %8274 = shalt.err (!%p8271_p0)
}
  0xa0   : > { %s8275_s22 = scalar_lea.vmem %s8721_s26, 256  ;;  %s8410_s25 = smov [#allocation7]  }
  0xa1   : > { %p8276_p6 = scmp.ne.s32.totalorder %s8721_s26, %s8275_s22  ;;  %s8280_s10 = sshll.u32 %s8410_s25, 4  ;;  %s8281_s10 = int_to_ptr.vmem [resolvable:$false] %s8280_s10 }
  0xa2   : > { %s8282_s6 = scalar_lea.vmem %s8281_s10, 512  ;;  %p8283_p10 = scmp.lt.s32.totalorder %s8721_s26, %s8281_s10 }
  0xa3   : > { %p8278_p2 = pnand %p8276_p6, %p9828_p12  ;;  %p8284_p1 = scmp.lt.s32.totalorder %s8282_s6, %s8275_s22 }
  0xa5   : > { %p8279_p8 = pneg %p8278_p2  ;;  %p8285_p5 = por %p8284_p1, %p8283_p10 }
  0xa7   : > { %p8286_p11 = pnand %p8285_p5, %p8279_p8 }
  0xa9   : > { %8289 = shalt.err (!%p8286_p11)
}
  0xaa   : > { %7834 = dma.hbm_to_vmem [thread:$0]  (!%p9829_p9), %s8690_s13, 256, %s8721_s26, %s8621_s27, %s9824_s30, %s9824_s30, %s9823_s19  }
  0xab   : > { %s7242_s14 = sshll.u32 %s8402_s20, 6  ;;  %s448_s29 = scalar_lea.vmem [#allocation8], %s7073_s1 }
  0xac   : > { %s455_s3 = sshll.u32 %s448_s29, 4  ;;  %s8754_s17 = scalar_lea.hbm %s9764_s4, %s7242_s14  ;;  %s8756_s3 = int_to_ptr.vmem [resolvable:$true] %s455_s3 }
  0xad   : > { %s9830_s9 = sand.u32 1, %s8402_s20   ;;  %s8290_s22 = scalar_lea.hbm %s8754_s17, 64 }
  0xae   : > { %s8760_s15 = scalar_lea.sflag [#allocation9], %s9830_s9  ;;  %p8291_p4 = scmp.ne.s32.totalorder %s8754_s17, %s8290_s22 }
  0xaf   : > { %s8295_s19 = scalar_lea.hbm %s9764_s4, 128  ;;  %p8296_p7 = scmp.lt.u32.totalorder %s8754_s17, %s9764_s4 }
  0xb0   : > { %p8293_p13 = pnand %p8291_p4, %p9828_p12  ;;  %p8297_p0 = scmp.lt.u32.totalorder %s8295_s19, %s8290_s22 }
  0xb1   : > { %p8299_p2 = scmp.lt.u32.totalorder %s8290_s22, %s8754_s17 }
  0xb2   : > { %p8294_p3 = pneg %p8293_p13  ;;  %p8298_p6 = por %p8297_p0, %p8296_p7 }
  0xb4   : > { %p8300_p8 = por %p8299_p2, %p8298_p6 }
  0xb6   : > { %p8301_p10 = pnand %p8300_p8, %p8294_p3 }
  0xb8   : > { %8304 = shalt.err (!%p8301_p10)
}
  0xb9   : > { %s8305_s26 = scalar_lea.vmem %s8756_s3, 64  ;;  %s8411_s1 = smov [#allocation8]  }
  0xba   : > { %p8306_p1 = scmp.ne.s32.totalorder %s8756_s3, %s8305_s26  ;;  %s8310_s25 = sshll.u32 %s8411_s1, 4  ;;  %s8311_s25 = int_to_ptr.vmem [resolvable:$false] %s8310_s25 }
  0xbb   : > { %s8312_s10 = scalar_lea.vmem %s8311_s25, 128  ;;  %p8313_p4 = scmp.lt.s32.totalorder %s8756_s3, %s8311_s25 }
  0xbc   : > { %p8308_p5 = pnand %p8306_p1, %p9828_p12  ;;  %p8314_p13 = scmp.lt.s32.totalorder %s8312_s10, %s8305_s26 }
  0xbe   : > { %p8309_p11 = pneg %p8308_p5  ;;  %p8315_p7 = por %p8314_p13, %p8313_p4 }
  0xc0   : > { %p8316_p0 = pnand %p8315_p7, %p8309_p11 }
  0xc2   : > { %8319 = shalt.err (!%p8316_p0)
}
  0xc3   : > { %s8412_s6 = smov 16   ;;  %s8413_s14 = smov 1  }
  0xc4   : > { %7837 = dma.hbm_to_vmem [thread:$0]  (!%p9829_p9), %s8754_s17, 64, %s8756_s3, %s8760_s15, %s8412_s6, %s8412_s6, %s8413_s14  }
  0xc5   : > { %p9831_p12 = scmp.ne.s32.totalorder %s9815_s12, 0 }
  0xc6   : > { %s8787_s23 = sand.u32 (!%p9831_p12), 1, %s8394_s18   ;;  %p9832_p3 = scmp.ne.s32.totalorder (!%p9831_p12), %s9810_s28, 0 }
  0xc7   : > { %467 = sbr.rel (%p9831_p12) target bundleno = 7755 (0x1e4b), region = 64  ;;  %s8790_s29 = sshll.u32 (!%p9831_p12), %s8787_s23, 4 }
  0xc8   : > { %s470_s11 = scalar_lea.sflag (!%p9831_p12), [#allocation3], %s8787_s23  ;;  %s8794_s8 = scalar_lea.vmem (!%p9831_p12), [#allocation2], %s8790_s29 }
  0xce   : > { %8365 = dma.done.wait (%p9832_p3), %s470_s11, 256  }
  0xcf   : > { %8367 = vsyncadd (%p9832_p3), %s470_s11, 4294967040  ;;  %s478_s12 = sand.u32 1, %s8514_s21   ;;  %s482_s3 = scalar_lea.vmem [#allocation5], %s8790_s29 }
  0xd0   : > { %s479_s24 = scalar_lea.sflag [#allocation6], %s478_s12 }
  0xd1   : > { %8369 = dma.done.wait (%p9832_p3), %s479_s24, 512  }
  0xd2   : > { %8371 = vsyncadd (%p9832_p3), %s479_s24, 4294966784  ;;  %s7080_s17 = sshll.u32 %s8787_s23, 2  ;;  %s491_s9 = scalar_lea.vmem [#allocation7], %s8790_s29 }
  0xd3   : > { %s497_s15 = scalar_lea.sflag [#allocation9], %s478_s12  ;;  %s8808_s22 = scalar_lea.vmem [#allocation8], %s7080_s17 }
  0xd4   : > { %8373 = dma.done.wait (%p9832_p3), %s497_s15, 64  }
  0xd5   : > { %8375 = vsyncadd (%p9832_p3), %s497_s15, 4294967232  ;;  %p9833_p9 = scmp.eq.s32.totalorder %s8514_s21, 0 }
  0xd7   : > { %8377 = dma.done.wait (%p9833_p9), [#allocation9], 256   ;;  %p9834_p6 = pmov %p9833_p9 }
  0xd9   : > { %8379 = vsyncadd (%p9834_p6), [#allocation9], 4294967040  ;;  %p9835_p2 = pmov %p9834_p6 }
  0xdb   : > { %8381 = dma.done.wait (%p9835_p2), [#allocation12], 256   ;;  %p9836_p8 = pmov %p9835_p2 }
  0xdc   : > { %v7964_v0 = vld [vmem:[%s9765_s5] sm:$0xff]   ;;  %v7965_v1 = vld [vmem:[%s9765_s5 + $0x8] sm:$0xff]   ;;  %vm626_vm0 = vcmask 261120   ;;  %v8414_v4 = vmov 0.0   ;;  %vm8415_vm1 = vmmov 0   ;;  %s8416_s30 = smov 96  }
  0xdd   : > { %8383 = vsyncadd (%p9836_p8), [#allocation12], 4294967040  ;;  %7408 = vmatprep.subr.bf16.mxu0 %v7964_v0  ;;  %v588_v2 = vld [vmem:[%s8794_s8] sm:$0xff]   ;;  %v590_v3 = vld [vmem:[%s8794_s8 + $0x8] sm:$0xff]   ;;  %7416 = vmatprep.subr.mxu1 %v8414_v4  ;;  %vm685_vm2 = vcmask 64512   ;;  %s7084_s13 = sshll.u32 %s8514_s21, 2 }
  0xde   : > { %7409 = vmatpush3.bf16.msra.mxu0 %v7964_v0  ;;  %7412 = vmatprep.mubr.msk.bf16.mxu0 %vm626_vm0, %v588_v2  ;;  %p571_p10 = scmp.lt.s32.totalorder %s7084_s13, 7  ;;  %s9837_s10 = sld [smem:[#allocation27_spill]]  ;;  %vm3371_vm3 = vcmask 130048   ;;  %vm3376_vm4 = vcmask 195584  }
  0xdf   : > { %7410 = vmatprep.subr.bf16.mxu0 %v7965_v1  ;;  %7418 = vmatprep.mubr.msk.f32.mxu1 %vm8415_vm1, %v8414_v4  ;;  %s8417_s14 = smov 64   ;;  %s8418_s11 = smov 88  }
  0xe0   : > { %s9855_s13 = smov (!%p571_p10, %s7084_s13), 7  ;;  %s8419_s12 = smov 120  }
  0xe1   : > { %s7085_s26 = sshll.u32 %s9855_s13, 3  ;;  %s8420_s24 = smov 56  }
  0xe2   : > { %7411 = vmatpush3.bf16.msra.mxu0 %v7965_v1  ;;  %s8421_s17 = smov 80   ;;  %s8422_s15 = smov 112  }
  0xe3   : > { %7431 = vmatprep.subr.mxu0 %v8414_v4  ;;  %s8423_s16 = smov 48   ;;  %s8424_s27 = smov 72  }
  0xe4   : > { %s574_s6 = scalar_lea.vmem %s9837_s10, %s7085_s26  ;;  %s8425_s28 = smov 104  }
  0xe5   : > { %7413 = vmatmul.mubr.msk.bf16.vlgmr.msra.gmra.mrb[0].mxu0 %vm626_vm0, %v590_v3  ;;  %v8882_v13 = vld [vmem:[%s574_s6] sm:$0xff]  ;;  %v8885_v17 = vld [vmem:[%s574_s6 + $0x8] sm:$0xff]  ;;  %v8889_v24 = vld [vmem:[%s574_s6 + $0x10] sm:$0xff]  ;;  %s8426_s19 = smov 40   ;;  %s8427_s13 = smov 8  }
  0xe6   : > { %7433 = vmatprep.mubr.msk.f32.mxu0 %vm8415_vm1, %v8414_v4  ;;  %v8892_v26 = vld [vmem:[%s574_s6 + $0x18] sm:$0xff]  ;;  %s8428_s25 = smov 16   ;;  %s8429_s10 = smov 32  }
  0xe7   : > { %s9838_s26 = sld [smem:[#allocation30_spill]]  ;;  %s9842_s29 = sld [smem:[#allocation32_spill]] }
 0x1b8   : > { %v8838_v5 = vpop.f32.mrb[0].mxu0 }
 0x1b9   : > { %838 = vrot.lane.b32.xlu1 %v8838_v5, %s8416_s30  ;;  %v8842_v6 = vpop.f32.mrb[1].mxu0 }
 0x1ba   : > { %683 = vrot.lane.b32.xlu0 %v8842_v6, %s8416_s30  ;;  %v8846_v7 = vpop.f32.mrb[2].mxu0 }
 0x1bb   : > { %v8848_v8 = vpop.f32.mrb[3].mxu0 }
 0x1bd   : > { %915 = vrot.lane.b32.xlu1 %v8846_v7, %s8416_s30 }
 0x1be   : > { %761 = vrot.lane.b32.xlu0 %v8848_v8, %s8416_s30 }
 0x22b   : > { %v839_v9 = vpop.permute.xlu1 %838 }
 0x22c   : > { %v684_v10 = vpop.permute.xlu0 %683 }
 0x22d   : > { %7417 = vmatpush3.xpose.msk.msra.mxu1 %vm685_vm2, %v684_v10 }
 0x22e   : > { %7421 = vmatprep.subr.mxu1 %v8414_v4 }
 0x22f   : > { %v916_v11 = vpop.permute.xlu1 %915 }
 0x230   : > { %7419 = vmatmul.mubr.msk.f32.vlgmr.msra.gmra.mrb[0].mxu1 %vm685_vm2, %v8842_v6  ;;  %7432 = vmatpush3.xpose.msk.msra.mxu0 %vm685_vm2, %v916_v11  ;;  %v762_v12 = vpop.permute.xlu0 %761 }
 0x231   : > { %7422 = vmatpush3.xpose.msk.msra.mxu1 %vm685_vm2, %v762_v12  ;;  %7423 = vmatprep.mubr.msk.f32.mxu1 %vm8415_vm1, %v8414_v4 }
 0x232   : > { %7426 = vmatprep.subr.mxu1 %v8414_v4  ;;  %7441 = vmatprep.subr.mxu0 %v8414_v4 }
 0x233   : > { %7434 = vmatmul.mubr.msk.f32.vlgmr.msra.gmra.mrb[4].mxu0 %vm685_vm2, %v8846_v7 }
 0x234   : > { %7424 = vmatmul.mubr.msk.f32.vlgmr.msra.gmra.mrb[2].mxu1 %vm685_vm2, %v8848_v8  ;;  %7443 = vmatprep.mubr.msk.f32.mxu0 %vm8415_vm1, %v8414_v4 }
 0x235   : > { %7427 = vmatpush3.xpose.msk.msra.mxu1 %vm685_vm2, %v839_v9  ;;  %7428 = vmatprep.mubr.msk.f32.mxu1 %vm8415_vm1, %v8414_v4 }
 0x236   : > { %7436 = vmatprep.subr.mxu1 %v8414_v4 }
 0x238   : > { %7429 = vmatmul.mubr.msk.f32.vlgmr.msra.gmra.mrb[4].mxu1 %vm685_vm2, %v8838_v5 }
 0x239   : > { %7438 = vmatprep.mubr.msk.f32.mxu1 %vm8415_vm1, %v8414_v4 }
 0x303   : > { %v756_v14 = vpop.f32.mrb[0].mxu1 }
 0x304   : > { %v757_v15 = vadd.f32 %v756_v14, %v8882_v13  ;;  %v7420_v16 = vpop.f32.mrb[1].mxu1 }
 0x306   : > { %v987_v18 = vpop.f32.mrb[4].mxu0  ;;  %v991_v19 = vsel %vm685_vm2, %v757_v15, -inf }
 0x307   : > { %992 = vmax.xlane.f32.xlu0 %v991_v19  ;;  %v833_v20 = vpop.f32.mrb[2].mxu1  ;;  %v7435_v21 = vpop.f32.mrb[5].mxu0  ;;  %v988_v30 = vadd.f32 %v987_v18, %v8892_v26 }
 0x308   : > { %v834_v22 = vadd.f32 %v833_v20, %v8885_v17  ;;  %v7425_v23 = vpop.f32.mrb[3].mxu1 }
 0x309   : > { %v1000_v32 = vsel %vm685_vm2, %v988_v30, -inf }
 0x30a   : > { %v994_v25 = vsel %vm685_vm2, %v834_v22, -inf }
 0x30b   : > { %995 = vmax.xlane.f32.xlu1 %v994_v25  ;;  %v910_v27 = vpop.f32.mrb[4].mxu1 }
 0x30c   : > { %v911_v28 = vadd.f32 %v910_v27, %v8889_v24  ;;  %v7430_v29 = vpop.f32.mrb[5].mxu1 }
 0x30e   : > { %v997_v31 = vsel %vm685_vm2, %v911_v28, -inf }
 0x30f   : > { %998 = vmax.xlane.f32.xlu0 %v997_v31 }
 0x313   : > { %1001 = vmax.xlane.f32.xlu0 %v1000_v32 }
 0x31c   : > { %1035 = vrot.lane.b32.xlu1 %v8842_v6, %s8417_s14 }
 0x320   : > { %1187 = vrot.lane.b32.xlu1 %v8838_v5, %s8417_s14 }
 0x324   : > { %1263 = vrot.lane.b32.xlu1 %v8846_v7, %s8417_s14 }
 0x329   : > { %1111 = vrot.lane.b32.xlu0 %v8848_v8, %s8417_s14 }
 0x394   : > { %v993_v33 = vpop.xlane.xlu0 %992 }
 0x395   : > { %v1003_v34 = vsub.f32 %v757_v15, %v993_v33 }
 0x397   : > { %v1007_v35 = vmul.f32 1.442695, %v1003_v34 }
 0x398   : > { %v996_v36 = vpop.xlane.xlu1 %995 }
 0x399   : > { %7990 = vpow2.f32 %v1007_v35  ;;  %v1004_v39 = vsub.f32 %v834_v22, %v996_v36 }
 0x39b   : > { %v1009_v43 = vmul.f32 1.442695, %v1004_v39 }
 0x39c   : > { %v1036_v37 = vpop.permute.xlu1 %1035  ;;  %v999_v38 = vpop.xlane.xlu0 %998 }
 0x39d   : > { %7437 = vmatpush3.msra.mxu1 %v1036_v37  ;;  %v1005_v51 = vsub.f32 %v911_v28, %v999_v38 }
 0x39e   : > { %7446 = vmatprep.subr.mxu1 %v8414_v4 }
 0x39f   : > { %v1011_v52 = vmul.f32 1.442695, %v1005_v51 }
 0x3a0   : > { %v1002_v40 = vpop.xlane.xlu0 %1001  ;;  %v1188_v55 = vpop.permute.xlu1 %1187 }
 0x3a1   : > { %v1006_v41 = vsub.f32 %v988_v30, %v1002_v40 }
 0x3a3   : > { %v7991_v42 = vpop.eup %7990  ;;  %v1013_v44 = vmul.f32 1.442695, %v1006_v41 }
 0x3a4   : > { %v1112_v45 = vpop.permute.xlu0 %1111  ;;  %v1015_v46 = vsel %vm685_vm2, %v7991_v42, 0.0  ;;  %v1264_v56 = vpop.permute.xlu1 %1263 }
 0x3a5   : > { %7992 = vpow2.f32 %v1013_v44  ;;  %1016 = vadd.xlane.f32.xlu1 %v1015_v46  ;;  %7442 = vmatpush3.msra.mxu0 %v1112_v45 }
 0x3a6   : > { %7451 = vmatprep.subr.mxu0 %v8414_v4  ;;  %7994 = vpow2.f32 %v1009_v43 }
 0x3a7   : > { %7996 = vpow2.f32 %v1011_v52 }
 0x3af   : > { %v7993_v47 = vpop.eup %7992 }
 0x3b0   : > { %v1024_v48 = vsel %vm685_vm2, %v7993_v47, 0.0  ;;  %v7995_v49 = vpop.eup %7994 }
 0x3b1   : > { %1025 = vadd.xlane.f32.xlu0 %v1024_v48  ;;  %v1018_v50 = vsel %vm685_vm2, %v7995_v49, 0.0  ;;  %v7997_v53 = vpop.eup %7996 }
 0x3b2   : > { %v1021_v54 = vsel %vm685_vm2, %v7997_v53, 0.0 }
 0x3b5   : > { %1019 = vadd.xlane.f32.xlu0 %v1018_v50 }
 0x3b6   : > { %1419 = vrot.lane.b32.xlu1 %v8848_v8, %s8418_s11 }
 0x3ba   : > { %1417 = vrot.lane.b32.xlu1 %v8848_v8, %s8419_s12 }
 0x3cb   : > { %1341 = vrot.lane.b32.xlu0 %v8842_v6, %s8418_s11 }
 0x3cf   : > { %1339 = vrot.lane.b32.xlu0 %v8842_v6, %s8419_s12 }
 0x3d3   : > { %1497 = vrot.lane.b32.xlu0 %v8838_v5, %s8418_s11 }
 0x3d7   : > { %1495 = vrot.lane.b32.xlu0 %v8838_v5, %s8419_s12 }
 0x3de   : > { %1022 = vadd.xlane.f32.xlu1 %v1021_v54 }
 0x3ef   : > { %1575 = vrot.lane.b32.xlu1 %v8846_v7, %s8418_s11 }
 0x3f3   : > { %1573 = vrot.lane.b32.xlu1 %v8846_v7, %s8419_s12 }
 0x432   : > { %v1017_v57 = vpop.xlane.xlu1 %1016 }
 0x433   : > { %7998 = vrcp.f32 %v1017_v57 }
 0x436   : > { %v1420_v2 = vpop.permute.xlu1 %1419 }
 0x43a   : > { %v1418_v3 = vpop.permute.xlu1 %1417 }
 0x43d   : > { %v7999_v58 = vpop.eup %7998 }
 0x43e   : > { %v1026_v59 = vpop.xlane.xlu0 %1025  ;;  %v1031_v60 = vmul.f32 %v7999_v58, %v7991_v42 }
 0x440   : > { %7439 = vmatmul.mubr.msk.f32.vlgmr.msra.gmra.mrb[6].mxu1 %vm685_vm2, %v1031_v60 }
 0x441   : > { %7447 = vmatpush3.msra.mxu1 %v1188_v55  ;;  %7448 = vmatprep.mubr.msk.f32.mxu1 %vm8415_vm1, %v8414_v4 }
 0x442   : > { %v1020_v61 = vpop.xlane.xlu0 %1019  ;;  %7456 = vmatprep.subr.mxu1 %v8414_v4 }
 0x443   : > { %8000 = vrcp.f32 %v1020_v61 }
 0x444   : > { %8002 = vrcp.f32 %v1026_v59 }
 0x446   : > { %v1342_v10 = vpop.permute.xlu0 %1341 }
 0x44a   : > { %v1340_v14 = vpop.permute.xlu0 %1339 }
 0x44d   : > { %v8001_v62 = vpop.eup %8000 }
 0x44e   : > { %v1032_v63 = vmul.f32 %v8001_v62, %v7995_v49  ;;  %v8003_v0 = vpop.eup %8002  ;;  %v1498_v18 = vpop.permute.xlu0 %1497 }
 0x44f   : > { %v1034_v1 = vmul.f32 %v8003_v0, %v7993_v47 }
 0x450   : > { %7444 = vmatmul.mubr.msk.f32.vlgmr.msra.gmra.mrb[6].mxu0 %vm685_vm2, %v1032_v63 }
 0x451   : > { %7452 = vmatpush3.msra.mxu0 %v1264_v56  ;;  %7453 = vmatprep.mubr.msk.f32.mxu0 %vm8415_vm1, %v8414_v4 }
 0x452   : > { %7461 = vmatprep.subr.mxu0 %v8414_v4  ;;  %v1496_v19 = vpop.permute.xlu0 %1495 }
 0x454   : > { %7454 = vmatmul.mubr.msk.f32.vlgmr.msra.gmra.mrb[8].mxu0 %vm685_vm2, %v1034_v1 }
 0x455   : > { %7463 = vmatprep.mubr.msk.f32.mxu0 %vm8415_vm1, %v8414_v4 }
 0x458   : > { %7462 = vmatpush3.xpose.msk.msra.mxu0 %vm685_vm2, %v1420_v2 }
 0x459   : > { %7471 = vmatprep.subr.mxu0 %v8414_v4 }
 0x45b   : > { %7464 = vmatmul.mubr.msk.f32.vlgmr.msra.gmra.mrb[10].mxu0 %vm685_vm2, %v1418_v3 }
 0x45c   : > { %7473 = vmatprep.mubr.msk.f32.mxu0 %vm8415_vm1, %v8414_v4 }
 0x46b   : > { %v1023_v9 = vpop.xlane.xlu1 %1022 }
 0x46c   : > { %8004 = vrcp.f32 %v1023_v9 }
 0x46f   : > { %v1576_v11 = vpop.permute.xlu1 %1575 }
 0x470   : > { %7472 = vmatpush3.xpose.msk.msra.mxu0 %vm685_vm2, %v1576_v11 }
 0x471   : > { %7481 = vmatprep.subr.mxu0 %v8414_v4 }
 0x473   : > { %v1574_v12 = vpop.permute.xlu1 %1573 }
 0x474   : > { %7474 = vmatmul.mubr.msk.f32.vlgmr.msra.gmra.mrb[12].mxu0 %vm685_vm2, %v1574_v12 }
 0x475   : > { %7483 = vmatprep.mubr.msk.f32.mxu0 %vm8415_vm1, %v8414_v4 }
 0x476   : > { %v8005_v15 = vpop.eup %8004 }
 0x477   : > { %v1033_v16 = vmul.f32 %v8005_v15, %v7997_v53 }
 0x479   : > { %7449 = vmatmul.mubr.msk.f32.vlgmr.msra.gmra.mrb[8].mxu1 %vm685_vm2, %v1033_v16 }
 0x47a   : > { %7457 = vmatpush3.xpose.msk.msra.mxu1 %vm685_vm2, %v1342_v10  ;;  %7458 = vmatprep.mubr.msk.f32.mxu1 %vm8415_vm1, %v8414_v4 }
 0x47b   : > { %7466 = vmatprep.subr.mxu1 %v8414_v4 }
 0x47d   : > { %7459 = vmatmul.mubr.msk.f32.vlgmr.msra.gmra.mrb[10].mxu1 %vm685_vm2, %v1340_v14 }
 0x47e   : > { %7467 = vmatpush3.xpose.msk.msra.mxu1 %vm685_vm2, %v1498_v18  ;;  %7468 = vmatprep.mubr.msk.f32.mxu1 %vm8415_vm1, %v8414_v4 }
 0x47f   : > { %7476 = vmatprep.subr.mxu1 %v8414_v4 }
 0x481   : > { %7469 = vmatmul.mubr.msk.f32.vlgmr.msra.gmra.mrb[12].mxu1 %vm685_vm2, %v1496_v19 }
 0x482   : > { %7478 = vmatprep.mubr.msk.f32.mxu1 %vm8415_vm1, %v8414_v4 }
 0x513   : > { %v8958_v20 = vpop.f32.mrb[6].mxu1 }
 0x514   : > { %v7440_v21 = vpop.f32.mrb[7].mxu1 }
 0x523   : > { %v8960_v22 = vpop.f32.mrb[6].mxu0 }
 0x524   : > { %v7445_v23 = vpop.f32.mrb[7].mxu0 }
 0x527   : > { %v8962_v25 = vpop.f32.mrb[8].mxu0 }
 0x528   : > { %v7455_v27 = vpop.f32.mrb[9].mxu0 }
 0x52e   : > { %v1491_v28 = vpop.f32.mrb[10].mxu0 }
 0x52f   : > { %v1492_v29 = vadd.f32 %v1491_v28, %v8885_v17  ;;  %v7465_v30 = vpop.f32.mrb[11].mxu0 }
 0x531   : > { %v1654_v31 = vsel %vm685_vm2, %v1492_v29, -inf }
 0x532   : > { %1655 = vmax.xlane.f32.xlu1 %v1654_v31 }
 0x543   : > { %1695 = vrot.lane.b32.xlu1 %v8842_v6, %s8420_s24 }
 0x547   : > { %1847 = vrot.lane.b32.xlu1 %v8838_v5, %s8420_s24  ;;  %v1647_v32 = vpop.f32.mrb[12].mxu0 }
 0x548   : > { %v7475_v33 = vpop.f32.mrb[13].mxu0  ;;  %v1648_v43 = vadd.f32 %v1647_v32, %v8892_v26 }
 0x54a   : > { %v1660_v45 = vsel %vm685_vm2, %v1648_v43, -inf }
 0x54b   : > { %1923 = vrot.lane.b32.xlu1 %v8846_v7, %s8420_s24 }
 0x54c   : > { %v8969_v34 = vpop.f32.mrb[8].mxu1 }
 0x54d   : > { %v7450_v35 = vpop.f32.mrb[9].mxu1 }
 0x54f   : > { %2079 = vrot.lane.b32.xlu1 %v8848_v8, %s8421_s17 }
 0x550   : > { %v1413_v36 = vpop.f32.mrb[10].mxu1 }
 0x551   : > { %v1414_v37 = vadd.f32 %v1413_v36, %v8882_v13  ;;  %v7460_v38 = vpop.f32.mrb[11].mxu1 }
 0x553   : > { %v1651_v39 = vsel %vm685_vm2, %v1414_v37, -inf }
 0x554   : > { %1652 = vmax.xlane.f32.xlu0 %v1651_v39  ;;  %v1569_v40 = vpop.f32.mrb[12].mxu1 }
 0x555   : > { %v1570_v41 = vadd.f32 %v1569_v40, %v8889_v24  ;;  %v7470_v42 = vpop.f32.mrb[13].mxu1 }
 0x557   : > { %v1657_v44 = vsel %vm685_vm2, %v1570_v41, -inf }
 0x558   : > { %1658 = vmax.xlane.f32.xlu0 %v1657_v44 }
 0x55c   : > { %1661 = vmax.xlane.f32.xlu0 %v1660_v45 }
 0x572   : > { %1771 = vrot.lane.b32.xlu0 %v8848_v8, %s8420_s24  ;;  %s8430_s24 = smov 24  }
 0x576   : > { %2001 = vrot.lane.b32.xlu0 %v8842_v6, %s8421_s17 }
 0x5bf   : > { %v1656_v46 = vpop.xlane.xlu1 %1655 }
 0x5c0   : > { %v1664_v47 = vsub.f32 %v1492_v29, %v1656_v46 }
 0x5c2   : > { %v1669_v48 = vmul.f32 1.442695, %v1664_v47 }
 0x5c3   : > { %v1696_v49 = vpop.permute.xlu1 %1695 }
 0x5c4   : > { %8006 = vpow2.f32 %v1669_v48  ;;  %7477 = vmatpush3.msra.mxu1 %v1696_v49 }
 0x5c5   : > { %7486 = vmatprep.subr.mxu1 %v8414_v4 }
 0x5c7   : > { %v1848_v11 = vpop.permute.xlu1 %1847 }
 0x5cb   : > { %v1924_v15 = vpop.permute.xlu1 %1923 }
 0x5ce   : > { %v8007_v50 = vpop.eup %8006 }
 0x5cf   : > { %v1678_v51 = vsel %vm685_vm2, %v8007_v50, 0.0  ;;  %v2080_v16 = vpop.permute.xlu1 %2079 }
 0x5d0   : > { %1679 = vadd.xlane.f32.xlu0 %v1678_v51 }
 0x5e1   : > { %v1653_v52 = vpop.xlane.xlu0 %1652 }
 0x5e2   : > { %v1663_v53 = vsub.f32 %v1414_v37, %v1653_v52 }
 0x5e4   : > { %v1667_v54 = vmul.f32 1.442695, %v1663_v53 }
 0x5e5   : > { %v1659_v55 = vpop.xlane.xlu0 %1658 }
 0x5e6   : > { %8008 = vpow2.f32 %v1667_v54  ;;  %v1665_v56 = vsub.f32 %v1570_v41, %v1659_v55 }
 0x5e8   : > { %v1671_v57 = vmul.f32 1.442695, %v1665_v56 }
 0x5e9   : > { %v1662_v58 = vpop.xlane.xlu0 %1661 }
 0x5ea   : > { %8010 = vpow2.f32 %v1671_v57  ;;  %v1666_v59 = vsub.f32 %v1648_v43, %v1662_v58 }
 0x5ec   : > { %v1673_v60 = vmul.f32 1.442695, %v1666_v59 }
 0x5ed   : > { %v1772_v61 = vpop.permute.xlu0 %1771 }
 0x5ee   : > { %8012 = vpow2.f32 %v1673_v60  ;;  %7482 = vmatpush3.msra.mxu0 %v1772_v61 }
 0x5ef   : > { %7491 = vmatprep.subr.mxu0 %v8414_v4 }
 0x5f0   : > { %v8009_v62 = vpop.eup %8008 }
 0x5f1   : > { %v1675_v63 = vsel %vm685_vm2, %v8009_v62, 0.0  ;;  %v2002_v9 = vpop.permute.xlu0 %2001 }
 0x5f2   : > { %1676 = vadd.xlane.f32.xlu1 %v1675_v63 }
 0x5f4   : > { %v8011_v0 = vpop.eup %8010 }
 0x5f5   : > { %v1681_v1 = vsel %vm685_vm2, %v8011_v0, 0.0 }
 0x5f6   : > { %1682 = vadd.xlane.f32.xlu1 %v1681_v1 }
 0x5f8   : > { %v8013_v2 = vpop.eup %8012 }
 0x5f9   : > { %v1684_v3 = vsel %vm685_vm2, %v8013_v2, 0.0 }
 0x5fa   : > { %1685 = vadd.xlane.f32.xlu0 %v1684_v3 }
 0x607   : > { %2077 = vrot.lane.b32.xlu1 %v8848_v8, %s8422_s15 }
 0x60b   : > { %2235 = vrot.lane.b32.xlu1 %v8846_v7, %s8421_s17 }
 0x60f   : > { %2233 = vrot.lane.b32.xlu1 %v8846_v7, %s8422_s15 }
 0x610   : > { %1999 = vrot.lane.b32.xlu0 %v8842_v6, %s8422_s15 }
 0x613   : > { %2355 = vrot.lane.b32.xlu1 %v8842_v6, %s8423_s16 }
 0x614   : > { %2157 = vrot.lane.b32.xlu0 %v8838_v5, %s8421_s17 }
 0x617   : > { %2507 = vrot.lane.b32.xlu1 %v8838_v5, %s8423_s16 }
 0x618   : > { %2155 = vrot.lane.b32.xlu0 %v8838_v5, %s8422_s15 }
 0x61b   : > { %2583 = vrot.lane.b32.xlu1 %v8846_v7, %s8423_s16 }
 0x61c   : > { %2431 = vrot.lane.b32.xlu0 %v8848_v8, %s8423_s16 }
 0x65d   : > { %v1680_v10 = vpop.xlane.xlu0 %1679 }
 0x65e   : > { %8014 = vrcp.f32 %v1680_v10 }
 0x668   : > { %v8015_v12 = vpop.eup %8014 }
 0x669   : > { %v1692_v14 = vmul.f32 %v8015_v12, %v8007_v50 }
 0x66b   : > { %7484 = vmatmul.mubr.msk.f32.vlgmr.msra.gmra.mrb[14].mxu0 %vm685_vm2, %v1692_v14 }
 0x66c   : > { %7492 = vmatpush3.msra.mxu0 %v1924_v15  ;;  %7493 = vmatprep.mubr.msk.f32.mxu0 %vm8415_vm1, %v8414_v4 }
 0x66d   : > { %7501 = vmatprep.subr.mxu0 %v8414_v4 }
 0x67f   : > { %v1677_v18 = vpop.xlane.xlu1 %1676 }
 0x680   : > { %8016 = vrcp.f32 %v1677_v18 }
 0x683   : > { %v1683_v19 = vpop.xlane.xlu1 %1682 }
 0x684   : > { %8018 = vrcp.f32 %v1683_v19 }
 0x687   : > { %v1686_v21 = vpop.xlane.xlu0 %1685  ;;  %v2078_v27 = vpop.permute.xlu1 %2077 }
 0x688   : > { %8020 = vrcp.f32 %v1686_v21 }
 0x68a   : > { %v8017_v23 = vpop.eup %8016 }
 0x68b   : > { %v2000_v28 = vpop.permute.xlu0 %1999  ;;  %v1691_v29 = vmul.f32 %v8017_v23, %v8009_v62  ;;  %v2236_v32 = vpop.permute.xlu1 %2235 }
 0x68d   : > { %7479 = vmatmul.mubr.msk.f32.vlgmr.msra.gmra.mrb[14].mxu1 %vm685_vm2, %v1691_v29 }
 0x68e   : > { %v8019_v30 = vpop.eup %8018  ;;  %7487 = vmatpush3.msra.mxu1 %v1848_v11  ;;  %7488 = vmatprep.mubr.msk.f32.mxu1 %vm8415_vm1, %v8414_v4 }
 0x68f   : > { %v1693_v31 = vmul.f32 %v8019_v30, %v8011_v0  ;;  %7496 = vmatprep.subr.mxu1 %v8414_v4  ;;  %v2158_v33 = vpop.permute.xlu0 %2157  ;;  %v2234_v37 = vpop.permute.xlu1 %2233 }
 0x691   : > { %7489 = vmatmul.mubr.msk.f32.vlgmr.msra.gmra.mrb[16].mxu1 %vm685_vm2, %v1693_v31 }
 0x692   : > { %v8021_v35 = vpop.eup %8020  ;;  %7498 = vmatprep.mubr.msk.f32.mxu1 %vm8415_vm1, %v8414_v4 }
 0x693   : > { %v1694_v36 = vmul.f32 %v8021_v35, %v8013_v2  ;;  %v2156_v38 = vpop.permute.xlu0 %2155  ;;  %v2356_v39 = vpop.permute.xlu1 %2355 }
 0x695   : > { %7497 = vmatpush3.xpose.msk.msra.mxu1 %vm685_vm2, %v2002_v9  ;;  %7494 = vmatmul.mubr.msk.f32.vlgmr.msra.gmra.mrb[16].mxu0 %vm685_vm2, %v1694_v36 }
 0x696   : > { %7502 = vmatpush3.xpose.msk.msra.mxu0 %vm685_vm2, %v2080_v16  ;;  %7506 = vmatprep.subr.mxu1 %v8414_v4 }
 0x697   : > { %7503 = vmatprep.mubr.msk.f32.mxu0 %vm8415_vm1, %v8414_v4  ;;  %7511 = vmatprep.subr.mxu0 %v8414_v4  ;;  %v2432_v40 = vpop.permute.xlu0 %2431  ;;  %v2508_v3 = vpop.permute.xlu1 %2507 }
 0x698   : > { %7499 = vmatmul.mubr.msk.f32.vlgmr.msra.gmra.mrb[18].mxu1 %vm685_vm2, %v2000_v28 }
 0x699   : > { %7507 = vmatpush3.xpose.msk.msra.mxu1 %vm685_vm2, %v2158_v33  ;;  %7504 = vmatmul.mubr.msk.f32.vlgmr.msra.gmra.mrb[18].mxu0 %vm685_vm2, %v2078_v27 }
 0x69a   : > { %7512 = vmatpush3.xpose.msk.msra.mxu0 %vm685_vm2, %v2236_v32  ;;  %7508 = vmatprep.mubr.msk.f32.mxu1 %vm8415_vm1, %v8414_v4 }
 0x69b   : > { %7516 = vmatprep.subr.mxu1 %v8414_v4  ;;  %7513 = vmatprep.mubr.msk.f32.mxu0 %vm8415_vm1, %v8414_v4  ;;  %v2584_v9 = vpop.permute.xlu1 %2583 }
 0x69c   : > { %7509 = vmatmul.mubr.msk.f32.vlgmr.msra.gmra.mrb[20].mxu1 %vm685_vm2, %v2156_v38  ;;  %7521 = vmatprep.subr.mxu0 %v8414_v4 }
 0x69d   : > { %7517 = vmatpush3.msra.mxu1 %v2356_v39  ;;  %7514 = vmatmul.mubr.msk.f32.vlgmr.msra.gmra.mrb[20].mxu0 %vm685_vm2, %v2234_v37 }
 0x69e   : > { %7522 = vmatpush3.msra.mxu0 %v2432_v40  ;;  %7518 = vmatprep.mubr.msk.f32.mxu1 %vm8415_vm1, %v8414_v4 }
 0x69f   : > { %7526 = vmatprep.subr.mxu1 %v8414_v4  ;;  %7523 = vmatprep.mubr.msk.f32.mxu0 %vm8415_vm1, %v8414_v4 }
 0x6a0   : > { %7531 = vmatprep.subr.mxu0 %v8414_v4 }
 0x73e   : > { %v9040_v41 = vpop.f32.mrb[14].mxu0 }
 0x73f   : > { %v7485_v42 = vpop.f32.mrb[15].mxu0 }
 0x760   : > { %v9042_v43 = vpop.f32.mrb[14].mxu1 }
 0x761   : > { %v7904_v44 = vpack.i.bf16 %v9040_v41, %v9042_v43  ;;  %v7480_v45 = vpop.f32.mrb[15].mxu1 }
 0x764   : > { %v9046_v46 = vpop.f32.mrb[16].mxu1 }
 0x765   : > { %v7490_v47 = vpop.f32.mrb[17].mxu1 }
 0x768   : > { %v9048_v48 = vpop.f32.mrb[16].mxu0 }
 0x769   : > { %v7909_v49 = vpack.i.bf16 %v9048_v48, %v9046_v46  ;;  %v7495_v50 = vpop.f32.mrb[17].mxu0 }
 0x76b   : > { %v2073_v51 = vpop.f32.mrb[18].mxu1 }
 0x76c   : > { %v2074_v52 = vadd.f32 %v2073_v51, %v8882_v13  ;;  %v7500_v53 = vpop.f32.mrb[19].mxu1  ;;  %v2151_v54 = vpop.f32.mrb[18].mxu0 }
 0x76d   : > { %v2152_v55 = vadd.f32 %v2151_v54, %v8885_v17  ;;  %v7505_v56 = vpop.f32.mrb[19].mxu0 }
 0x76e   : > { %v2311_v57 = vsel %vm685_vm2, %v2074_v52, -inf }
 0x76f   : > { %2312 = vmax.xlane.f32.xlu0 %v2311_v57  ;;  %v2229_v58 = vpop.f32.mrb[20].mxu1  ;;  %v2314_v59 = vsel %vm685_vm2, %v2152_v55, -inf }
 0x770   : > { %v2230_v60 = vadd.f32 %v2229_v58, %v8889_v24  ;;  %v7510_v61 = vpop.f32.mrb[21].mxu1  ;;  %2315 = vmax.xlane.f32.xlu1 %v2314_v59  ;;  %v2307_v62 = vpop.f32.mrb[20].mxu0 }
 0x771   : > { %v7515_v63 = vpop.f32.mrb[21].mxu0  ;;  %v2308_v0 = vadd.f32 %v2307_v62, %v8892_v26 }
 0x772   : > { %v2317_v1 = vsel %vm685_vm2, %v2230_v60, -inf }
 0x773   : > { %2318 = vmax.xlane.f32.xlu0 %v2317_v1  ;;  %v2320_v2 = vsel %vm685_vm2, %v2308_v0, -inf }
 0x777   : > { %2321 = vmax.xlane.f32.xlu0 %v2320_v2 }
 0x781   : > { %2739 = vrot.lane.b32.xlu1 %v8848_v8, %s8424_s27 }
 0x78d   : > { %2661 = vrot.lane.b32.xlu0 %v8842_v6, %s8424_s27 }
 0x7fc   : > { %v2313_v10 = vpop.xlane.xlu0 %2312 }
 0x7fd   : > { %v2323_v11 = vsub.f32 %v2074_v52, %v2313_v10  ;;  %v2316_v12 = vpop.xlane.xlu1 %2315 }
 0x7fe   : > { %v2324_v14 = vsub.f32 %v2152_v55, %v2316_v12 }
 0x7ff   : > { %v2327_v15 = vmul.f32 1.442695, %v2323_v11 }
 0x800   : > { %v2329_v16 = vmul.f32 1.442695, %v2324_v14  ;;  %v2319_v27 = vpop.xlane.xlu0 %2318 }
 0x801   : > { %8022 = vpow2.f32 %v2327_v15  ;;  %v2325_v29 = vsub.f32 %v2230_v60, %v2319_v27  ;;  %v2740_v38 = vpop.permute.xlu1 %2739 }
 0x802   : > { %8024 = vpow2.f32 %v2329_v16 }
 0x803   : > { %v2331_v31 = vmul.f32 1.442695, %v2325_v29 }
 0x804   : > { %v2322_v28 = vpop.xlane.xlu0 %2321 }
 0x805   : > { %v2326_v30 = vsub.f32 %v2308_v0, %v2322_v28  ;;  %8026 = vpow2.f32 %v2331_v31 }
 0x807   : > { %v2333_v32 = vmul.f32 1.442695, %v2326_v30 }
 0x808   : > { %v2662_v39 = vpop.permute.xlu0 %2661 }
 0x809   : > { %8028 = vpow2.f32 %v2333_v32 }
 0x80b   : > { %v8023_v18 = vpop.eup %8022 }
 0x80c   : > { %v8025_v19 = vpop.eup %8024  ;;  %v2335_v21 = vsel %vm685_vm2, %v8023_v18, 0.0 }
 0x80d   : > { %2336 = vadd.xlane.f32.xlu1 %v2335_v21  ;;  %v2338_v23 = vsel %vm685_vm2, %v8025_v19, 0.0 }
 0x80e   : > { %2339 = vadd.xlane.f32.xlu0 %v2338_v23 }
 0x80f   : > { %v8027_v33 = vpop.eup %8026 }
 0x810   : > { %v2341_v36 = vsel %vm685_vm2, %v8027_v33, 0.0 }
 0x813   : > { %v8029_v35 = vpop.eup %8028 }
 0x814   : > { %v2344_v37 = vsel %vm685_vm2, %v8029_v35, 0.0 }
 0x81e   : > { %2737 = vrot.lane.b32.xlu1 %v8848_v8, %s8425_s28 }
 0x824   : > { %2659 = vrot.lane.b32.xlu0 %v8842_v6, %s8425_s28 }
 0x842   : > { %2342 = vadd.xlane.f32.xlu1 %v2341_v36 }
 0x843   : > { %2345 = vadd.xlane.f32.xlu0 %v2344_v37 }
 0x853   : > { %2895 = vrot.lane.b32.xlu1 %v8846_v7, %s8424_s27 }
 0x857   : > { %2893 = vrot.lane.b32.xlu1 %v8846_v7, %s8425_s28 }
 0x859   : > { %2817 = vrot.lane.b32.xlu0 %v8838_v5, %s8424_s27 }
 0x85d   : > { %2815 = vrot.lane.b32.xlu0 %v8838_v5, %s8425_s28 }
 0x89a   : > { %v2337_v40 = vpop.xlane.xlu1 %2336 }
 0x89b   : > { %8030 = vrcp.f32 %v2337_v40  ;;  %v2340_v42 = vpop.xlane.xlu0 %2339 }
 0x89c   : > { %8032 = vrcp.f32 %v2340_v42 }
 0x89e   : > { %v2738_v52 = vpop.permute.xlu1 %2737 }
 0x89f   : > { %v2660_v53 = vpop.permute.xlu0 %2659 }
 0x8a5   : > { %v8031_v45 = vpop.eup %8030 }
 0x8a6   : > { %v8033_v47 = vpop.eup %8032  ;;  %v2351_v50 = vmul.f32 %v8031_v45, %v8023_v18 }
 0x8a7   : > { %v2352_v51 = vmul.f32 %v8033_v47, %v8025_v19 }
 0x8a8   : > { %7519 = vmatmul.mubr.msk.f32.vlgmr.msra.gmra.mrb[22].mxu1 %vm685_vm2, %v2351_v50 }
 0x8a9   : > { %7527 = vmatpush3.msra.mxu1 %v2508_v3  ;;  %7524 = vmatmul.mubr.msk.f32.vlgmr.msra.gmra.mrb[22].mxu0 %vm685_vm2, %v2352_v51 }
 0x8aa   : > { %7532 = vmatpush3.msra.mxu0 %v2584_v9  ;;  %7528 = vmatprep.mubr.msk.f32.mxu1 %vm8415_vm1, %v8414_v4 }
 0x8ab   : > { %7536 = vmatprep.subr.mxu1 %v8414_v4  ;;  %7533 = vmatprep.mubr.msk.f32.mxu0 %vm8415_vm1, %v8414_v4 }
 0x8ac   : > { %7541 = vmatprep.subr.mxu0 %v8414_v4 }
 0x8cf   : > { %v2343_v54 = vpop.xlane.xlu1 %2342 }
 0x8d0   : > { %8034 = vrcp.f32 %v2343_v54  ;;  %v2346_v55 = vpop.xlane.xlu0 %2345 }
 0x8d1   : > { %8036 = vrcp.f32 %v2346_v55 }
 0x8d3   : > { %v2896_v61 = vpop.permute.xlu1 %2895 }
 0x8d4   : > { %v2818_v60 = vpop.permute.xlu0 %2817 }
 0x8d7   : > { %v2894_v63 = vpop.permute.xlu1 %2893 }
 0x8d8   : > { %v2816_v62 = vpop.permute.xlu0 %2815 }
 0x8da   : > { %v8035_v56 = vpop.eup %8034 }
 0x8db   : > { %v8037_v57 = vpop.eup %8036  ;;  %v2353_v58 = vmul.f32 %v8035_v56, %v8027_v33 }
 0x8dc   : > { %v2354_v59 = vmul.f32 %v8037_v57, %v8029_v35 }
 0x8dd   : > { %7529 = vmatmul.mubr.msk.f32.vlgmr.msra.gmra.mrb[24].mxu1 %vm685_vm2, %v2353_v58 }
 0x8de   : > { %7537 = vmatpush3.xpose.msk.msra.mxu1 %vm685_vm2, %v2662_v39  ;;  %7534 = vmatmul.mubr.msk.f32.vlgmr.msra.gmra.mrb[24].mxu0 %vm685_vm2, %v2354_v59 }
 0x8df   : > { %7542 = vmatpush3.xpose.msk.msra.mxu0 %vm685_vm2, %v2740_v38  ;;  %7538 = vmatprep.mubr.msk.f32.mxu1 %vm8415_vm1, %v8414_v4 }
 0x8e0   : > { %7546 = vmatprep.subr.mxu1 %v8414_v4  ;;  %7543 = vmatprep.mubr.msk.f32.mxu0 %vm8415_vm1, %v8414_v4 }
 0x8e1   : > { %7539 = vmatmul.mubr.msk.f32.vlgmr.msra.gmra.mrb[26].mxu1 %vm685_vm2, %v2660_v53  ;;  %7551 = vmatprep.subr.mxu0 %v8414_v4 }
 0x8e2   : > { %7547 = vmatpush3.xpose.msk.msra.mxu1 %vm685_vm2, %v2818_v60  ;;  %7544 = vmatmul.mubr.msk.f32.vlgmr.msra.gmra.mrb[26].mxu0 %vm685_vm2, %v2738_v52 }
 0x8e3   : > { %7552 = vmatpush3.xpose.msk.msra.mxu0 %vm685_vm2, %v2896_v61  ;;  %7548 = vmatprep.mubr.msk.f32.mxu1 %vm8415_vm1, %v8414_v4  ;;  %v7968_v61 = vld [vmem:[%s9765_s5] sm:$0xff]  }
 0x8e4   : > { %7553 = vmatprep.mubr.msk.f32.mxu0 %vm8415_vm1, %v8414_v4  ;;  %7556 = vmatprep.subr.mxu1 %v8414_v4 }
 0x8e5   : > { %7549 = vmatmul.mubr.msk.f32.vlgmr.msra.gmra.mrb[28].mxu1 %vm685_vm2, %v2816_v62  ;;  %7561 = vmatprep.subr.mxu0 %v8414_v4 }
 0x8e6   : > { %7554 = vmatmul.mubr.msk.f32.vlgmr.msra.gmra.mrb[28].mxu0 %vm685_vm2, %v2894_v63  ;;  %7558 = vmatprep.mubr.msk.f32.mxu1 %vm8415_vm1, %v8414_v4 }
 0x8e7   : > { %7563 = vmatprep.mubr.msk.f32.mxu0 %vm8415_vm1, %v8414_v4 }
 0x97b   : > { %v9114_v0 = vpop.f32.mrb[22].mxu1 }
 0x97c   : > { %v7520_v1 = vpop.f32.mrb[23].mxu1  ;;  %v9116_v2 = vpop.f32.mrb[22].mxu0 }
 0x97d   : > { %v7914_v3 = vpack.i.bf16 %v9116_v2, %v9114_v0  ;;  %v7525_v9 = vpop.f32.mrb[23].mxu0 }
 0x9b0   : > { %v9120_v10 = vpop.f32.mrb[24].mxu1 }
 0x9b1   : > { %v7530_v11 = vpop.f32.mrb[25].mxu1  ;;  %v9122_v12 = vpop.f32.mrb[24].mxu0 }
 0x9b2   : > { %v7919_v14 = vpack.i.bf16 %v9122_v12, %v9120_v10  ;;  %v7535_v15 = vpop.f32.mrb[25].mxu0  ;;  %v7969_v10 = vld [vmem:[%s9765_s5 + $0x8] sm:$0xff]  }
 0x9b4   : > { %v2733_v16 = vpop.f32.mrb[26].mxu1 }
 0x9b5   : > { %v2734_v18 = vadd.f32 %v2733_v16, %v8882_v13  ;;  %v7540_v19 = vpop.f32.mrb[27].mxu1  ;;  %v2811_v21 = vpop.f32.mrb[26].mxu0 }
 0x9b6   : > { %v2812_v23 = vadd.f32 %v2811_v21, %v8885_v17  ;;  %v7545_v27 = vpop.f32.mrb[27].mxu0 }
 0x9b7   : > { %v2971_v28 = vsel %vm685_vm2, %v2734_v18, -inf }
 0x9b8   : > { %2972 = vmax.xlane.f32.xlu0 %v2971_v28  ;;  %v2889_v29 = vpop.f32.mrb[28].mxu1  ;;  %v2974_v30 = vsel %vm685_vm2, %v2812_v23, -inf }
 0x9b9   : > { %v2890_v31 = vadd.f32 %v2889_v29, %v8889_v24  ;;  %v7550_v32 = vpop.f32.mrb[29].mxu1  ;;  %2975 = vmax.xlane.f32.xlu1 %v2974_v30  ;;  %v2967_v33 = vpop.f32.mrb[28].mxu0 }
 0x9ba   : > { %v7555_v35 = vpop.f32.mrb[29].mxu0  ;;  %v2968_v36 = vadd.f32 %v2967_v33, %v8892_v26 }
 0x9bb   : > { %v2977_v13 = vsel %vm685_vm2, %v2890_v31, -inf }
 0x9bc   : > { %2978 = vmax.xlane.f32.xlu0 %v2977_v13  ;;  %v2980_v17 = vsel %vm685_vm2, %v2968_v36, -inf }
 0x9c0   : > { %2981 = vmax.xlane.f32.xlu0 %v2980_v17 }
 0x9ca   : > { %3015 = vrot.lane.b32.xlu1 %v8842_v6, %s8426_s19 }
 0xa45   : > { %v2973_v37 = vpop.xlane.xlu0 %2972 }
 0xa46   : > { %v2983_v38 = vsub.f32 %v2734_v18, %v2973_v37  ;;  %v2976_v39 = vpop.xlane.xlu1 %2975 }
 0xa47   : > { %v2984_v24 = vsub.f32 %v2812_v23, %v2976_v39 }
 0xa48   : > { %v2987_v40 = vmul.f32 1.442695, %v2983_v38 }
 0xa49   : > { %v2989_v42 = vmul.f32 1.442695, %v2984_v24  ;;  %v2979_v45 = vpop.xlane.xlu0 %2978 }
 0xa4a   : > { %8038 = vpow2.f32 %v2987_v40  ;;  %v2985_v47 = vsub.f32 %v2890_v31, %v2979_v45  ;;  %v3016_v26 = vpop.permute.xlu1 %3015 }
 0xa4b   : > { %8040 = vpow2.f32 %v2989_v42  ;;  %7557 = vmatpush3.msra.mxu1 %v3016_v26 }
 0xa4c   : > { %v2991_v50 = vmul.f32 1.442695, %v2985_v47  ;;  %7566 = vmatprep.subr.mxu1 %v8414_v4 }
 0xa4d   : > { %v2982_v51 = vpop.xlane.xlu0 %2981 }
 0xa4e   : > { %8042 = vpow2.f32 %v2991_v50  ;;  %v2986_v52 = vsub.f32 %v2968_v36, %v2982_v51 }
 0xa50   : > { %v2993_v53 = vmul.f32 1.442695, %v2986_v52 }
 0xa52   : > { %8044 = vpow2.f32 %v2993_v53 }
 0xa54   : > { %v8039_v6 = vpop.eup %8038 }
 0xa55   : > { %v8041_v54 = vpop.eup %8040  ;;  %v2995_v55 = vsel %vm685_vm2, %v8039_v6, 0.0 }
 0xa56   : > { %2996 = vadd.xlane.f32.xlu1 %v2995_v55  ;;  %v2998_v56 = vsel %vm685_vm2, %v8041_v54, 0.0 }
 0xa57   : > { %2999 = vadd.xlane.f32.xlu0 %v2998_v56 }
 0xa58   : > { %v8043_v57 = vpop.eup %8042 }
 0xa59   : > { %v3001_v58 = vsel %vm685_vm2, %v8043_v57, 0.0 }
 0xa5a   : > { %3002 = vadd.xlane.f32.xlu1 %v3001_v58 }
 0xa5c   : > { %v8045_v59 = vpop.eup %8044 }
 0xa5d   : > { %v3004_v60 = vsel %vm685_vm2, %v8045_v59, 0.0 }
 0xa5e   : > { %3005 = vadd.xlane.f32.xlu0 %v3004_v60 }
 0xa6b   : > { %3167 = vrot.lane.b32.xlu1 %v8838_v5, %s8426_s19 }
 0xa6f   : > { %3243 = vrot.lane.b32.xlu1 %v8846_v7, %s8426_s19 }
 0xa73   : > { %7905 = vrot.lane.b32.xlu1 %v7904_v44, %s8427_s13 }
 0xa74   : > { %3091 = vrot.lane.b32.xlu0 %v8848_v8, %s8426_s19  ;;  %s9841_s19 = sld [smem:[#allocation24_spill]] }
 0xa77   : > { %7915 = vrot.lane.b32.xlu1 %v7914_v3, %s8428_s25 }
 0xa78   : > { %3401 = vrot.lane.b32.xlu0 %v7968_v61, %s8429_s10 }
 0xa7a   : > { %p9843_p5 = scmp.ne.s32.totalorder %s9841_s19, 0 }
 0xa7c   : > { %7910 = vrot.lane.b32.xlu0 %v7909_v49, %s8427_s13 }
 0xa80   : > { %7920 = vrot.lane.b32.xlu0 %v7919_v14, %s8428_s25 }
 0xa84   : > { %3403 = vrot.lane.b32.xlu0 %v7969_v10, %s8429_s10 }
 0xae3   : > { %v2997_v5 = vpop.xlane.xlu1 %2996 }
 0xae4   : > { %8046 = vrcp.f32 %v2997_v5  ;;  %v3000_v7 = vpop.xlane.xlu0 %2999 }
 0xae5   : > { %8048 = vrcp.f32 %v3000_v7 }
 0xae7   : > { %v3003_v8 = vpop.xlane.xlu1 %3002 }
 0xae8   : > { %8050 = vrcp.f32 %v3003_v8 }
 0xaeb   : > { %v3006_v41 = vpop.xlane.xlu0 %3005  ;;  %v3168_v43 = vpop.permute.xlu1 %3167 }
 0xaec   : > { %8052 = vrcp.f32 %v3006_v41 }
 0xaee   : > { %v8047_v44 = vpop.eup %8046 }
 0xaef   : > { %v8049_v62 = vpop.eup %8048  ;;  %v3092_v63 = vpop.permute.xlu0 %3091  ;;  %v3011_v0 = vmul.f32 %v8047_v44, %v8039_v6 }
 0xaf0   : > { %7562 = vmatpush3.msra.mxu0 %v3092_v63  ;;  %v3012_v46 = vmul.f32 %v8049_v62, %v8041_v54  ;;  %v3244_v49 = vpop.permute.xlu1 %3243  ;;  %v8143_v62 = vld [vmem:[%s8794_s8 + $0x8] sm:$0xff]  }
 0xaf1   : > { %7559 = vmatmul.mubr.msk.f32.vlgmr.msra.gmra.mrb[30].mxu1 %vm685_vm2, %v3011_v0  ;;  %7571 = vmatprep.subr.mxu0 %v8414_v4  ;;  %v3464_v63 = vunpack.c.l.bf16 %v8143_v62 }
 0xaf2   : > { %v8051_v48 = vpop.eup %8050  ;;  %7567 = vmatpush3.msra.mxu1 %v3168_v43  ;;  %7564 = vmatmul.mubr.msk.f32.vlgmr.msra.gmra.mrb[30].mxu0 %vm685_vm2, %v3012_v46 }
 0xaf3   : > { %7572 = vmatpush3.msra.mxu0 %v3244_v49  ;;  %v3402_v1 = vpop.permute.xlu0 %3401  ;;  %7568 = vmatprep.mubr.msk.f32.mxu1 %vm8415_vm1, %v8414_v4  ;;  %v3013_v2 = vmul.f32 %v8051_v48, %v8043_v57  ;;  %v3465_v49 = vunpack.c.h.bf16 %v8143_v62 }
 0xaf4   : > { %7573 = vmatprep.mubr.msk.f32.mxu0 %vm8415_vm1, %v8414_v4  ;;  %7576 = vmatprep.subr.bf16.mxu1 %v3402_v1  ;;  %v7906_v31 = vpop.permute.xlu1 %7905 }
 0xaf5   : > { %7569 = vmatmul.mubr.msk.f32.vlgmr.msra.gmra.mrb[32].mxu1 %vm685_vm2, %v3013_v2  ;;  %v7908_v33 = vunpack.i.h.bf16 %v7906_v31  ;;  %v7907_v35 = vunpack.i.l.bf16 %v7906_v31 }
 0xaf6   : > { %v8053_v3 = vpop.eup %8052  ;;  %7577 = vmatpush3.bf16.msra.mxu1 %v3402_v1 }
 0xaf7   : > { %v3014_v9 = vmul.f32 %v8053_v3, %v8045_v59  ;;  %v7911_v11 = vpop.permute.xlu0 %7910  ;;  %v3368_v37 = vsel %vm685_vm2, %v8960_v22, %v7908_v33  ;;  %v3367_v38 = vsel %vm685_vm2, %v8958_v20, %v7907_v35 }
 0xaf8   : > { %v7916_v32 = vpop.permute.xlu1 %7915  ;;  %v7913_v26 = vunpack.i.h.bf16 %v7911_v11  ;;  %v7912_v50 = vunpack.i.l.bf16 %v7911_v11 }
 0xaf9   : > { %7574 = vmatmul.mubr.msk.f32.vlgmr.msra.gmra.mrb[32].mxu0 %vm685_vm2, %v3014_v9  ;;  %v7918_v36 = vunpack.i.h.bf16 %v7916_v32  ;;  %v7917_v13 = vunpack.i.l.bf16 %v7916_v32 }
 0xafa   : > { %v3370_v20 = vsel %vm685_vm2, %v8962_v25, %v7913_v26  ;;  %v3369_v6 = vsel %vm685_vm2, %v8969_v34, %v7912_v50  ;;  %v7140_v25 = vld [vmem:[%s9838_s26] ss:$0 sm:$0xff] }
 0xafb   : > { %v7921_v12 = vpop.permute.xlu0 %7920  ;;  %v3372_v40 = vsel %vm3371_vm3, %v3367_v38, %v7917_v13  ;;  %v3373_v42 = vsel %vm3371_vm3, %v3368_v37, %v7918_v36  ;;  %v8142_v34 = vld [vmem:[%s8794_s8] sm:$0xff]   ;;  %s7243_s8 = sshll.u32 %s8514_s21, 9  ;;  %s6876_s21 = scalar_lea.sflag [#allocation4], %s8787_s23 }
 0xafc   : > { %v7923_v52 = vunpack.i.h.bf16 %v7921_v12  ;;  %v7922_v53 = vunpack.i.l.bf16 %v7921_v12  ;;  %v3462_v61 = vunpack.c.l.bf16 %v8142_v34  ;;  %v3463_v8 = vunpack.c.h.bf16 %v8142_v34 }
 0xafe   : > { %v3374_v56 = vsel %vm3371_vm3, %v3369_v6, %v7922_v53  ;;  %v3375_v57 = vsel %vm3371_vm3, %v3370_v20, %v7923_v52 }
 0xaff   : > { %v3404_v14 = vpop.permute.xlu0 %3403 }
 0xb00   : > { %7578 = vmatprep.subr.bf16.mxu1 %v3404_v14 }
 0xb01   : > { %7579 = vmatpush3.bf16.msra.mxu1 %v3404_v14 }
 0xb02   : > { %7624 = vmatprep.subr.mxu1 %v8414_v4 }
 0xbc4   : > { %v3087_v15 = vpop.f32.mrb[30].mxu1 }
 0xbc5   : > { %v7560_v16 = vpop.f32.mrb[31].mxu1  ;;  %v3163_v18 = vpop.f32.mrb[30].mxu0 }
 0xbc6   : > { %v7924_v19 = vpack.i.bf16 %v3163_v18, %v3087_v15  ;;  %v7565_v21 = vpop.f32.mrb[31].mxu0  ;;  %v7970_v15 = vld [vmem:[#allocation10] sm:$0xff]   ;;  %v7971_v16 = vld [vmem:[#allocation10 + $0x8] sm:$0xff]  }
 0xbc7   : > { %7584 = vmatprep.subr.bf16.mxu0 %v7970_v15 }
 0xbc8   : > { %v3239_v23 = vpop.f32.mrb[32].mxu1  ;;  %7925 = vrot.lane.b32.xlu1 %v7924_v19, %s8430_s24  ;;  %7585 = vmatpush3.bf16.msra.mxu0 %v7970_v15 }
 0xbc9   : > { %v7570_v27 = vpop.f32.mrb[33].mxu1  ;;  %7586 = vmatprep.subr.bf16.mxu0 %v7971_v16 }
 0xbcc   : > { %v3315_v28 = vpop.f32.mrb[32].mxu0  ;;  %7587 = vmatpush3.bf16.msra.mxu0 %v7971_v16 }
 0xbcd   : > { %v7929_v29 = vpack.i.bf16 %v3315_v28, %v3239_v23  ;;  %v7575_v30 = vpop.f32.mrb[33].mxu0 }
 0xbcf   : > { %7930 = vrot.lane.b32.xlu1 %v7929_v29, %s8430_s24 }
 0xc3a   : > { %v7926_v17 = vpop.permute.xlu1 %7925 }
 0xc3b   : > { %v7928_v39 = vunpack.i.h.bf16 %v7926_v17  ;;  %v7927_v24 = vunpack.i.l.bf16 %v7926_v17 }
 0xc3d   : > { %v3378_v45 = vsel %vm3376_vm4, %v3373_v42, %v7928_v39  ;;  %v3377_v47 = vsel %vm3376_vm4, %v3372_v40, %v7927_v24 }
 0xc3e   : > { %v3381_v51 = vpack.c.bf16 %v3378_v45, %v3377_v47 }
 0xc40   : > { %7580 = vmatprep.mubr.msk.bf16.mxu1 %vm626_vm0, %v3381_v51 }
 0xc41   : > { %v7931_v22 = vpop.permute.xlu1 %7930 }
 0xc42   : > { %v7933_v54 = vunpack.i.h.bf16 %v7931_v22  ;;  %v7932_v55 = vunpack.i.l.bf16 %v7931_v22 }
 0xc44   : > { %v3380_v58 = vsel %vm3376_vm4, %v3375_v57, %v7933_v54  ;;  %v3379_v59 = vsel %vm3376_vm4, %v3374_v56, %v7932_v55  ;;  %v7145_v57 = vld [vmem:[%s9838_s26 + $0x1] ss:$0 sm:$0xff] }
 0xc45   : > { %v3382_v60 = vpack.c.bf16 %v3380_v58, %v3379_v59 }
 0xc47   : > { %7581 = vmatmul.mubr.msk.bf16.vlgmr.msra.gmra.mrb[36].mxu1 %vm626_vm0, %v3382_v60 }
 0xc48   : > { %7626 = vmatprep.mubr.msk.f32.mxu1 %vm8415_vm1, %v8414_v4 }
 0xd1a   : > { %v7582_v5 = vpop.f32.mrb[36].mxu1 }
 0xd1b   : > { %v3447_v7 = vpop.f32.mrb[37].mxu1  ;;  %v3456_v41 = vadd.f32 %v7582_v5, %v7140_v25 }
 0xd1c   : > { %v3448_v43 = vadd.f32 %v7140_v25, %v3447_v7  ;;  %v7583_v44 = vpop.f32.mrb[38].mxu1 }
 0xd1d   : > { %v3450_v0 = vpop.f32.mrb[39].mxu1  ;;  %v3459_v1 = vadd.f32 %v7583_v44, %v7140_v25  ;;  %v3468_v9 = vadd.f32 %v3464_v63, %v3456_v41 }
 0xd1e   : > { %v3451_v46 = vadd.f32 %v7140_v25, %v3450_v0  ;;  %v3466_v48 = vadd.f32 %v3462_v61, %v3448_v43  ;;  %v7146_v61 = vld [vmem:[%s9838_s26 + $0x2] ss:$0 sm:$0xff] }
 0xd1f   : > { %v3476_v11 = vsel %vm626_vm0, %v3468_v9, 0.0  ;;  %v3469_v12 = vadd.f32 %v3465_v49, %v3459_v1  ;;  %v7972_v49 = vld [vmem:[%s491_s9] sm:$0xff]  }
 0xd20   : > { %v3470_v2 = vsel %vm626_vm0, %v3466_v48, 0.0  ;;  %v3467_v3 = vadd.f32 %v3463_v8, %v3451_v46 }
 0xd21   : > { %3471 = vadd.xlane.f32.xlu0 %v3470_v2  ;;  %v3479_v14 = vsel %vm626_vm0, %v3469_v12, 0.0 }
 0xd22   : > { %v3473_v10 = vsel %vm626_vm0, %v3467_v3, 0.0 }
 0xd23   : > { %3474 = vadd.xlane.f32.xlu1 %v3473_v10  ;;  %v7975_v10 = vld [vmem:[%s482_s3 + $0x8] sm:$0xff]  }
 0xd25   : > { %3477 = vadd.xlane.f32.xlu0 %v3476_v11 }
 0xd29   : > { %3480 = vadd.xlane.f32.xlu0 %v3479_v14 }
 0xdae   : > { %v3472_v18 = vpop.xlane.xlu0 %3471 }
 0xdaf   : > { %v3483_v19 = vmul.f32 0.03125, %v3472_v18 }
 0xdb0   : > { %v3475_v21 = vpop.xlane.xlu1 %3474 }
 0xdb1   : > { %v3487_v23 = vsub.f32 %v3466_v48, %v3483_v19  ;;  %v3484_v27 = vmul.f32 0.03125, %v3475_v21 }
 0xdb2   : > { %v3478_v28 = vpop.xlane.xlu0 %3477 }
 0xdb3   : > { %v3488_v29 = vsub.f32 %v3467_v3, %v3484_v27  ;;  %v3485_v30 = vmul.f32 0.03125, %v3478_v28  ;;  %v3491_v31 = vmul.f32 %v3487_v23, %v3487_v23  ;;  %v7973_v3 = vld [vmem:[%s491_s9 + $0x8] sm:$0xff]  }
 0xdb5   : > { %v3489_v32 = vsub.f32 %v3468_v9, %v3485_v30  ;;  %v3495_v33 = vsel %vm626_vm0, %v3491_v31, 0.0  ;;  %v3492_v35 = vmul.f32 %v3488_v29, %v3488_v29  ;;  %v7974_v9 = vld [vmem:[%s482_s3] sm:$0xff]   ;;  %s9711_s3 = scalar_lea.hbm %s9842_s29, %s7243_s8 }
 0xdb6   : > { %3496 = vadd.xlane.f32.xlu1 %v3495_v33  ;;  %v3481_v36 = vpop.xlane.xlu0 %3480  ;;  %v9306_v30 = vld [vmem:[%s8808_s22] ss:$0 sm:$0xff] }
 0xdb7   : > { %v3486_v13 = vmul.f32 0.03125, %v3481_v36  ;;  %v3498_v17 = vsel %vm626_vm0, %v3492_v35, 0.0  ;;  %v3493_v37 = vmul.f32 %v3489_v32, %v3489_v32  ;;  %v9310_v35 = vld [vmem:[%s8808_s22 + $0x1] ss:$0 sm:$0xff] }
 0xdb8   : > { %3499 = vadd.xlane.f32.xlu0 %v3498_v17 }
 0xdb9   : > { %v3490_v38 = vsub.f32 %v3469_v12, %v3486_v13  ;;  %v3501_v39 = vsel %vm626_vm0, %v3493_v37, 0.0 }
 0xdba   : > { %3502 = vadd.xlane.f32.xlu1 %v3501_v39 }
 0xdbb   : > { %v3494_v24 = vmul.f32 %v3490_v38, %v3490_v38 }
 0xdbd   : > { %v3504_v40 = vsel %vm626_vm0, %v3494_v24, 0.0 }
 0xdbe   : > { %3505 = vadd.xlane.f32.xlu0 %v3504_v40 }
 0xdcb   : > { %3640 = vrot.lane.b32.xlu1 %v7970_v15, %s8416_s30 }
 0xdd4   : > { %3642 = vrot.lane.b32.xlu0 %v7971_v16, %s8416_s30 }
 0xe43   : > { %v3497_v42 = vpop.xlane.xlu1 %3496 }
 0xe44   : > { %v3507_v45 = vmul.f32 0.03125, %v3497_v42 }
 0xe45   : > { %v3500_v47 = vpop.xlane.xlu0 %3499 }
 0xe46   : > { %v3511_v26 = vadd.f32 1e-05, %v3507_v45  ;;  %v3508_v50 = vmul.f32 0.03125, %v3500_v47  ;;  %v9320_v45 = vld [vmem:[%s8808_s22 + $0x3] ss:$0 sm:$0xff] }
 0xe47   : > { %v3503_v51 = vpop.xlane.xlu1 %3502 }
 0xe48   : > { %8054 = vrsqrt.f32 %v3511_v26  ;;  %v3512_v52 = vadd.f32 1e-05, %v3508_v50  ;;  %v3509_v53 = vmul.f32 0.03125, %v3503_v51 }
 0xe4a   : > { %8056 = vrsqrt.f32 %v3512_v52  ;;  %v3513_v22 = vadd.f32 1e-05, %v3509_v53 }
 0xe4b   : > { %v3506_v20 = vpop.xlane.xlu0 %3505  ;;  %v3641_v6 = vpop.permute.xlu1 %3640 }
 0xe4c   : > { %8058 = vrsqrt.f32 %v3513_v22  ;;  %v3510_v54 = vmul.f32 0.03125, %v3506_v20  ;;  %7592 = vmatprep.subr.bf16.mxu0 %v3641_v6 }
 0xe4e   : > { %v3514_v55 = vadd.f32 1e-05, %v3510_v54 }
 0xe4f   : > { %v3643_v2 = vpop.permute.xlu0 %3642 }
 0xe50   : > { %8060 = vrsqrt.f32 %v3514_v55 }
 0xe52   : > { %v8055_v56 = vpop.eup %8054 }
 0xe53   : > { %v3519_v58 = vmul.f32 %v8055_v56, %v3487_v23 }
 0xe54   : > { %v8057_v59 = vpop.eup %8056 }
 0xe55   : > { %v3520_v60 = vmul.f32 %v8057_v59, %v3488_v29  ;;  %v3527_v25 = vmul.f32 %v7145_v57, %v3519_v58 }
 0xe56   : > { %v8059_v34 = vpop.eup %8058 }
 0xe57   : > { %v3521_v5 = vmul.f32 %v8059_v34, %v3489_v32  ;;  %v3528_v7 = vmul.f32 %v7145_v57, %v3520_v60  ;;  %v9224_v8 = vadd.f32 %v7146_v61, %v3527_v25 }
 0xe59   : > { %v9226_v41 = vadd.f32 %v7146_v61, %v3528_v7  ;;  %v3529_v63 = vmul.f32 %v7145_v57, %v3521_v5 }
 0xe5a   : > { %v8061_v43 = vpop.eup %8060 }
 0xe5b   : > { %v3522_v44 = vmul.f32 %v8061_v43, %v3490_v38  ;;  %v3547_v62 = vpack.c.bf16 %v9226_v41, %v9224_v8  ;;  %v9231_v46 = vadd.f32 %v7146_v61, %v3529_v63  ;;  %v9315_v38 = vld [vmem:[%s8808_s22 + $0x2] ss:$0 sm:$0xff]  ;;  %s8431_s22 = smov [#allocation13]  }
 0xe5d   : > { %7588 = vmatprep.mubr.msk.bf16.mxu0 %vm626_vm0, %v3547_v62  ;;  %v3530_v0 = vmul.f32 %v7145_v57, %v3522_v44 }
 0xe5f   : > { %v9233_v48 = vadd.f32 %v7146_v61, %v3530_v0 }
 0xe61   : > { %v3548_v1 = vpack.c.bf16 %v9233_v48, %v9231_v46 }
 0xe63   : > { %7589 = vmatmul.mubr.msk.bf16.vlgmr.msra.gmra.mrb[36].mxu0 %vm626_vm0, %v3548_v1 }
 0xe64   : > { %7593 = vmatpush3.bf16.msra.mxu0 %v3641_v6  ;;  %7596 = vmatprep.mubr.msk.bf16.mxu0 %vm626_vm0, %v7972_v49 }
 0xe65   : > { %7594 = vmatprep.subr.bf16.mxu0 %v3643_v2 }
 0xe68   : > { %7595 = vmatpush3.bf16.msra.mxu0 %v3643_v2 }
 0xe69   : > { %7604 = vmatprep.subr.mxu0 %v8414_v4 }
 0xe6b   : > { %7597 = vmatmul.mubr.msk.bf16.vlgmr.msra.gmra.mrb[40].mxu0 %vm626_vm0, %v7973_v3 }
 0xe6c   : > { %7600 = vmatprep.mubr.msk.bf16.mxu0 %vm626_vm0, %v7974_v9 }
 0xe73   : > { %7601 = vmatmul.mubr.msk.bf16.gmra.mrb[44].mxu0 %vm626_vm0, %v7975_v10 }
 0xe74   : > { %7606 = vmatprep.mubr.msk.f32.mxu0 %vm8415_vm1, %v8414_v4 }
 0xf36   : > { %v9253_v11 = vpop.f32.mrb[36].mxu0 }
 0xf37   : > { %v9255_v12 = vpop.f32.mrb[37].mxu0 }
 0xf38   : > { %v9257_v14 = vpop.f32.mrb[38].mxu0 }
 0xf39   : > { %v9259_v15 = vpop.f32.mrb[39].mxu0 }
 0xf3e   : > { %v9261_v16 = vpop.f32.mrb[40].mxu0 }
 0xf3f   : > { %v9263_v18 = vpop.f32.mrb[41].mxu0 }
 0xf40   : > { %v9265_v19 = vpop.f32.mrb[42].mxu0  ;;  %7605 = vmatpush3.xpose.msk.msra.mxu0 %vm685_vm2, %v9263_v18 }
 0xf41   : > { %v9269_v21 = vpop.f32.mrb[43].mxu0  ;;  %7609 = vmatprep.subr.mxu0 %v8414_v4 }
 0xf43   : > { %7607 = vmatmul.mubr.msk.f32.vlgmr.msra.gmra.mrb[34].mxu0 %vm685_vm2, %v9255_v12 }
 0xf44   : > { %7610 = vmatpush3.xpose.msk.msra.mxu0 %vm685_vm2, %v9269_v21  ;;  %7611 = vmatprep.mubr.msk.f32.mxu0 %vm8415_vm1, %v8414_v4 }
 0xf45   : > { %7614 = vmatprep.subr.mxu0 %v8414_v4 }
 0xf46   : > { %v9297_v23 = vpop.f32.mrb[44].mxu0 }
 0xf47   : > { %7612 = vmatmul.mubr.msk.f32.vlgmr.msra.gmra.mrb[48].mxu0 %vm685_vm2, %v9259_v15  ;;  %v9299_v27 = vpop.f32.mrb[45].mxu0 }
 0xf48   : > { %7615 = vmatpush3.xpose.msk.msra.mxu0 %vm685_vm2, %v9261_v16  ;;  %7616 = vmatprep.mubr.msk.f32.mxu0 %vm8415_vm1, %v8414_v4  ;;  %v9301_v28 = vpop.f32.mrb[46].mxu0 }
 0xf49   : > { %7619 = vmatprep.subr.mxu0 %v8414_v4  ;;  %v9303_v29 = vpop.f32.mrb[47].mxu0 }
 0xf4b   : > { %7617 = vmatmul.mubr.msk.f32.vlgmr.msra.gmra.mrb[50].mxu0 %vm685_vm2, %v9253_v11 }
 0xf4c   : > { %7620 = vmatpush3.xpose.msk.msra.mxu0 %vm685_vm2, %v9265_v19  ;;  %7621 = vmatprep.mubr.msk.f32.mxu0 %vm8415_vm1, %v8414_v4 }
 0xf4d   : > { %7629 = vmatprep.subr.mxu0 %v8414_v4 }
 0xf4f   : > { %7622 = vmatmul.mubr.msk.f32.vlgmr.msra.gmra.mrb[52].mxu0 %vm685_vm2, %v9257_v14 }
 0xf50   : > { %7631 = vmatprep.mubr.msk.f32.mxu0 %vm8415_vm1, %v8414_v4 }
0x1016   : > { %v3819_v31 = vpop.f32.mrb[34].mxu0 }
0x1017   : > { %v3820_v32 = vadd.f32 %v9306_v30, %v3819_v31  ;;  %v7608_v33 = vpop.f32.mrb[35].mxu0 }
0x1019   : > { %v4051_v36 = vsel %vm685_vm2, %v3820_v32, -inf }
0x101a   : > { %4052 = vmax.xlane.f32.xlu1 %v4051_v36  ;;  %v3895_v13 = vpop.f32.mrb[48].mxu0 }
0x101b   : > { %v3896_v17 = vadd.f32 %v9310_v35, %v3895_v13  ;;  %v7613_v37 = vpop.f32.mrb[49].mxu0 }
0x101d   : > { %v4054_v39 = vsel %vm685_vm2, %v3896_v17, -inf }
0x101e   : > { %4055 = vmax.xlane.f32.xlu0 %v4054_v39  ;;  %v3971_v24 = vpop.f32.mrb[50].mxu0 }
0x101f   : > { %v3972_v40 = vadd.f32 %v9315_v38, %v3971_v24  ;;  %v7618_v42 = vpop.f32.mrb[51].mxu0 }
0x1021   : > { %v4057_v47 = vsel %vm685_vm2, %v3972_v40, -inf }
0x1022   : > { %4058 = vmax.xlane.f32.xlu1 %v4057_v47  ;;  %v4047_v26 = vpop.f32.mrb[52].mxu0 }
0x1023   : > { %v4048_v50 = vadd.f32 %v9320_v45, %v4047_v26  ;;  %v7623_v51 = vpop.f32.mrb[53].mxu0 }
0x1025   : > { %v4060_v52 = vsel %vm685_vm2, %v4048_v50, -inf }
0x1026   : > { %4061 = vmax.xlane.f32.xlu0 %v4060_v52 }
0x1033   : > { %4096 = vrot.lane.b32.xlu1 %v9299_v27, %s8416_s30 }
0x1037   : > { %4250 = vrot.lane.b32.xlu1 %v9297_v23, %s8416_s30 }
0x103b   : > { %4327 = vrot.lane.b32.xlu1 %v9301_v28, %s8416_s30 }
0x103c   : > { %4173 = vrot.lane.b32.xlu0 %v9303_v29, %s8416_s30  ;;  %s9839_s30 = sld [smem:[#allocation29_spill]] }
0x103f   : > { %4483 = vrot.lane.b32.xlu1 %v9269_v21, %s8419_s12 }
0x1040   : > { %4405 = vrot.lane.b32.xlu0 %v9263_v18, %s8419_s12 }
0x10a7   : > { %v4053_v53 = vpop.xlane.xlu1 %4052 }
0x10a8   : > { %v4063_v22 = vsub.f32 %v3820_v32, %v4053_v53 }
0x10aa   : > { %v4067_v20 = vmul.f32 1.442695, %v4063_v22 }
0x10ab   : > { %v4056_v6 = vpop.xlane.xlu0 %4055 }
0x10ac   : > { %8062 = vpow2.f32 %v4067_v20  ;;  %v4064_v54 = vsub.f32 %v3896_v17, %v4056_v6 }
0x10ae   : > { %v4069_v55 = vmul.f32 1.442695, %v4064_v54 }
0x10af   : > { %v4059_v56 = vpop.xlane.xlu1 %4058 }
0x10b0   : > { %8064 = vpow2.f32 %v4069_v55  ;;  %v4065_v57 = vsub.f32 %v3972_v40, %v4059_v56 }
0x10b2   : > { %v4071_v58 = vmul.f32 1.442695, %v4065_v57 }
0x10b3   : > { %v4097_v59 = vpop.permute.xlu1 %4096  ;;  %v4062_v60 = vpop.xlane.xlu0 %4061 }
0x10b4   : > { %8066 = vpow2.f32 %v4071_v58  ;;  %v4066_v25 = vsub.f32 %v4048_v50, %v4062_v60  ;;  %7625 = vmatpush3.msra.mxu1 %v4097_v59 }
0x10b5   : > { %7634 = vmatprep.subr.mxu1 %v8414_v4 }
0x10b6   : > { %v8063_v34 = vpop.eup %8062  ;;  %v4073_v61 = vmul.f32 1.442695, %v4066_v25 }
0x10b7   : > { %v4174_v5 = vpop.permute.xlu0 %4173  ;;  %v4075_v7 = vsel %vm685_vm2, %v8063_v34, 0.0  ;;  %v4251_v1 = vpop.permute.xlu1 %4250 }
0x10b8   : > { %8068 = vpow2.f32 %v4073_v61  ;;  %4076 = vadd.xlane.f32.xlu1 %v4075_v7  ;;  %7630 = vmatpush3.msra.mxu0 %v4174_v5 }
0x10b9   : > { %7639 = vmatprep.subr.mxu0 %v8414_v4 }
0x10ba   : > { %v8065_v43 = vpop.eup %8064 }
0x10bb   : > { %v4078_v44 = vsel %vm685_vm2, %v8065_v43, 0.0  ;;  %v4328_v2 = vpop.permute.xlu1 %4327  ;;  %v4406_v9 = vpop.permute.xlu0 %4405 }
0x10bc   : > { %4079 = vadd.xlane.f32.xlu0 %v4078_v44 }
0x10be   : > { %v8067_v62 = vpop.eup %8066 }
0x10bf   : > { %v4081_v63 = vsel %vm685_vm2, %v8067_v62, 0.0  ;;  %v4484_v3 = vpop.permute.xlu1 %4483 }
0x10c0   : > { %4082 = vadd.xlane.f32.xlu1 %v4081_v63 }
0x10c2   : > { %v8069_v0 = vpop.eup %8068 }
0x10c3   : > { %v4084_v49 = vsel %vm685_vm2, %v8069_v0, 0.0 }
0x10c4   : > { %4085 = vadd.xlane.f32.xlu0 %v4084_v49 }
0x10d1   : > { %4481 = vrot.lane.b32.xlu1 %v9259_v15, %s8419_s12 }
0x10d5   : > { %4639 = vrot.lane.b32.xlu1 %v9265_v19, %s8419_s12 }
0x10d9   : > { %4637 = vrot.lane.b32.xlu1 %v9257_v14, %s8419_s12 }
0x10da   : > { %4403 = vrot.lane.b32.xlu0 %v9255_v12, %s8419_s12 }
0x10de   : > { %4561 = vrot.lane.b32.xlu0 %v9261_v16, %s8419_s12 }
0x10e2   : > { %4559 = vrot.lane.b32.xlu0 %v9253_v11, %s8419_s12  ;;  %s9840_s12 = sld [smem:[#allocation31_spill]] }
0x1145   : > { %v4077_v10 = vpop.xlane.xlu1 %4076 }
0x1146   : > { %8070 = vrcp.f32 %v4077_v10 }
0x1149   : > { %v4080_v31 = vpop.xlane.xlu0 %4079 }
0x114a   : > { %8072 = vrcp.f32 %v4080_v31 }
0x114d   : > { %v4083_v32 = vpop.xlane.xlu1 %4082 }
0x114e   : > { %8074 = vrcp.f32 %v4083_v32 }
0x1150   : > { %v8071_v33 = vpop.eup %8070 }
0x1151   : > { %v4091_v36 = vmul.f32 %v8071_v33, %v8063_v34  ;;  %v4086_v13 = vpop.xlane.xlu0 %4085  ;;  %v4482_v42 = vpop.permute.xlu1 %4481 }
0x1152   : > { %8076 = vrcp.f32 %v4086_v13 }
0x1153   : > { %7627 = vmatmul.mubr.msk.f32.vlgmr.msra.gmra.mrb[34].mxu1 %vm685_vm2, %v4091_v36 }
0x1154   : > { %v8073_v17 = vpop.eup %8072  ;;  %7635 = vmatpush3.msra.mxu1 %v4251_v1  ;;  %7636 = vmatprep.mubr.msk.f32.mxu1 %vm8415_vm1, %v8414_v4 }
0x1155   : > { %v4092_v37 = vmul.f32 %v8073_v17, %v8065_v43  ;;  %7644 = vmatprep.subr.mxu1 %v8414_v4  ;;  %v4404_v39 = vpop.permute.xlu0 %4403  ;;  %v4640_v51 = vpop.permute.xlu1 %4639 }
0x1157   : > { %7632 = vmatmul.mubr.msk.f32.vlgmr.msra.gmra.mrb[54].mxu0 %vm685_vm2, %v4092_v37 }
0x1158   : > { %v8075_v24 = vpop.eup %8074  ;;  %7640 = vmatpush3.msra.mxu0 %v4328_v2  ;;  %7641 = vmatprep.mubr.msk.f32.mxu0 %vm8415_vm1, %v8414_v4 }
0x1159   : > { %v4093_v40 = vmul.f32 %v8075_v24, %v8067_v62  ;;  %7649 = vmatprep.subr.mxu0 %v8414_v4  ;;  %v4562_v26 = vpop.permute.xlu0 %4561  ;;  %v4638_v53 = vpop.permute.xlu1 %4637 }
0x115b   : > { %7637 = vmatmul.mubr.msk.f32.vlgmr.msra.gmra.mrb[40].mxu1 %vm685_vm2, %v4093_v40 }
0x115c   : > { %v8077_v47 = vpop.eup %8076  ;;  %7645 = vmatpush3.xpose.msk.msra.mxu1 %vm685_vm2, %v4406_v9  ;;  %7646 = vmatprep.mubr.msk.f32.mxu1 %vm8415_vm1, %v8414_v4 }
0x115d   : > { %v4094_v50 = vmul.f32 %v8077_v47, %v8069_v0  ;;  %7654 = vmatprep.subr.mxu1 %v8414_v4  ;;  %v4560_v52 = vpop.permute.xlu0 %4559 }
0x115f   : > { %7642 = vmatmul.mubr.msk.f32.vlgmr.msra.gmra.mrb[56].mxu0 %vm685_vm2, %v4094_v50  ;;  %7647 = vmatmul.mubr.msk.f32.vlgmr.msra.gmra.mrb[42].mxu1 %vm685_vm2, %v4404_v39 }
0x1160   : > { %7650 = vmatpush3.xpose.msk.msra.mxu0 %vm685_vm2, %v4484_v3  ;;  %7655 = vmatpush3.xpose.msk.msra.mxu1 %vm685_vm2, %v4562_v26 }
0x1161   : > { %7651 = vmatprep.mubr.msk.f32.mxu0 %vm8415_vm1, %v8414_v4  ;;  %7656 = vmatprep.mubr.msk.f32.mxu1 %vm8415_vm1, %v8414_v4 }
0x1162   : > { %7659 = vmatprep.subr.mxu0 %v8414_v4  ;;  %7664 = vmatprep.subr.mxu1 %v8414_v4 }
0x1163   : > { %7652 = vmatmul.mubr.msk.f32.vlgmr.msra.gmra.mrb[58].mxu0 %vm685_vm2, %v4482_v42  ;;  %7657 = vmatmul.mubr.msk.f32.vlgmr.msra.gmra.mrb[44].mxu1 %vm685_vm2, %v4560_v52 }
0x1164   : > { %7660 = vmatpush3.xpose.msk.msra.mxu0 %vm685_vm2, %v4640_v51  ;;  %7661 = vmatprep.mubr.msk.f32.mxu0 %vm8415_vm1, %v8414_v4 }
0x1165   : > { %7669 = vmatprep.subr.mxu0 %v8414_v4  ;;  %7666 = vmatprep.mubr.msk.f32.mxu1 %vm8415_vm1, %v8414_v4 }
0x1167   : > { %7662 = vmatmul.mubr.msk.f32.vlgmr.msra.gmra.mrb[60].mxu0 %vm685_vm2, %v4638_v53 }
0x1168   : > { %7671 = vmatprep.mubr.msk.f32.mxu0 %vm8415_vm1, %v8414_v4 }
0x1226   : > { %v9389_v22 = vpop.f32.mrb[34].mxu1 }
0x1227   : > { %v7628_v20 = vpop.f32.mrb[35].mxu1 }
0x122a   : > { %v9391_v6 = vpop.f32.mrb[54].mxu0 }
0x122b   : > { %v7633_v54 = vpop.f32.mrb[55].mxu0 }
0x122e   : > { %v9393_v55 = vpop.f32.mrb[40].mxu1 }
0x122f   : > { %v7638_v56 = vpop.f32.mrb[41].mxu1 }
0x1232   : > { %v9395_v57 = vpop.f32.mrb[56].mxu0  ;;  %v4477_v58 = vpop.f32.mrb[42].mxu1 }
0x1233   : > { %v4478_v59 = vadd.f32 %v9306_v30, %v4477_v58  ;;  %v7643_v60 = vpop.f32.mrb[57].mxu0  ;;  %v7648_v25 = vpop.f32.mrb[43].mxu1 }
0x1235   : > { %v4715_v34 = vsel %vm685_vm2, %v4478_v59, -inf }
0x1236   : > { %4716 = vmax.xlane.f32.xlu0 %v4715_v34  ;;  %v4555_v61 = vpop.f32.mrb[58].mxu0  ;;  %v4633_v5 = vpop.f32.mrb[44].mxu1 }
0x1237   : > { %v4556_v7 = vadd.f32 %v9310_v35, %v4555_v61  ;;  %v4634_v43 = vadd.f32 %v9315_v38, %v4633_v5  ;;  %v7653_v44 = vpop.f32.mrb[59].mxu0  ;;  %v7658_v62 = vpop.f32.mrb[45].mxu1 }
0x1239   : > { %v4721_v63 = vsel %vm685_vm2, %v4634_v43, -inf  ;;  %v4718_v0 = vsel %vm685_vm2, %v4556_v7, -inf }
0x123a   : > { %4722 = vmax.xlane.f32.xlu0 %v4721_v63  ;;  %4719 = vmax.xlane.f32.xlu1 %v4718_v0  ;;  %v4711_v49 = vpop.f32.mrb[60].mxu0 }
0x123b   : > { %v4712_v1 = vadd.f32 %v9320_v45, %v4711_v49  ;;  %v7663_v2 = vpop.f32.mrb[61].mxu0 }
0x123d   : > { %v4724_v3 = vsel %vm685_vm2, %v4712_v1, -inf }
0x123e   : > { %4725 = vmax.xlane.f32.xlu0 %v4724_v3 }
0x124b   : > { %4759 = vrot.lane.b32.xlu1 %v9299_v27, %s8418_s11 }
0x124f   : > { %4911 = vrot.lane.b32.xlu1 %v9297_v23, %s8418_s11 }
0x1253   : > { %4987 = vrot.lane.b32.xlu1 %v9301_v28, %s8418_s11 }
0x1254   : > { %4835 = vrot.lane.b32.xlu0 %v9303_v29, %s8418_s11  ;;  %s8324_s11 = sshll.u32 %s8431_s22, 4  ;;  %s8325_s11 = int_to_ptr.vmem [resolvable:$false] %s8324_s11 }
0x1257   : > { %5143 = vrot.lane.b32.xlu1 %v9269_v21, %s8422_s15 }
0x1258   : > { %5065 = vrot.lane.b32.xlu0 %v9263_v18, %s8422_s15 }
0x12c3   : > { %v4717_v9 = vpop.xlane.xlu0 %4716 }
0x12c4   : > { %v4727_v10 = vsub.f32 %v4478_v59, %v4717_v9 }
0x12c6   : > { %v4731_v31 = vmul.f32 1.442695, %v4727_v10 }
0x12c7   : > { %v4723_v32 = vpop.xlane.xlu0 %4722  ;;  %v4720_v33 = vpop.xlane.xlu1 %4719 }
0x12c8   : > { %8078 = vpow2.f32 %v4731_v31  ;;  %v4729_v36 = vsub.f32 %v4634_v43, %v4723_v32  ;;  %v4728_v13 = vsub.f32 %v4556_v7, %v4720_v33 }
0x12ca   : > { %v4735_v17 = vmul.f32 1.442695, %v4729_v36  ;;  %v4733_v37 = vmul.f32 1.442695, %v4728_v13 }
0x12cb   : > { %v4760_v39 = vpop.permute.xlu1 %4759  ;;  %v4726_v24 = vpop.xlane.xlu0 %4725 }
0x12cc   : > { %8080 = vpow2.f32 %v4735_v17  ;;  %v4730_v40 = vsub.f32 %v4712_v1, %v4726_v24  ;;  %7665 = vmatpush3.msra.mxu1 %v4760_v39 }
0x12cd   : > { %8082 = vpow2.f32 %v4733_v37  ;;  %7674 = vmatprep.subr.mxu1 %v8414_v4 }
0x12ce   : > { %v4737_v42 = vmul.f32 1.442695, %v4730_v40 }
0x12cf   : > { %v4836_v47 = vpop.permute.xlu0 %4835  ;;  %v4912_v58 = vpop.permute.xlu1 %4911 }
0x12d0   : > { %8084 = vpow2.f32 %v4737_v42  ;;  %7670 = vmatpush3.msra.mxu0 %v4836_v47 }
0x12d1   : > { %7679 = vmatprep.subr.mxu0 %v8414_v4 }
0x12d2   : > { %v8079_v26 = vpop.eup %8078 }
0x12d3   : > { %v4739_v50 = vsel %vm685_vm2, %v8079_v26, 0.0  ;;  %v4988_v59 = vpop.permute.xlu1 %4987  ;;  %v5066_v34 = vpop.permute.xlu0 %5065 }
0x12d4   : > { %4740 = vadd.xlane.f32.xlu1 %v4739_v50 }
0x12d6   : > { %v8081_v51 = vpop.eup %8080 }
0x12d7   : > { %v8083_v52 = vpop.eup %8082  ;;  %v4745_v53 = vsel %vm685_vm2, %v8081_v51, 0.0  ;;  %v5144_v60 = vpop.permute.xlu1 %5143 }
0x12d8   : > { %4746 = vadd.xlane.f32.xlu1 %v4745_v53  ;;  %v4742_v20 = vsel %vm685_vm2, %v8083_v52, 0.0 }
0x12d9   : > { %4743 = vadd.xlane.f32.xlu0 %v4742_v20 }
0x12da   : > { %v8085_v54 = vpop.eup %8084 }
0x12db   : > { %v4748_v56 = vsel %vm685_vm2, %v8085_v54, 0.0 }
0x12dd   : > { %4749 = vadd.xlane.f32.xlu0 %v4748_v56 }
0x12e9   : > { %5141 = vrot.lane.b32.xlu1 %v9259_v15, %s8422_s15 }
0x12ed   : > { %5299 = vrot.lane.b32.xlu1 %v9265_v19, %s8422_s15 }
0x12f1   : > { %5297 = vrot.lane.b32.xlu1 %v9257_v14, %s8422_s15 }
0x12f3   : > { %5063 = vrot.lane.b32.xlu0 %v9255_v12, %s8422_s15 }
0x12f5   : > { %5419 = vrot.lane.b32.xlu1 %v9299_v27, %s8421_s17 }
0x12f7   : > { %5221 = vrot.lane.b32.xlu0 %v9261_v16, %s8422_s15 }
0x12f9   : > { %5571 = vrot.lane.b32.xlu1 %v9297_v23, %s8421_s17 }
0x12fb   : > { %5219 = vrot.lane.b32.xlu0 %v9253_v11, %s8422_s15 }
0x12fd   : > { %5647 = vrot.lane.b32.xlu1 %v9301_v28, %s8421_s17 }
0x12ff   : > { %5495 = vrot.lane.b32.xlu0 %v9303_v29, %s8421_s17 }
0x1361   : > { %v4741_v25 = vpop.xlane.xlu1 %4740 }
0x1362   : > { %8086 = vrcp.f32 %v4741_v25 }
0x1365   : > { %v4747_v61 = vpop.xlane.xlu1 %4746 }
0x1366   : > { %8088 = vrcp.f32 %v4747_v61  ;;  %v4744_v5 = vpop.xlane.xlu0 %4743 }
0x1367   : > { %8090 = vrcp.f32 %v4744_v5 }
0x1369   : > { %v5142_v44 = vpop.permute.xlu1 %5141 }
0x136a   : > { %v4750_v7 = vpop.xlane.xlu0 %4749 }
0x136b   : > { %8092 = vrcp.f32 %v4750_v7 }
0x136c   : > { %v8087_v43 = vpop.eup %8086 }
0x136d   : > { %v4755_v62 = vmul.f32 %v8087_v43, %v8079_v26  ;;  %v5300_v3 = vpop.permute.xlu1 %5299 }
0x136e   : > { %v5064_v1 = vpop.permute.xlu0 %5063 }
0x136f   : > { %7667 = vmatmul.mubr.msk.f32.vlgmr.msra.gmra.mrb[46].mxu1 %vm685_vm2, %v4755_v62 }
0x1370   : > { %v8089_v63 = vpop.eup %8088  ;;  %7675 = vmatpush3.msra.mxu1 %v4912_v58  ;;  %7676 = vmatprep.mubr.msk.f32.mxu1 %vm8415_vm1, %v8414_v4 }
0x1371   : > { %v8091_v0 = vpop.eup %8090  ;;  %v4757_v49 = vmul.f32 %v8089_v63, %v8081_v51  ;;  %7684 = vmatprep.subr.mxu1 %v8414_v4  ;;  %v5298_v32 = vpop.permute.xlu1 %5297 }
0x1372   : > { %v4756_v2 = vmul.f32 %v8091_v0, %v8083_v52  ;;  %v5222_v31 = vpop.permute.xlu0 %5221 }
0x1373   : > { %7677 = vmatmul.mubr.msk.f32.vlgmr.msra.gmra.mrb[48].mxu1 %vm685_vm2, %v4757_v49 }
0x1374   : > { %7672 = vmatmul.mubr.msk.f32.vlgmr.msra.gmra.mrb[62].mxu0 %vm685_vm2, %v4756_v2  ;;  %7686 = vmatprep.mubr.msk.f32.mxu1 %vm8415_vm1, %v8414_v4 }
0x1375   : > { %v8093_v9 = vpop.eup %8092  ;;  %7680 = vmatpush3.msra.mxu0 %v4988_v59  ;;  %7681 = vmatprep.mubr.msk.f32.mxu0 %vm8415_vm1, %v8414_v4  ;;  %v5420_v36 = vpop.permute.xlu1 %5419 }
0x1376   : > { %v4758_v10 = vmul.f32 %v8093_v9, %v8085_v54  ;;  %7689 = vmatprep.subr.mxu0 %v8414_v4  ;;  %v5220_v33 = vpop.permute.xlu0 %5219 }
0x1377   : > { %7685 = vmatpush3.xpose.msk.msra.mxu1 %vm685_vm2, %v5066_v34 }
0x1378   : > { %7682 = vmatmul.mubr.msk.f32.vlgmr.msra.gmra.mrb[64].mxu0 %vm685_vm2, %v4758_v10  ;;  %7694 = vmatprep.subr.mxu1 %v8414_v4 }
0x1379   : > { %7691 = vmatprep.mubr.msk.f32.mxu0 %vm8415_vm1, %v8414_v4  ;;  %v5572_v63 = vpop.permute.xlu1 %5571 }
0x137a   : > { %7687 = vmatmul.mubr.msk.f32.vlgmr.msra.gmra.mrb[50].mxu1 %vm685_vm2, %v5064_v1  ;;  %v5496_v13 = vpop.permute.xlu0 %5495 }
0x137b   : > { %7695 = vmatpush3.xpose.msk.msra.mxu1 %vm685_vm2, %v5222_v31  ;;  %7696 = vmatprep.mubr.msk.f32.mxu1 %vm8415_vm1, %v8414_v4 }
0x137c   : > { %7690 = vmatpush3.xpose.msk.msra.mxu0 %vm685_vm2, %v5144_v60  ;;  %7704 = vmatprep.subr.mxu1 %v8414_v4 }
0x137d   : > { %7699 = vmatprep.subr.mxu0 %v8414_v4  ;;  %v5648_v49 = vpop.permute.xlu1 %5647 }
0x137e   : > { %7697 = vmatmul.mubr.msk.f32.vlgmr.msra.gmra.mrb[52].mxu1 %vm685_vm2, %v5220_v33 }
0x137f   : > { %7692 = vmatmul.mubr.msk.f32.vlgmr.msra.gmra.mrb[66].mxu0 %vm685_vm2, %v5142_v44  ;;  %7705 = vmatpush3.msra.mxu1 %v5420_v36 }
0x1380   : > { %7700 = vmatpush3.xpose.msk.msra.mxu0 %vm685_vm2, %v5300_v3  ;;  %7701 = vmatprep.mubr.msk.f32.mxu0 %vm8415_vm1, %v8414_v4 }
0x1381   : > { %7709 = vmatprep.subr.mxu0 %v8414_v4  ;;  %7706 = vmatprep.mubr.msk.f32.mxu1 %vm8415_vm1, %v8414_v4 }
0x1382   : > { %7714 = vmatprep.subr.mxu1 %v8414_v4 }
0x1383   : > { %7702 = vmatmul.mubr.msk.f32.vlgmr.msra.gmra.mrb[68].mxu0 %vm685_vm2, %v5298_v32 }
0x1384   : > { %7710 = vmatpush3.msra.mxu0 %v5496_v13  ;;  %7711 = vmatprep.mubr.msk.f32.mxu0 %vm8415_vm1, %v8414_v4 }
0x1385   : > { %7719 = vmatprep.subr.mxu0 %v8414_v4 }
0x1442   : > { %v9479_v17 = vpop.f32.mrb[46].mxu1 }
0x1443   : > { %v7668_v37 = vpop.f32.mrb[47].mxu1 }
0x1446   : > { %v9481_v39 = vpop.f32.mrb[48].mxu1 }
0x1447   : > { %v9483_v24 = vpop.f32.mrb[62].mxu0  ;;  %v7678_v40 = vpop.f32.mrb[49].mxu1 }
0x1448   : > { %v7934_v42 = vpack.i.bf16 %v9483_v24, %v9479_v17  ;;  %v7673_v47 = vpop.f32.mrb[63].mxu0 }
0x144b   : > { %v9487_v26 = vpop.f32.mrb[64].mxu0 }
0x144c   : > { %v7939_v50 = vpack.i.bf16 %v9487_v26, %v9481_v39  ;;  %v7683_v51 = vpop.f32.mrb[65].mxu0 }
0x144d   : > { %v5137_v52 = vpop.f32.mrb[50].mxu1 }
0x144e   : > { %v5138_v53 = vadd.f32 %v9306_v30, %v5137_v52  ;;  %v7688_v20 = vpop.f32.mrb[51].mxu1 }
0x1450   : > { %v5375_v54 = vsel %vm685_vm2, %v5138_v53, -inf }
0x1451   : > { %5376 = vmax.xlane.f32.xlu0 %v5375_v54  ;;  %v5293_v56 = vpop.f32.mrb[52].mxu1 }
0x1452   : > { %v5215_v58 = vpop.f32.mrb[66].mxu0  ;;  %v5294_v59 = vadd.f32 %v9315_v38, %v5293_v56  ;;  %v7698_v60 = vpop.f32.mrb[53].mxu1 }
0x1453   : > { %v5216_v25 = vadd.f32 %v9310_v35, %v5215_v58  ;;  %v7693_v34 = vpop.f32.mrb[67].mxu0 }
0x1454   : > { %v5381_v61 = vsel %vm685_vm2, %v5294_v59, -inf }
0x1455   : > { %5382 = vmax.xlane.f32.xlu0 %v5381_v61  ;;  %v5378_v5 = vsel %vm685_vm2, %v5216_v25, -inf }
0x1456   : > { %5379 = vmax.xlane.f32.xlu1 %v5378_v5  ;;  %v5371_v7 = vpop.f32.mrb[68].mxu0 }
0x1457   : > { %v5372_v43 = vadd.f32 %v9320_v45, %v5371_v7  ;;  %v7703_v44 = vpop.f32.mrb[69].mxu0 }
0x1459   : > { %v5384_v62 = vsel %vm685_vm2, %v5372_v43, -inf }
0x145a   : > { %5385 = vmax.xlane.f32.xlu0 %v5384_v62 }
0x1467   : > { %5803 = vrot.lane.b32.xlu1 %v9269_v21, %s8425_s28 }
0x1470   : > { %5725 = vrot.lane.b32.xlu0 %v9263_v18, %s8425_s28 }
0x14de   : > { %v5377_v0 = vpop.xlane.xlu0 %5376 }
0x14df   : > { %v5387_v1 = vsub.f32 %v5138_v53, %v5377_v0 }
0x14e1   : > { %v5391_v2 = vmul.f32 1.442695, %v5387_v1 }
0x14e2   : > { %v5383_v18 = vpop.xlane.xlu0 %5382 }
0x14e3   : > { %8094 = vpow2.f32 %v5391_v2  ;;  %v5380_v3 = vpop.xlane.xlu1 %5379  ;;  %v5389_v36 = vsub.f32 %v5294_v59, %v5383_v18 }
0x14e4   : > { %v5388_v9 = vsub.f32 %v5216_v25, %v5380_v3 }
0x14e5   : > { %v5395_v37 = vmul.f32 1.442695, %v5389_v36 }
0x14e6   : > { %v5393_v10 = vmul.f32 1.442695, %v5388_v9 }
0x14e7   : > { %v5386_v13 = vpop.xlane.xlu0 %5385 }
0x14e8   : > { %8096 = vpow2.f32 %v5393_v10  ;;  %v5390_v40 = vsub.f32 %v5372_v43, %v5386_v13 }
0x14e9   : > { %8098 = vpow2.f32 %v5395_v37 }
0x14ea   : > { %v5397_v47 = vmul.f32 1.442695, %v5390_v40 }
0x14eb   : > { %v5726_v54 = vpop.permute.xlu0 %5725 }
0x14ec   : > { %8100 = vpow2.f32 %v5397_v47 }
0x14ed   : > { %v8095_v31 = vpop.eup %8094 }
0x14ee   : > { %v5399_v32 = vsel %vm685_vm2, %v8095_v31, 0.0 }
0x14ef   : > { %5400 = vadd.xlane.f32.xlu1 %v5399_v32 }
0x14f2   : > { %v8097_v33 = vpop.eup %8096 }
0x14f3   : > { %v5402_v21 = vsel %vm685_vm2, %v8097_v33, 0.0  ;;  %v8099_v51 = vpop.eup %8098 }
0x14f4   : > { %5403 = vadd.xlane.f32.xlu0 %v5402_v21  ;;  %v5405_v52 = vsel %vm685_vm2, %v8099_v51, 0.0 }
0x14f6   : > { %v8101_v53 = vpop.eup %8100 }
0x14f7   : > { %v5408_v20 = vsel %vm685_vm2, %v8101_v53, 0.0 }
0x1500   : > { %5801 = vrot.lane.b32.xlu1 %v9259_v15, %s8425_s28 }
0x150a   : > { %5723 = vrot.lane.b32.xlu0 %v9255_v12, %s8425_s28  ;;  %v5804_v12 = vpop.permute.xlu1 %5803 }
0x1524   : > { %5406 = vadd.xlane.f32.xlu1 %v5405_v52 }
0x1529   : > { %5409 = vadd.xlane.f32.xlu0 %v5408_v20 }
0x1535   : > { %5959 = vrot.lane.b32.xlu1 %v9265_v19, %s8425_s28 }
0x1539   : > { %5957 = vrot.lane.b32.xlu1 %v9257_v14, %s8425_s28 }
0x153f   : > { %5881 = vrot.lane.b32.xlu0 %v9261_v16, %s8425_s28 }
0x1543   : > { %5879 = vrot.lane.b32.xlu0 %v9253_v11, %s8425_s28 }
0x157c   : > { %v5401_v15 = vpop.xlane.xlu1 %5400 }
0x157d   : > { %8102 = vrcp.f32 %v5401_v15 }
0x1580   : > { %v5802_v11 = vpop.permute.xlu1 %5801 }
0x1581   : > { %v5404_v56 = vpop.xlane.xlu0 %5403 }
0x1582   : > { %8104 = vrcp.f32 %v5404_v56 }
0x1585   : > { %v5724_v60 = vpop.permute.xlu0 %5723 }
0x1587   : > { %v8103_v58 = vpop.eup %8102 }
0x1588   : > { %v5415_v59 = vmul.f32 %v8103_v58, %v8095_v31 }
0x158a   : > { %7707 = vmatmul.mubr.msk.f32.vlgmr.msra.gmra.mrb[54].mxu1 %vm685_vm2, %v5415_v59 }
0x158b   : > { %7715 = vmatpush3.msra.mxu1 %v5572_v63  ;;  %7716 = vmatprep.mubr.msk.f32.mxu1 %vm8415_vm1, %v8414_v4 }
0x158c   : > { %v8105_v14 = vpop.eup %8104  ;;  %7724 = vmatprep.subr.mxu1 %v8414_v4 }
0x158d   : > { %v5416_v16 = vmul.f32 %v8105_v14, %v8097_v33 }
0x158f   : > { %7712 = vmatmul.mubr.msk.f32.vlgmr.msra.gmra.mrb[70].mxu0 %vm685_vm2, %v5416_v16 }
0x1590   : > { %7720 = vmatpush3.msra.mxu0 %v5648_v49  ;;  %7721 = vmatprep.mubr.msk.f32.mxu0 %vm8415_vm1, %v8414_v4 }
0x1591   : > { %7729 = vmatprep.subr.mxu0 %v8414_v4 }
0x15b1   : > { %v5407_v19 = vpop.xlane.xlu1 %5406 }
0x15b2   : > { %8106 = vrcp.f32 %v5407_v19 }
0x15b5   : > { %v5960_v44 = vpop.permute.xlu1 %5959 }
0x15b6   : > { %v5410_v25 = vpop.xlane.xlu0 %5409 }
0x15b7   : > { %8108 = vrcp.f32 %v5410_v25 }
0x15b9   : > { %v5958_v63 = vpop.permute.xlu1 %5957 }
0x15ba   : > { %v5882_v5 = vpop.permute.xlu0 %5881 }
0x15bc   : > { %v8107_v34 = vpop.eup %8106 }
0x15bd   : > { %v5417_v61 = vmul.f32 %v8107_v34, %v8099_v51 }
0x15be   : > { %v5880_v62 = vpop.permute.xlu0 %5879 }
0x15bf   : > { %7717 = vmatmul.mubr.msk.f32.vlgmr.msra.gmra.mrb[56].mxu1 %vm685_vm2, %v5417_v61 }
0x15c0   : > { %7725 = vmatpush3.xpose.msk.msra.mxu1 %vm685_vm2, %v5726_v54  ;;  %7726 = vmatprep.mubr.msk.f32.mxu1 %vm8415_vm1, %v8414_v4 }
0x15c1   : > { %v8109_v7 = vpop.eup %8108  ;;  %7734 = vmatprep.subr.mxu1 %v8414_v4 }
0x15c2   : > { %v5418_v43 = vmul.f32 %v8109_v7, %v8101_v53 }
0x15c3   : > { %7727 = vmatmul.mubr.msk.f32.vlgmr.msra.gmra.mrb[58].mxu1 %vm685_vm2, %v5724_v60 }
0x15c4   : > { %7722 = vmatmul.mubr.msk.f32.vlgmr.msra.gmra.mrb[72].mxu0 %vm685_vm2, %v5418_v43  ;;  %7735 = vmatpush3.xpose.msk.msra.mxu1 %vm685_vm2, %v5882_v5 }
0x15c5   : > { %7730 = vmatpush3.xpose.msk.msra.mxu0 %vm685_vm2, %v5804_v12  ;;  %7731 = vmatprep.mubr.msk.f32.mxu0 %vm8415_vm1, %v8414_v4 }
0x15c6   : > { %7736 = vmatprep.mubr.msk.f32.mxu1 %vm8415_vm1, %v8414_v4  ;;  %7739 = vmatprep.subr.mxu0 %v8414_v4 }
0x15c7   : > { %7737 = vmatmul.mubr.msk.f32.vlgmr.msra.gmra.mrb[60].mxu1 %vm685_vm2, %v5880_v62  ;;  %7744 = vmatprep.subr.mxu1 %v8414_v4 }
0x15c8   : > { %7732 = vmatmul.mubr.msk.f32.vlgmr.msra.gmra.mrb[74].mxu0 %vm685_vm2, %v5802_v11  ;;  %7746 = vmatprep.mubr.msk.f32.mxu1 %vm8415_vm1, %v8414_v4 }
0x15c9   : > { %7740 = vmatpush3.xpose.msk.msra.mxu0 %vm685_vm2, %v5960_v44  ;;  %7741 = vmatprep.mubr.msk.f32.mxu0 %vm8415_vm1, %v8414_v4 }
0x15ca   : > { %7749 = vmatprep.subr.mxu0 %v8414_v4 }
0x15cc   : > { %7742 = vmatmul.mubr.msk.f32.vlgmr.msra.gmra.mrb[76].mxu0 %vm685_vm2, %v5958_v63 }
0x15cd   : > { %7751 = vmatprep.mubr.msk.f32.mxu0 %vm8415_vm1, %v8414_v4 }
0x165d   : > { %v9553_v0 = vpop.f32.mrb[54].mxu1 }
0x165e   : > { %v7708_v49 = vpop.f32.mrb[55].mxu1 }
0x1662   : > { %v9555_v1 = vpop.f32.mrb[70].mxu0 }
0x1663   : > { %v7944_v2 = vpack.i.bf16 %v9555_v1, %v9553_v0  ;;  %v7713_v3 = vpop.f32.mrb[71].mxu0 }
0x1664   : > { %v7976_v3 = vld [vmem:[#allocation10] sm:$0xff]  }
0x1692   : > { %v9559_v9 = vpop.f32.mrb[56].mxu1 }
0x1693   : > { %v7718_v10 = vpop.f32.mrb[57].mxu1 }
0x1696   : > { %v5797_v31 = vpop.f32.mrb[58].mxu1 }
0x1697   : > { %v5719_v32 = vpop.f32.mrb[72].mxu0  ;;  %v5798_v33 = vadd.f32 %v9306_v30, %v5797_v31  ;;  %v7728_v21 = vpop.f32.mrb[59].mxu1 }
0x1698   : > { %v7949_v18 = vpack.i.bf16 %v5719_v32, %v9559_v9  ;;  %v7723_v36 = vpop.f32.mrb[73].mxu0 }
0x1699   : > { %v6035_v13 = vsel %vm685_vm2, %v5798_v33, -inf }
0x169a   : > { %6036 = vmax.xlane.f32.xlu0 %v6035_v13  ;;  %v5953_v37 = vpop.f32.mrb[60].mxu1 }
0x169b   : > { %v5875_v40 = vpop.f32.mrb[74].mxu0  ;;  %v5954_v47 = vadd.f32 %v9315_v38, %v5953_v37  ;;  %v7738_v51 = vpop.f32.mrb[61].mxu1  ;;  %v7977_v37 = vld [vmem:[#allocation10 + $0x8] sm:$0xff]  }
0x169c   : > { %v5876_v52 = vadd.f32 %v9310_v35, %v5875_v40  ;;  %v7733_v53 = vpop.f32.mrb[75].mxu0 }
0x169d   : > { %v6041_v20 = vsel %vm685_vm2, %v5954_v47, -inf }
0x169e   : > { %6042 = vmax.xlane.f32.xlu0 %v6041_v20  ;;  %v6038_v30 = vsel %vm685_vm2, %v5876_v52, -inf }
0x169f   : > { %6039 = vmax.xlane.f32.xlu1 %v6038_v30  ;;  %v6031_v12 = vpop.f32.mrb[76].mxu0 }
0x16a0   : > { %v6032_v15 = vadd.f32 %v9320_v45, %v6031_v12  ;;  %v7743_v54 = vpop.f32.mrb[77].mxu0 }
0x16a2   : > { %v6044_v56 = vsel %vm685_vm2, %v6032_v15, -inf }
0x16a3   : > { %6045 = vmax.xlane.f32.xlu0 %v6044_v56 }
0x16b0   : > { %6079 = vrot.lane.b32.xlu1 %v9299_v27, %s8424_s27 }
0x1727   : > { %v6037_v38 = vpop.xlane.xlu0 %6036 }
0x1728   : > { %v6047_v58 = vsub.f32 %v5798_v33, %v6037_v38 }
0x172a   : > { %v6051_v35 = vmul.f32 1.442695, %v6047_v58 }
0x172b   : > { %v6043_v59 = vpop.xlane.xlu0 %6042 }
0x172c   : > { %8110 = vpow2.f32 %v6051_v35  ;;  %v6049_v14 = vsub.f32 %v5954_v47, %v6043_v59  ;;  %v6040_v16 = vpop.xlane.xlu1 %6039 }
0x172d   : > { %v6048_v11 = vsub.f32 %v5876_v52, %v6040_v16 }
0x172e   : > { %v6055_v19 = vmul.f32 1.442695, %v6049_v14 }
0x172f   : > { %v6053_v60 = vmul.f32 1.442695, %v6048_v11 }
0x1730   : > { %8112 = vpow2.f32 %v6055_v19  ;;  %v6080_v25 = vpop.permute.xlu1 %6079  ;;  %v6046_v45 = vpop.xlane.xlu0 %6045 }
0x1731   : > { %8114 = vpow2.f32 %v6053_v60  ;;  %v6050_v34 = vsub.f32 %v6032_v15, %v6046_v45  ;;  %7745 = vmatpush3.msra.mxu1 %v6080_v25 }
0x1732   : > { %7754 = vmatprep.subr.mxu1 %v8414_v4 }
0x1733   : > { %v6057_v61 = vmul.f32 1.442695, %v6050_v34 }
0x1735   : > { %8116 = vpow2.f32 %v6057_v61 }
0x1736   : > { %v8111_v27 = vpop.eup %8110 }
0x1737   : > { %v6059_v5 = vsel %vm685_vm2, %v8111_v27, 0.0 }
0x1738   : > { %6060 = vadd.xlane.f32.xlu1 %v6059_v5 }
0x173a   : > { %v8113_v7 = vpop.eup %8112 }
0x173b   : > { %v8115_v43 = vpop.eup %8114  ;;  %v6065_v44 = vsel %vm685_vm2, %v8113_v7, 0.0 }
0x173c   : > { %6066 = vadd.xlane.f32.xlu1 %v6065_v44  ;;  %v6062_v62 = vsel %vm685_vm2, %v8115_v43, 0.0 }
0x173d   : > { %6063 = vadd.xlane.f32.xlu0 %v6062_v62 }
0x173f   : > { %v8117_v63 = vpop.eup %8116 }
0x1740   : > { %v6068_v49 = vsel %vm685_vm2, %v8117_v63, 0.0 }
0x1741   : > { %6069 = vadd.xlane.f32.xlu0 %v6068_v49 }
0x174d   : > { %6231 = vrot.lane.b32.xlu1 %v9297_v23, %s8424_s27 }
0x1751   : > { %6307 = vrot.lane.b32.xlu1 %v9301_v28, %s8424_s27 }
0x1755   : > { %7935 = vrot.lane.b32.xlu1 %v7934_v42, %s8427_s13 }
0x1757   : > { %6155 = vrot.lane.b32.xlu0 %v9303_v29, %s8424_s27 }
0x1759   : > { %7945 = vrot.lane.b32.xlu1 %v7944_v2, %s8428_s25 }
0x175b   : > { %6463 = vrot.lane.b32.xlu0 %v7976_v3, %s8429_s10 }
0x175f   : > { %7940 = vrot.lane.b32.xlu0 %v7939_v50, %s8427_s13 }
0x1763   : > { %7950 = vrot.lane.b32.xlu0 %v7949_v18, %s8428_s25  ;;  %s7083_s25 = sshll.u32 %s8787_s23, 5 }
0x1764   : > { %s566_s16 = scalar_lea.vmem [#allocation13], %s7083_s25 }
0x1765   : > { %s6889_s1 = sshll.u32 %s566_s16, 4  ;;  %s9714_s1 = int_to_ptr.vmem [resolvable:$true] %s6889_s1 }
0x1766   : > { %s8320_s9 = scalar_lea.vmem %s9714_s1, 512  ;;  %p8327_p13 = scmp.lt.s32.totalorder %s9714_s1, %s8325_s11 }
0x1767   : > { %6465 = vrot.lane.b32.xlu0 %v7977_v37, %s8429_s10  ;;  %p8321_p1 = scmp.ne.s32.totalorder %s9714_s1, %s8320_s9 }
0x1769   : > { %p8322_p11 = pnand %p8321_p1, %p9843_p5 }
0x176b   : > { %p8323_p4 = pneg %p8322_p11 }
0x17c5   : > { %v6061_v23 = vpop.xlane.xlu1 %6060 }
0x17c6   : > { %8118 = vrcp.f32 %v6061_v23  ;;  %v7211_v23 = vld [vmem:[%s9838_s26 + $0x3] ss:$0 sm:$0xff] }
0x17c9   : > { %v6067_v28 = vpop.xlane.xlu1 %6066 }
0x17ca   : > { %8120 = vrcp.f32 %v6067_v28  ;;  %v6064_v29 = vpop.xlane.xlu0 %6063 }
0x17cb   : > { %8122 = vrcp.f32 %v6064_v29 }
0x17cd   : > { %v6232_v0 = vpop.permute.xlu1 %6231 }
0x17ce   : > { %v6070_v17 = vpop.xlane.xlu0 %6069 }
0x17cf   : > { %8124 = vrcp.f32 %v6070_v17 }
0x17d0   : > { %v8119_v24 = vpop.eup %8118 }
0x17d1   : > { %v6075_v42 = vmul.f32 %v8119_v24, %v8111_v27  ;;  %v6308_v10 = vpop.permute.xlu1 %6307 }
0x17d2   : > { %v6156_v1 = vpop.permute.xlu0 %6155 }
0x17d3   : > { %7750 = vmatpush3.msra.mxu0 %v6156_v1  ;;  %7747 = vmatmul.mubr.msk.f32.vlgmr.msra.gmra.mrb[62].mxu1 %vm685_vm2, %v6075_v42 }
0x17d4   : > { %v8121_v2 = vpop.eup %8120  ;;  %7755 = vmatpush3.msra.mxu1 %v6232_v0  ;;  %7756 = vmatprep.mubr.msk.f32.mxu1 %vm8415_vm1, %v8414_v4 }
0x17d5   : > { %v8123_v39 = vpop.eup %8122  ;;  %v6077_v26 = vmul.f32 %v8121_v2, %v8113_v7  ;;  %7759 = vmatprep.subr.mxu0 %v8414_v4 }
0x17d6   : > { %v6076_v50 = vmul.f32 %v8123_v39, %v8115_v43  ;;  %v6464_v9 = vpop.permute.xlu0 %6463 }
0x17d7   : > { %7757 = vmatmul.mubr.msk.f32.vlgmr.msra.gmra.mrb[64].mxu1 %vm685_vm2, %v6077_v26  ;;  %7764 = vmatprep.subr.bf16.mxu1 %v6464_v9 }
0x17d8   : > { %7752 = vmatmul.mubr.msk.f32.vlgmr.msra.gmra.mrb[78].mxu0 %vm685_vm2, %v6076_v50  ;;  %7765 = vmatpush3.bf16.msra.mxu1 %v6464_v9 }
0x17d9   : > { %v8125_v31 = vpop.eup %8124  ;;  %7760 = vmatpush3.msra.mxu0 %v6308_v10  ;;  %7761 = vmatprep.mubr.msk.f32.mxu0 %vm8415_vm1, %v8414_v4 }
0x17da   : > { %v6078_v32 = vmul.f32 %v8125_v31, %v8117_v63  ;;  %v7941_v33 = vpop.permute.xlu0 %7940 }
0x17db   : > { %v7943_v21 = vunpack.i.h.bf16 %v7941_v33  ;;  %v7942_v18 = vunpack.i.l.bf16 %v7941_v33 }
0x17dc   : > { %7762 = vmatmul.mubr.msk.f32.vlgmr.msra.gmra.mrb[80].mxu0 %vm685_vm2, %v6078_v32 }
0x17dd   : > { %v6434_v36 = vsel %vm685_vm2, %v9395_v57, %v7943_v21  ;;  %v6433_v13 = vsel %vm685_vm2, %v9393_v55, %v7942_v18  ;;  %v7936_v55 = vpop.permute.xlu1 %7935 }
0x17de   : > { %v7951_v40 = vpop.permute.xlu0 %7950  ;;  %v7938_v38 = vunpack.i.h.bf16 %v7936_v55  ;;  %v7937_v58 = vunpack.i.l.bf16 %v7936_v55  ;;  %v7979_v55 = vld [vmem:[#allocation11 + $0x8] sm:$0xff]  }
0x17df   : > { %v7953_v34 = vunpack.i.h.bf16 %v7951_v40  ;;  %v7952_v61 = vunpack.i.l.bf16 %v7951_v40 }
0x17e0   : > { %v6432_v16 = vsel %vm685_vm2, %v9391_v6, %v7938_v38  ;;  %v6431_v11 = vsel %vm685_vm2, %v9389_v22, %v7937_v58  ;;  %v7981_v38 = vld [vmem:[%s9839_s30 + $0x8] sm:$0xff]   ;;  %v7982_v58 = vld [vmem:[%s9839_s30 + $0x10] sm:$0xff]  }
0x17e1   : > { %v7946_v56 = vpop.permute.xlu1 %7945  ;;  %v6437_v6 = vsel %vm3371_vm3, %v6433_v13, %v7952_v61  ;;  %v6438_v22 = vsel %vm3371_vm3, %v6434_v36, %v7953_v34 }
0x17e2   : > { %v6466_v47 = vpop.permute.xlu0 %6465  ;;  %v7948_v35 = vunpack.i.h.bf16 %v7946_v56  ;;  %v7947_v59 = vunpack.i.l.bf16 %v7946_v56  ;;  %v7980_v56 = vld [vmem:[%s9839_s30] sm:$0xff]  }
0x17e3   : > { %7766 = vmatprep.subr.bf16.mxu1 %v6466_v47 }
0x17e4   : > { %7767 = vmatpush3.bf16.msra.mxu1 %v6466_v47  ;;  %v6435_v25 = vsel %vm3371_vm3, %v6431_v11, %v7947_v59  ;;  %v6436_v45 = vsel %vm3371_vm3, %v6432_v16, %v7948_v35  ;;  %v7983_v35 = vld [vmem:[%s9839_s30 + $0x18] sm:$0xff]   ;;  %v7984_v59 = vld [vmem:[%s9839_s30 + $0x20] sm:$0xff]  }
0x17e5   : > { %7780 = vmatprep.subr.bf16.mxu1 %v7980_v56 }
0x18a6   : > { %v6151_v51 = vpop.f32.mrb[62].mxu1 }
0x18a7   : > { %v7748_v4 = vpop.f32.mrb[63].mxu1 }
0x18aa   : > { %v6303_v52 = vpop.f32.mrb[64].mxu1 }
0x18ab   : > { %v6227_v53 = vpop.f32.mrb[78].mxu0  ;;  %v7758_v20 = vpop.f32.mrb[65].mxu1 }
0x18ac   : > { %v7954_v30 = vpack.i.bf16 %v6227_v53, %v6151_v51  ;;  %v7753_v12 = vpop.f32.mrb[79].mxu0 }
0x18ae   : > { %7955 = vrot.lane.b32.xlu1 %v7954_v30, %s8430_s24 }
0x18af   : > { %v6379_v57 = vpop.f32.mrb[80].mxu0 }
0x18b0   : > { %v7959_v15 = vpack.i.bf16 %v6379_v57, %v6303_v52  ;;  %v7763_v54 = vpop.f32.mrb[81].mxu0 }
0x18b1   : > { %v7978_v54 = vld [vmem:[#allocation11] sm:$0xff]  }
0x18b2   : > { %7960 = vrot.lane.b32.xlu1 %v7959_v15, %s8430_s24  ;;  %7772 = vmatprep.subr.bf16.mxu0 %v7978_v54 }
0x18b3   : > { %7773 = vmatpush3.bf16.msra.mxu0 %v7978_v54 }
0x18b4   : > { %7774 = vmatprep.subr.bf16.mxu0 %v7979_v55 }
0x18b7   : > { %7775 = vmatpush3.bf16.msra.mxu0 %v7979_v55 }
0x1920   : > { %v7956_v14 = vpop.permute.xlu1 %7955 }
0x1921   : > { %v7958_v19 = vunpack.i.h.bf16 %v7956_v14  ;;  %v7957_v60 = vunpack.i.l.bf16 %v7956_v14  ;;  %v7985_v14 = vld [vmem:[%s9839_s30 + $0x28] sm:$0xff]  }
0x1923   : > { %v6440_v27 = vsel %vm3376_vm4, %v6436_v45, %v7958_v19  ;;  %v6439_v5 = vsel %vm3376_vm4, %v6435_v25, %v7957_v60 }
0x1924   : > { %v6443_v7 = vpack.c.bf16 %v6440_v27, %v6439_v5  ;;  %v7961_v43 = vpop.permute.xlu1 %7960 }
0x1925   : > { %v7963_v44 = vunpack.i.h.bf16 %v7961_v43  ;;  %v7962_v62 = vunpack.i.l.bf16 %v7961_v43 }
0x1926   : > { %7768 = vmatprep.mubr.msk.bf16.mxu1 %vm626_vm0, %v6443_v7 }
0x1927   : > { %v6442_v63 = vsel %vm3376_vm4, %v6438_v22, %v7963_v44  ;;  %v6441_v49 = vsel %vm3376_vm4, %v6437_v6, %v7962_v62  ;;  %v7216_v62 = vld [vmem:[%s9838_s26 + $0x4] ss:$0 sm:$0xff] }
0x1928   : > { %v6444_v3 = vpack.c.bf16 %v6442_v63, %v6441_v49 }
0x192a   : > { %7769 = vmatmul.mubr.msk.bf16.vlgmr.msra.gmra.mrb[68].mxu1 %vm626_vm0, %v6444_v3 }
0x192b   : > { %7781 = vmatpush3.bf16.msra.mxu1 %v7980_v56 }
0x192c   : > { %7782 = vmatprep.subr.bf16.mxu1 %v7981_v38 }
0x192f   : > { %7783 = vmatpush3.bf16.msra.mxu1 %v7981_v38 }
0x1930   : > { %7784 = vmatprep.subr.bf16.mxu1 %v7982_v58 }
0x1933   : > { %7785 = vmatpush3.bf16.msra.mxu1 %v7982_v58 }
0x1934   : > { %7786 = vmatprep.subr.bf16.mxu1 %v7983_v35 }
0x1937   : > { %7787 = vmatpush3.bf16.msra.mxu1 %v7983_v35 }
0x1938   : > { %7788 = vmatprep.subr.bf16.mxu1 %v7984_v59 }
0x193b   : > { %7789 = vmatpush3.bf16.msra.mxu1 %v7984_v59 }
0x193c   : > { %7790 = vmatprep.subr.bf16.mxu1 %v7985_v14 }
0x193f   : > { %7791 = vmatpush3.bf16.msra.mxu1 %v7985_v14 }
0x19fd   : > { %v7770_v28 = vpop.f32.mrb[68].mxu1 }
0x19fe   : > { %v6509_v29 = vpop.f32.mrb[69].mxu1  ;;  %v6518_v17 = vadd.f32 %v7770_v28, %v7211_v23 }
0x19ff   : > { %v6510_v24 = vadd.f32 %v7211_v23, %v6509_v29  ;;  %v7771_v42 = vpop.f32.mrb[70].mxu1 }
0x1a00   : > { %v6512_v0 = vpop.f32.mrb[71].mxu1  ;;  %v6526_v39 = vadd.f32 %v6518_v17, %v9231_v46  ;;  %v6521_v26 = vadd.f32 %v7771_v42, %v7211_v23 }
0x1a01   : > { %v6524_v1 = vadd.f32 %v6510_v24, %v9224_v8  ;;  %v6513_v2 = vadd.f32 %v7211_v23, %v6512_v0  ;;  %v7217_v23 = vld [vmem:[%s9838_s26 + $0x5] ss:$0 sm:$0xff] }
0x1a02   : > { %v6527_v31 = vadd.f32 %v6521_v26, %v9233_v48  ;;  %v6534_v32 = vsel %vm626_vm0, %v6526_v39, 0.0 }
0x1a03   : > { %v6525_v50 = vadd.f32 %v6513_v2, %v9226_v41  ;;  %v6528_v9 = vsel %vm626_vm0, %v6524_v1, 0.0 }
0x1a04   : > { %6529 = vadd.xlane.f32.xlu0 %v6528_v9  ;;  %v6537_v33 = vsel %vm626_vm0, %v6527_v31, 0.0 }
0x1a05   : > { %v6531_v10 = vsel %vm626_vm0, %v6525_v50, 0.0 }
0x1a06   : > { %6532 = vadd.xlane.f32.xlu1 %v6531_v10  ;;  %v7986_v10 = vld [vmem:[%s9839_s30 + $0x30] sm:$0xff]  }
0x1a07   : > { %7792 = vmatprep.subr.bf16.mxu1 %v7986_v10 }
0x1a08   : > { %6535 = vadd.xlane.f32.xlu0 %v6534_v32  ;;  %7793 = vmatpush3.bf16.msra.mxu1 %v7986_v10  ;;  %v7218_v32 = vld [vmem:[%s9840_s12] ss:$0 sm:$0xff]  ;;  %s8326_s12 = scalar_lea.vmem %s8325_s11, 1024 }
0x1a09   : > { %p8328_p7 = scmp.lt.s32.totalorder %s8326_s12, %s8320_s9 }
0x1a0b   : > { %p8329_p0 = por %p8328_p7, %p8327_p13 }
0x1a0c   : > { %6538 = vadd.xlane.f32.xlu0 %v6537_v33 }
0x1a0d   : > { %p8330_p12 = pnand %p8329_p0, %p8323_p4 }
0x1a91   : > { %v6530_v8 = vpop.xlane.xlu0 %6529 }
0x1a92   : > { %v6540_v21 = vmul.f32 0.03125, %v6530_v8 }
0x1a93   : > { %v6533_v46 = vpop.xlane.xlu1 %6532 }
0x1a94   : > { %v9638_v18 = vsub.f32 %v6524_v1, %v6540_v21  ;;  %v6541_v41 = vmul.f32 0.03125, %v6533_v46 }
0x1a95   : > { %v6536_v36 = vpop.xlane.xlu0 %6535 }
0x1a96   : > { %v6545_v13 = vsub.f32 %v6525_v50, %v6541_v41  ;;  %v6542_v37 = vmul.f32 0.03125, %v6536_v36  ;;  %v6548_v40 = vmul.f32 %v9638_v18, %v9638_v18 }
0x1a98   : > { %v9642_v47 = vsub.f32 %v6526_v39, %v6542_v37  ;;  %v6552_v48 = vsel %vm626_vm0, %v6548_v40, 0.0  ;;  %v6549_v51 = vmul.f32 %v6545_v13, %v6545_v13 }
0x1a99   : > { %6553 = vadd.xlane.f32.xlu1 %v6552_v48  ;;  %v6539_v4 = vpop.xlane.xlu0 %6538 }
0x1a9a   : > { %v6543_v52 = vmul.f32 0.03125, %v6539_v4  ;;  %v6555_v53 = vsel %vm626_vm0, %v6549_v51, 0.0  ;;  %v6550_v20 = vmul.f32 %v9642_v47, %v9642_v47 }
0x1a9b   : > { %6556 = vadd.xlane.f32.xlu0 %v6555_v53 }
0x1a9c   : > { %v6547_v30 = vsub.f32 %v6527_v31, %v6543_v52  ;;  %v6558_v12 = vsel %vm626_vm0, %v6550_v20, 0.0  ;;  %v7987_v31 = vld [vmem:[%s9839_s30 + $0x38] sm:$0xff]   ;;  %v7223_v52 = vld [vmem:[%s9838_s26 + $0x6] ss:$0 sm:$0xff] }
0x1a9d   : > { %6559 = vadd.xlane.f32.xlu1 %v6558_v12  ;;  %7794 = vmatprep.subr.bf16.mxu1 %v7987_v31 }
0x1a9e   : > { %v6551_v57 = vmul.f32 %v6547_v30, %v6547_v30  ;;  %7795 = vmatpush3.bf16.msra.mxu1 %v7987_v31 }
0x1aa0   : > { %v6561_v15 = vsel %vm626_vm0, %v6551_v57, 0.0 }
0x1aa1   : > { %6562 = vadd.xlane.f32.xlu0 %v6561_v15 }
0x1b26   : > { %v6554_v16 = vpop.xlane.xlu1 %6553 }
0x1b27   : > { %v6564_v11 = vmul.f32 0.03125, %v6554_v16 }
0x1b28   : > { %v6557_v19 = vpop.xlane.xlu0 %6556 }
0x1b29   : > { %v6568_v60 = vadd.f32 1e-05, %v6564_v11  ;;  %v6565_v25 = vmul.f32 0.03125, %v6557_v19 }
0x1b2a   : > { %v6560_v45 = vpop.xlane.xlu1 %6559 }
0x1b2b   : > { %8126 = vrsqrt.f32 %v6568_v60  ;;  %v6569_v34 = vadd.f32 1e-05, %v6565_v25  ;;  %v6566_v61 = vmul.f32 0.03125, %v6560_v45 }
0x1b2d   : > { %8128 = vrsqrt.f32 %v6569_v34  ;;  %v6570_v27 = vadd.f32 1e-05, %v6566_v61 }
0x1b2e   : > { %v6563_v5 = vpop.xlane.xlu0 %6562 }
0x1b2f   : > { %8130 = vrsqrt.f32 %v6570_v27  ;;  %v6567_v7 = vmul.f32 0.03125, %v6563_v5 }
0x1b31   : > { %v6571_v43 = vadd.f32 1e-05, %v6567_v7 }
0x1b33   : > { %8132 = vrsqrt.f32 %v6571_v43 }
0x1b35   : > { %v8127_v44 = vpop.eup %8126 }
0x1b36   : > { %v6576_v6 = vmul.f32 %v8127_v44, %v9638_v18 }
0x1b37   : > { %v8129_v22 = vpop.eup %8128 }
0x1b38   : > { %v6577_v63 = vmul.f32 %v8129_v22, %v6545_v13  ;;  %v6584_v49 = vmul.f32 %v7216_v62, %v6576_v6 }
0x1b39   : > { %v8131_v3 = vpop.eup %8130 }
0x1b3a   : > { %v6578_v28 = vmul.f32 %v8131_v3, %v9642_v47  ;;  %v6585_v29 = vmul.f32 %v7216_v62, %v6577_v63  ;;  %v6592_v17 = vadd.f32 %v7217_v23, %v6584_v49 }
0x1b3c   : > { %v6593_v24 = vadd.f32 %v7217_v23, %v6585_v29  ;;  %v6586_v0 = vmul.f32 %v7216_v62, %v6578_v28 }
0x1b3d   : > { %v8133_v42 = vpop.eup %8132 }
0x1b3e   : > { %v6579_v1 = vmul.f32 %v8133_v42, %v6547_v30  ;;  %v6596_v2 = vpack.c.bf16 %v6593_v24, %v6592_v17  ;;  %v6594_v26 = vadd.f32 %v7217_v23, %v6586_v0 }
0x1b40   : > { %v6587_v39 = vmul.f32 %v7216_v62, %v6579_v1  ;;  %7776 = vmatprep.mubr.msk.bf16.mxu0 %vm626_vm0, %v6596_v2 }
0x1b42   : > { %v6595_v50 = vadd.f32 %v7217_v23, %v6587_v39 }
0x1b44   : > { %v6597_v9 = vpack.c.bf16 %v6595_v50, %v6594_v26 }
0x1b46   : > { %7777 = vmatmul.mubr.msk.bf16.vlgmr.msra.gmra.mrb[84].mxu0 %vm626_vm0, %v6597_v9 }
0x1c19   : > { %v7778_v33 = vpop.f32.mrb[84].mxu0 }
0x1c1a   : > { %v6670_v8 = vadd.f32 %v7778_v33, %v7218_v32  ;;  %v6661_v21 = vpop.f32.mrb[85].mxu0  ;;  %v7232_v33 = vld [vmem:[%s9838_s26 + $0x7] ss:$0 sm:$0xff] }
0x1c1b   : > { %v6662_v46 = vadd.f32 %v7218_v32, %v6661_v21  ;;  %v7779_v18 = vpop.f32.mrb[86].mxu0 }
0x1c1c   : > { %v6673_v41 = vadd.f32 %v7779_v18, %v7218_v32  ;;  %v6664_v36 = vpop.f32.mrb[87].mxu0  ;;  %v6678_v37 = vmax.f32 %v6670_v8, 0.0 }
0x1c1d   : > { %v6665_v13 = vadd.f32 %v7218_v32, %v6664_v36  ;;  %v6676_v47 = vmax.f32 %v6662_v46, 0.0  ;;  %v7233_v46 = vld [vmem:[%s9838_s26 + $0x8] ss:$0 sm:$0xff] }
0x1c1e   : > { %v6679_v40 = vmax.f32 %v6673_v41, 0.0 }
0x1c1f   : > { %v6677_v48 = vmax.f32 %v6665_v13, 0.0 }
0x1c20   : > { %v6681_v51 = vpack.c.bf16 %v6679_v40, %v6678_v37 }
0x1c21   : > { %v6680_v4 = vpack.c.bf16 %v6677_v48, %v6676_v47 }
0x1c23   : > { %7796 = vmatprep.mubr.bf16.mxu1 %v6680_v4 }
0x1c24   : > { %7797 = vmatmul.mubr.bf16.vlgmr.msra.gmra.mrb[72].mxu1 %v6681_v51 }
0x1cf7   : > { %v7798_v53 = vpop.f32.mrb[72].mxu1 }
0x1cf8   : > { %v6784_v20 = vpop.f32.mrb[73].mxu1  ;;  %v6793_v30 = vadd.f32 %v7798_v53, %v7223_v52 }
0x1cf9   : > { %v6785_v12 = vadd.f32 %v7223_v52, %v6784_v20  ;;  %v7799_v57 = vpop.f32.mrb[74].mxu1 }
0x1cfa   : > { %v6787_v15 = vpop.f32.mrb[75].mxu1  ;;  %v6796_v55 = vadd.f32 %v7799_v57, %v7223_v52  ;;  %v6801_v38 = vadd.f32 %v6793_v30, %v6594_v26 }
0x1cfb   : > { %v6799_v54 = vadd.f32 %v6785_v12, %v6592_v17  ;;  %v6788_v56 = vadd.f32 %v7223_v52, %v6787_v15 }
0x1cfc   : > { %v6802_v59 = vadd.f32 %v6796_v55, %v6595_v50  ;;  %v6809_v16 = vsel %vm626_vm0, %v6801_v38, 0.0 }
0x1cfd   : > { %v6800_v58 = vadd.f32 %v6788_v56, %v6593_v24  ;;  %v6803_v35 = vsel %vm626_vm0, %v6799_v54, 0.0 }
0x1cfe   : > { %6804 = vadd.xlane.f32.xlu1 %v6803_v35  ;;  %v6812_v11 = vsel %vm626_vm0, %v6802_v59, 0.0 }
0x1cff   : > { %v6806_v14 = vsel %vm626_vm0, %v6800_v58, 0.0 }
0x1d00   : > { %6807 = vadd.xlane.f32.xlu0 %v6806_v14 }
0x1d02   : > { %6810 = vadd.xlane.f32.xlu1 %v6809_v16 }
0x1d04   : > { %6813 = vadd.xlane.f32.xlu0 %v6812_v11 }
0x1d8b   : > { %v6805_v19 = vpop.xlane.xlu1 %6804 }
0x1d8c   : > { %v6815_v60 = vmul.f32 0.03125, %v6805_v19 }
0x1d8d   : > { %v6808_v25 = vpop.xlane.xlu0 %6807 }
0x1d8e   : > { %v6819_v45 = vsub.f32 %v6799_v54, %v6815_v60  ;;  %v6816_v34 = vmul.f32 0.03125, %v6808_v25 }
0x1d8f   : > { %v6811_v61 = vpop.xlane.xlu1 %6810 }
0x1d90   : > { %v6820_v27 = vsub.f32 %v6800_v58, %v6816_v34  ;;  %v6817_v5 = vmul.f32 0.03125, %v6811_v61  ;;  %v6823_v7 = vmul.f32 %v6819_v45, %v6819_v45 }
0x1d91   : > { %v6814_v43 = vpop.xlane.xlu0 %6813 }
0x1d92   : > { %v6821_v44 = vsub.f32 %v6801_v38, %v6817_v5  ;;  %v6818_v62 = vmul.f32 0.03125, %v6814_v43  ;;  %v6827_v6 = vsel %vm626_vm0, %v6823_v7, 0.0  ;;  %v6824_v22 = vmul.f32 %v6820_v27, %v6820_v27 }
0x1d93   : > { %6828 = vadd.xlane.f32.xlu1 %v6827_v6 }
0x1d94   : > { %v6822_v63 = vsub.f32 %v6802_v59, %v6818_v62  ;;  %v6830_v49 = vsel %vm626_vm0, %v6824_v22, 0.0  ;;  %v6825_v3 = vmul.f32 %v6821_v44, %v6821_v44 }
0x1d95   : > { %6831 = vadd.xlane.f32.xlu0 %v6830_v49 }
0x1d96   : > { %v6833_v23 = vsel %vm626_vm0, %v6825_v3, 0.0  ;;  %v6826_v28 = vmul.f32 %v6822_v63, %v6822_v63 }
0x1d97   : > { %6834 = vadd.xlane.f32.xlu1 %v6833_v23 }
0x1d98   : > { %v6836_v29 = vsel %vm626_vm0, %v6826_v28, 0.0 }
0x1d99   : > { %6837 = vadd.xlane.f32.xlu0 %v6836_v29 }
0x1e20   : > { %v6829_v17 = vpop.xlane.xlu1 %6828 }
0x1e21   : > { %v6839_v24 = vmul.f32 0.03125, %v6829_v17 }
0x1e22   : > { %v6832_v42 = vpop.xlane.xlu0 %6831 }
0x1e23   : > { %v6843_v0 = vadd.f32 1e-05, %v6839_v24  ;;  %v6840_v1 = vmul.f32 0.03125, %v6832_v42 }
0x1e24   : > { %v6835_v2 = vpop.xlane.xlu1 %6834 }
0x1e25   : > { %8134 = vrsqrt.f32 %v6843_v0  ;;  %v6844_v39 = vadd.f32 1e-05, %v6840_v1  ;;  %v6841_v26 = vmul.f32 0.03125, %v6835_v2 }
0x1e26   : > { %v6838_v50 = vpop.xlane.xlu0 %6837 }
0x1e27   : > { %8136 = vrsqrt.f32 %v6844_v39  ;;  %v6845_v9 = vadd.f32 1e-05, %v6841_v26  ;;  %v6842_v10 = vmul.f32 0.03125, %v6838_v50 }
0x1e29   : > { %8138 = vrsqrt.f32 %v6845_v9  ;;  %v6846_v31 = vadd.f32 1e-05, %v6842_v10 }
0x1e2b   : > { %8140 = vrsqrt.f32 %v6846_v31 }
0x1e2f   : > { %v8135_v32 = vpop.eup %8134 }
0x1e30   : > { %v6851_v8 = vmul.f32 %v8135_v32, %v6819_v45 }
0x1e31   : > { %v8137_v21 = vpop.eup %8136 }
0x1e32   : > { %v6859_v18 = vmul.f32 %v7232_v33, %v6851_v8  ;;  %v6852_v41 = vmul.f32 %v8137_v21, %v6820_v27 }
0x1e33   : > { %v8139_v36 = vpop.eup %8138 }
0x1e34   : > { %v6867_v13 = vadd.f32 %v7233_v46, %v6859_v18  ;;  %v6860_v37 = vmul.f32 %v7232_v33, %v6852_v41  ;;  %v6853_v40 = vmul.f32 %v8139_v36, %v6821_v44 }
0x1e35   : > { %v8141_v47 = vpop.eup %8140 }
0x1e36   : > { %v6868_v48 = vadd.f32 %v7233_v46, %v6860_v37  ;;  %v6861_v51 = vmul.f32 %v7232_v33, %v6853_v40  ;;  %6871 = vst.msk [vmem:[%s566_s16] sm:$0xff] %vm626_vm0, %v6867_v13  ;;  %v6854_v4 = vmul.f32 %v8141_v47, %v6822_v63 }
0x1e38   : > { %v6869_v52 = vadd.f32 %v7233_v46, %v6861_v51  ;;  %6872 = vst.msk [vmem:[%s566_s16 + $0x8] sm:$0xff] %vm626_vm0, %v6868_v48  ;;  %v6862_v53 = vmul.f32 %v7232_v33, %v6854_v4 }
0x1e3a   : > { %6873 = vst.msk [vmem:[%s566_s16 + $0x10] sm:$0xff] %vm626_vm0, %v6869_v52  ;;  %v6870_v20 = vadd.f32 %v7233_v46, %v6862_v53 }
0x1e3c   : > { %6874 = vst.msk [vmem:[%s566_s16 + $0x18] sm:$0xff] %vm626_vm0, %v6870_v20 }
0x1e3d   : > { %8333 = shalt.err (!%p8330_p12)
}
0x1e3e   : > { %s8334_s17 = scalar_lea.hbm %s9711_s3, 512  ;;  %s8338_s28 = scalar_lea.hbm %s9842_s29, 1024 }
0x1e3f   : > { %p8335_p3 = scmp.ne.s32.totalorder %s9711_s3, %s8334_s17  ;;  %p8339_p2 = scmp.lt.u32.totalorder %s9711_s3, %s9842_s29 }
0x1e40   : > { %p8340_p8 = scmp.lt.u32.totalorder %s8338_s28, %s8334_s17  ;;  %p8342_p1 = scmp.lt.u32.totalorder %s8334_s17, %s9711_s3 }
0x1e41   : > { %p8336_p9 = pnand %p8335_p3, %p9843_p5 }
0x1e42   : > { %p8341_p10 = por %p8340_p8, %p8339_p2 }
0x1e43   : > { %p8337_p6 = pneg %p8336_p9 }
0x1e44   : > { %p8343_p11 = por %p8342_p1, %p8341_p10 }
0x1e46   : > { %p8344_p4 = pnand %p8343_p11, %p8337_p6 }
0x1e48   : > { %8347 = shalt.err (!%p8344_p4)
}
0x1e49   : > { %s8432_s24 = smov 128  }
0x1e4a   : > { %7816 = dma.vmem_to_hbm [thread:$0]  (%p9843_p5), %s9714_s1, 512, %s9711_s3, %s6876_s21, %s8432_s24, %s8432_s24, %s8427_s13  }
0x1e4b PF: > { %s9844_s16 = sld [smem:[#allocation20_spill]]  ;;  %s9845_s8 = sld [smem:[#allocation25_spill]] }
0x1e4c   : > { %p9847_p7 = scmp.ge.s32.totalorder %s8402_s20, 2 }
0x1e51   : > { %s6904_s6 = sand.u32 1, %s9844_s16   ;;  %p9846_p13 = scmp.ne.s32.totalorder %s9845_s8, 0 }
0x1e52   : > { %s6905_s14 = scalar_lea.sflag [#allocation4], %s6904_s6 }
0x1e53   : > { %p7839_p0 = pnand %p9847_p7, %p9846_p13 }
0x1e55   : > { %8385 = dma.done.wait (!%p7839_p0), %s6905_s14, 512  }
0x1e56   : > { %8387 = vsyncadd (!%p7839_p0), %s6905_s14, 4294966784  ;;  %s9848_s20 = sld [smem:[#allocation22_spill]]  ;;  %s9849_s19 = sld [smem:[#allocation21_spill]] }
0x1e57   : > { %s9850_s9 = sld [smem:[#allocation23_spill]]  ;;  %s9851_s17 = smov %s8394_s18 }
0x1e5c   : > { %p31_p12 = scmp.ge.s32.totalorder %s9848_s20, 4   ;;  %s9852_s18 = smov %s9849_s19 }
0x1e5d   : > { %s9853_s19 = smov %s9850_s9 }
0x1e5e   :  { %33 = sbr.rel (!%p31_p12) target bundleno = 18 (0x12), region = 157 }
0x1e65   :  { %6910 = vsyncpa [#allocation3], 1 }
0x1e66   :  { %6912 = vsyncpa [#allocation3 + $0x1], 1 }
0x1e67   :  { %6913 = vsyncpa [#allocation6], 1 }
0x1e68   :  { %6915 = vsyncpa [#allocation6 + $0x1], 1 }
0x1e69   :  { %6916 = vsyncpa [#allocation9], 1 }
0x1e6a   :  { %6918 = vsyncpa [#allocation9 + $0x1], 1 }
0x1e6b   :  { %6919 = vsyncpa [#allocation12], 1 }
0x1e6c   :  { %6920 = vsyncpa [#allocation4], 1 }
0x1e6d   :  { %6922 = vsyncpa [#allocation4 + $0x1], 1 }

</bundles_post_ra>
